<compile_context>
chip_gen: v7x
topology: tpu7x:2x2x1
jax: 0.10.0
libtpu: 0.0.40
codegen_flags: <defaults>
</compile_context>

<pallas_src>
import jax
import jax.numpy as jnp
from jax import lax
from jax.experimental import pallas as pl
from jax.experimental.pallas import tpu as pltpu

_LANE = 128     # lane width: channels are padded to a multiple of this
_PAD_W = 8      # halo padding per side along W (sublane-aligned window store)


# ----------------------------- Pallas kernel -------------------------------

def _basic_block_kernel(x_ref, w1_ref, b1_ref, w2_ref, b2_ref, out_ref, pad_ref):
    """Fused: relu(bn2(conv2(relu(bn1(conv1(x))))) + x), BN in inference mode.

    x_ref   : (1, H, W, Cp)       one image, channels padded to lane multiple
    w*_ref  : (3, 3*Cp, Cp)       HWIO weights, BN scale folded, kx folded in K
    b*_ref  : (1, Cp)             folded BN bias
    out_ref : (1, H, W, Cp)
    pad_ref : (H+2, W+2*_PAD_W, Cp) VMEM halo scratch (reused by both convs)
    """
    _, H, W, Cp = x_ref.shape

    def conv3x3(w_ref):
        # Lane-stacked patch: cat[i, w, kx*Cp + c] = padded[i, w + kx - 1, c]
        cols = [pad_ref[:, _PAD_W - 1 + kx: _PAD_W - 1 + kx + W, :]
                for kx in range(3)]
        cat = jnp.concatenate(cols, axis=-1)               # (H+2, W, 3*Cp)
        acc = jnp.zeros((H * W, w_ref.shape[-1]), jnp.float32)
        for ky in range(3):                                 # 3 MXU matmuls
            lhs = cat[ky:ky + H].reshape(H * W, 3 * Cp)
            acc = acc + jnp.dot(lhs, w_ref[ky],
                                preferred_element_type=jnp.float32)
        return acc                                          # (H*W, Cp) f32

    # Zero the halo scratch; only the interior window is ever (over)written,
    # so the 1-pixel border stays zero for both convolutions.
    pad_ref[...] = jnp.zeros_like(pad_ref)

    # conv1 + bn1 (scale folded into w1) + ReLU  -- intermediate stays in VMEM.
    pad_ref[1:H + 1, _PAD_W:_PAD_W + W, :] = x_ref[0]
    h1 = jnp.maximum(conv3x3(w1_ref) + b1_ref[...], 0.0)    # (H*W, Cp)

    # conv2 + bn2 + identity residual + ReLU.
    pad_ref[1:H + 1, _PAD_W:_PAD_W + W, :] = h1.reshape(H, W, Cp)
    y = conv3x3(w2_ref) + b2_ref[...]
    y = y + x_ref[0].reshape(H * W, Cp)                      # identity shortcut
    y = jnp.maximum(y, 0.0)
    out_ref[0] = y.reshape(H, W, Cp).astype(out_ref.dtype)


# ------------------------------ JAX wrapper ---------------------------------

def _round_up(n, m):
    return (n + m - 1) // m * m


def _fold_bn(gamma, beta, mean, var, eps=1e-5):
    scale = gamma / jnp.sqrt(var + eps)
    return scale, beta - mean * scale


def _fold_conv_weight(w_oihw, scale, cin_p, cout_p):
    """OIHW -> HWIO, fold BN scale into out-channels, pad channels, fold kx into K."""
    w = jnp.transpose(w_oihw, (2, 3, 1, 0)).astype(jnp.float32)   # (3,3,Cin,Cout)
    w = w * scale[None, None, None, :]
    kh, kw, cin, cout = w.shape
    w = jnp.pad(w, ((0, 0), (0, 0), (0, cin_p - cin), (0, cout_p - cout)))
    return w.reshape(kh, kw * cin_p, cout_p)                      # (3, 3*Cp, Cp)


def basic_block_forward(x_nchw, params):
    """BasicBlock forward (stride=1, downsample=None). NCHW in / NCHW out."""
    # TODO(synk): stride>1 / downsample shortcut path not implemented
    # (module defaults stride=1, downsample=None are what this covers).
    B, Cin, H, W = x_nchw.shape
    Cout = params["conv1_w"].shape[0]
    assert Cin == Cout, "identity shortcut requires inplanes == planes"
    assert W % 8 == 0, "W must be a multiple of 8 (sublane-aligned halo store)"
    Cp = _round_up(Cin, _LANE)

    # Layout plumbing done once at the block boundary (a real network would
    # keep activations in channel-padded NHWC and weights pre-folded).
    x = jnp.transpose(x_nchw, (0, 2, 3, 1)).astype(jnp.float32)        # NHWC
    x = jnp.pad(x, ((0, 0), (0, 0), (0, 0), (0, Cp - Cin)))            # pad C

    s1, b1 = _fold_bn(params["bn1_gamma"], params["bn1_beta"],
                      params["bn1_mean"], params["bn1_var"])
    s2, b2 = _fold_bn(params["bn2_gamma"], params["bn2_beta"],
                      params["bn2_mean"], params["bn2_var"])
    w1f = _fold_conv_weight(params["conv1_w"], s1, Cp, Cp)
    w2f = _fold_conv_weight(params["conv2_w"], s2, Cp, Cp)
    b1p = jnp.pad(b1, (0, Cp - Cout)).reshape(1, Cp).astype(jnp.float32)
    b2p = jnp.pad(b2, (0, Cp - Cout)).reshape(1, Cp).astype(jnp.float32)

    out = pl.pallas_call(
        _basic_block_kernel,
        out_shape=jax.ShapeDtypeStruct((B, H, W, Cp), jnp.float32),
        grid_spec=pltpu.PrefetchScalarGridSpec(
            num_scalar_prefetch=0,
            grid=(B,),
            in_specs=[
                pl.BlockSpec((1, H, W, Cp), lambda b: (b, 0, 0, 0)),
                pl.BlockSpec((3, 3 * Cp, Cp), lambda b: (0, 0, 0)),   # resident
                pl.BlockSpec((1, Cp), lambda b: (0, 0)),
                pl.BlockSpec((3, 3 * Cp, Cp), lambda b: (0, 0, 0)),   # resident
                pl.BlockSpec((1, Cp), lambda b: (0, 0)),
            ],
            out_specs=pl.BlockSpec((1, H, W, Cp), lambda b: (b, 0, 0, 0)),
            scratch_shapes=[
                pltpu.VMEM((H + 2, W + 2 * _PAD_W, Cp), jnp.float32),
            ],
        ),
        compiler_params=pltpu.CompilerParams(
            dimension_semantics=("parallel",),            # megacore on v7x
            vmem_limit_bytes=32 * 1024 * 1024,            # safe on v5e/v6e/v7x
        ),
    )(x, w1f, b1p, w2f, b2p)

    out = out[..., :Cout]                                  # drop channel pad
    return jnp.transpose(out, (0, 3, 1, 2))                # NHWC -> NCHW


# ------------------------------ reference -----------------------------------

def _reference_forward(x_nchw, params):
    """Pure-JAX (lax) reference mirroring the PyTorch eval-mode forward."""
    def conv(x, w):
        return lax.conv_general_dilated(
            x, w, window_strides=(1, 1), padding=((1, 1), (1, 1)),
            dimension_numbers=("NCHW", "OIHW", "NCHW"))

    def bn(x, g, b, m, v, eps=1e-5):
        g = g[None, :, None, None]; b = b[None, :, None, None]
        m = m[None, :, None, None]; v = v[None, :, None, None]
        return (x - m) / jnp.sqrt(v + eps) * g + b

    out = conv(x_nchw, params["conv1_w"])
    out = bn(out, params["bn1_gamma"], params["bn1_beta"],
             params["bn1_mean"], params["bn1_var"])
    out = jnp.maximum(out, 0.0)
    out = conv(out, params["conv2_w"])
    out = bn(out, params["bn2_gamma"], params["bn2_beta"],
             params["bn2_mean"], params["bn2_var"])
    out = out + x_nchw
    return jnp.maximum(out, 0.0)


# --------------------------------- main --------------------------------------

if __name__ == "__main__":
    B, C_IN, H, W = 2, 4, 16, 16
    PLANES = 4  # expansion = 1, stride = 1, downsample = None

    key = jax.random.PRNGKey(0)
    ks = jax.random.split(key, 10)

    x = jax.random.normal(ks[0], (B, C_IN, H, W), dtype=jnp.float32)

    params = {
        "conv1_w": 0.1 * jax.random.normal(ks[1], (PLANES, C_IN, 3, 3), jnp.float32),
        "conv2_w": 0.1 * jax.random.normal(ks[2], (PLANES, PLANES, 3, 3), jnp.float32),
        "bn1_gamma": 1.0 + 0.1 * jax.random.normal(ks[3], (PLANES,), jnp.float32),
        "bn1_beta": 0.1 * jax.random.normal(ks[4], (PLANES,), jnp.float32),
        "bn1_mean": 0.1 * jax.random.normal(ks[5], (PLANES,), jnp.float32),
        "bn1_var": jnp.abs(1.0 + 0.1 * jax.random.normal(ks[6], (PLANES,), jnp.float32)),
        "bn2_gamma": 1.0 + 0.1 * jax.random.normal(ks[7], (PLANES,), jnp.float32),
        "bn2_beta": 0.1 * jax.random.normal(ks[8], (PLANES,), jnp.float32),
        "bn2_mean": 0.1 * jax.random.normal(ks[9], (PLANES,), jnp.float32),
        "bn2_var": jnp.ones((PLANES,), jnp.float32),
    }

    out = jax.block_until_ready(basic_block_forward(x, params))
    ref = jax.block_until_ready(_reference_forward(x, params))

    assert out.shape == (B, PLANES, H, W), out.shape
    max_err = float(jnp.max(jnp.abs(out - ref)))
    assert jnp.allclose(out, ref, atol=1e-3, rtol=1e-3), max_err

    print("KERNEL_OK")
</pallas_src>

<mosaic_0001>
module attributes {stable_mosaic.version = 11 : i64} {
  func.func @_basic_block_kernel(%arg0: i32, %arg1: memref<1x16x16x128xf32, #tpu.memory_space<vmem>>, %arg2: memref<3x384x128xf32, #tpu.memory_space<vmem>>, %arg3: memref<1x128xf32, #tpu.memory_space<vmem>>, %arg4: memref<3x384x128xf32, #tpu.memory_space<vmem>>, %arg5: memref<1x128xf32, #tpu.memory_space<vmem>>, %arg6: memref<1x16x16x128xf32, #tpu.memory_space<vmem>>, %arg7: memref<18x32x128xf32, #tpu.memory_space<vmem>>) attributes {dimension_semantics = [#tpu.dimension_semantics<parallel>], iteration_bounds = array<i64: 2>, scalar_prefetch = 0 : i64, scratch_operands = 1 : i64, tpu.core_type = #tpu.core_type<tc>, window_params = [{transform_indices = @transform_0, window_bounds = array<i64: 1, 16, 16, 128>}, {pipeline_mode = #tpu.pipeline_mode<synchronous>, transform_indices = @transform_1, window_bounds = array<i64: 3, 384, 128>}, {pipeline_mode = #tpu.pipeline_mode<synchronous>, transform_indices = @transform_2, window_bounds = array<i64: 1, 128>}, {pipeline_mode = #tpu.pipeline_mode<synchronous>, transform_indices = @transform_3, window_bounds = array<i64: 3, 384, 128>}, {pipeline_mode = #tpu.pipeline_mode<synchronous>, transform_indices = @transform_4, window_bounds = array<i64: 1, 128>}, {transform_indices = @transform_5, window_bounds = array<i64: 1, 16, 16, 128>}]} {
    %cst = arith.constant 0.000000e+00 : f32
    %0 = vector.broadcast %cst : f32 to vector<18x32x128xf32>
    %c0 = arith.constant 0 : index
    %c0_0 = arith.constant 0 : index
    %c0_1 = arith.constant 0 : index
    %1 = vector.load %arg7[%c0, %c0_0, %c0_1] : memref<18x32x128xf32, #tpu.memory_space<vmem>>, vector<18x32x128xf32>
    tpu.vector_store %arg7[%c0, %c0_0, %c0_1], %0 {strides = array<i32>} : memref<18x32x128xf32, #tpu.memory_space<vmem>>, vector<18x32x128xf32>,
    %c0_2 = arith.constant 0 : index
    %c0_3 = arith.constant 0 : index
    %c0_4 = arith.constant 0 : index
    %c0_5 = arith.constant 0 : index
    %2 = vector.load %arg1[%c0_2, %c0_3, %c0_4, %c0_5] : memref<1x16x16x128xf32, #tpu.memory_space<vmem>>, vector<1x16x16x128xf32>
    %3 = vector.shape_cast %2 : vector<1x16x16x128xf32> to vector<16x16x128xf32>
    %c1 = arith.constant 1 : index
    %c8 = arith.constant 8 : index
    %c0_6 = arith.constant 0 : index
    %4 = vector.load %arg7[%c1, %c8, %c0_6] : memref<18x32x128xf32, #tpu.memory_space<vmem>>, vector<16x16x128xf32>
    tpu.vector_store %arg7[%c1, %c8, %c0_6], %3 {strides = array<i32>} : memref<18x32x128xf32, #tpu.memory_space<vmem>>, vector<16x16x128xf32>,
    %c0_7 = arith.constant 0 : index
    %c7 = arith.constant 7 : index
    %c0_8 = arith.constant 0 : index
    %5 = vector.load %arg7[%c0_7, %c7, %c0_8] : memref<18x32x128xf32, #tpu.memory_space<vmem>>, vector<18x16x128xf32>
    %c0_9 = arith.constant 0 : index
    %c8_10 = arith.constant 8 : index
    %c0_11 = arith.constant 0 : index
    %6 = vector.load %arg7[%c0_9, %c8_10, %c0_11] : memref<18x32x128xf32, #tpu.memory_space<vmem>>, vector<18x16x128xf32>
    %c0_12 = arith.constant 0 : index
    %c9 = arith.constant 9 : index
    %c0_13 = arith.constant 0 : index
    %7 = vector.load %arg7[%c0_12, %c9, %c0_13] : memref<18x32x128xf32, #tpu.memory_space<vmem>>, vector<18x16x128xf32>
    %8 = tpu.concatenate %5, %6, %7 in 2 : vector<18x16x128xf32>, vector<18x16x128xf32>, vector<18x16x128xf32> -> vector<18x16x384xf32>
    %cst_14 = arith.constant 0.000000e+00 : f32
    %9 = vector.broadcast %cst_14 : f32 to vector<256x128xf32>
    %10 = vector.extract_strided_slice %8 {offsets = [0, 0, 0], sizes = [16, 16, 384], strides = [1, 1, 1]} : vector<18x16x384xf32> to vector<16x16x384xf32>
    %11 = vector.shape_cast %10 : vector<16x16x384xf32> to vector<256x384xf32>
    %c0_15 = arith.constant 0 : index
    %c0_16 = arith.constant 0 : index
    %c0_17 = arith.constant 0 : index
    %12 = vector.load %arg2[%c0_15, %c0_16, %c0_17] : memref<3x384x128xf32, #tpu.memory_space<vmem>>, vector<1x384x128xf32>
    %13 = vector.shape_cast %12 : vector<1x384x128xf32> to vector<384x128xf32>
    %cst_18 = arith.constant dense<0.000000e+00> : vector<256x128xf32>
    %14 = tpu.matmul %11, %13, %cst_18 {dimension_numbers = #tpu.dot_dimension_numbers<[1], [0], [0], [1], [0, 0, 1, 1], [], []>} : vector<256x384xf32>, vector<384x128xf32>, vector<256x128xf32> -> vector<256x128xf32>
    %15 = arith.addf %9, %14 : vector<256x128xf32>
    %16 = vector.extract_strided_slice %8 {offsets = [1, 0, 0], sizes = [16, 16, 384], strides = [1, 1, 1]} : vector<18x16x384xf32> to vector<16x16x384xf32>
    %17 = vector.shape_cast %16 : vector<16x16x384xf32> to vector<256x384xf32>
    %c1_19 = arith.constant 1 : index
    %c0_20 = arith.constant 0 : index
    %c0_21 = arith.constant 0 : index
    %18 = vector.load %arg2[%c1_19, %c0_20, %c0_21] : memref<3x384x128xf32, #tpu.memory_space<vmem>>, vector<1x384x128xf32>
    %19 = vector.shape_cast %18 : vector<1x384x128xf32> to vector<384x128xf32>
    %cst_22 = arith.constant dense<0.000000e+00> : vector<256x128xf32>
    %20 = tpu.matmul %17, %19, %cst_22 {dimension_numbers = #tpu.dot_dimension_numbers<[1], [0], [0], [1], [0, 0, 1, 1], [], []>} : vector<256x384xf32>, vector<384x128xf32>, vector<256x128xf32> -> vector<256x128xf32>
    %21 = arith.addf %15, %20 : vector<256x128xf32>
    %22 = vector.extract_strided_slice %8 {offsets = [2, 0, 0], sizes = [16, 16, 384], strides = [1, 1, 1]} : vector<18x16x384xf32> to vector<16x16x384xf32>
    %23 = vector.shape_cast %22 : vector<16x16x384xf32> to vector<256x384xf32>
    %c2 = arith.constant 2 : index
    %c0_23 = arith.constant 0 : index
    %c0_24 = arith.constant 0 : index
    %24 = vector.load %arg2[%c2, %c0_23, %c0_24] : memref<3x384x128xf32, #tpu.memory_space<vmem>>, vector<1x384x128xf32>
    %25 = vector.shape_cast %24 : vector<1x384x128xf32> to vector<384x128xf32>
    %cst_25 = arith.constant dense<0.000000e+00> : vector<256x128xf32>
    %26 = tpu.matmul %23, %25, %cst_25 {dimension_numbers = #tpu.dot_dimension_numbers<[1], [0], [0], [1], [0, 0, 1, 1], [], []>} : vector<256x384xf32>, vector<384x128xf32>, vector<256x128xf32> -> vector<256x128xf32>
    %27 = arith.addf %21, %26 : vector<256x128xf32>
    %c0_26 = arith.constant 0 : index
    %c0_27 = arith.constant 0 : index
    %28 = vector.load %arg3[%c0_26, %c0_27] : memref<1x128xf32, #tpu.memory_space<vmem>>, vector<1x128xf32>
    %29 = vector.broadcast %28 : vector<1x128xf32> to vector<256x128xf32>
    %30 = arith.addf %27, %29 : vector<256x128xf32>
    %cst_28 = arith.constant 0.000000e+00 : f32
    %31 = vector.broadcast %cst_28 : f32 to vector<256x128xf32>
    %32 = arith.maximumf %30, %31 : vector<256x128xf32>
    %33 = vector.shape_cast %32 : vector<256x128xf32> to vector<16x16x128xf32>
    %c1_29 = arith.constant 1 : index
    %c8_30 = arith.constant 8 : index
    %c0_31 = arith.constant 0 : index
    %34 = vector.load %arg7[%c1_29, %c8_30, %c0_31] : memref<18x32x128xf32, #tpu.memory_space<vmem>>, vector<16x16x128xf32>
    tpu.vector_store %arg7[%c1_29, %c8_30, %c0_31], %33 {strides = array<i32>} : memref<18x32x128xf32, #tpu.memory_space<vmem>>, vector<16x16x128xf32>,
    %c0_32 = arith.constant 0 : index
    %c7_33 = arith.constant 7 : index
    %c0_34 = arith.constant 0 : index
    %35 = vector.load %arg7[%c0_32, %c7_33, %c0_34] : memref<18x32x128xf32, #tpu.memory_space<vmem>>, vector<18x16x128xf32>
    %c0_35 = arith.constant 0 : index
    %c8_36 = arith.constant 8 : index
    %c0_37 = arith.constant 0 : index
    %36 = vector.load %arg7[%c0_35, %c8_36, %c0_37] : memref<18x32x128xf32, #tpu.memory_space<vmem>>, vector<18x16x128xf32>
    %c0_38 = arith.constant 0 : index
    %c9_39 = arith.constant 9 : index
    %c0_40 = arith.constant 0 : index
    %37 = vector.load %arg7[%c0_38, %c9_39, %c0_40] : memref<18x32x128xf32, #tpu.memory_space<vmem>>, vector<18x16x128xf32>
    %38 = tpu.concatenate %35, %36, %37 in 2 : vector<18x16x128xf32>, vector<18x16x128xf32>, vector<18x16x128xf32> -> vector<18x16x384xf32>
    %cst_41 = arith.constant 0.000000e+00 : f32
    %39 = vector.broadcast %cst_41 : f32 to vector<256x128xf32>
    %40 = vector.extract_strided_slice %38 {offsets = [0, 0, 0], sizes = [16, 16, 384], strides = [1, 1, 1]} : vector<18x16x384xf32> to vector<16x16x384xf32>
    %41 = vector.shape_cast %40 : vector<16x16x384xf32> to vector<256x384xf32>
    %c0_42 = arith.constant 0 : index
    %c0_43 = arith.constant 0 : index
    %c0_44 = arith.constant 0 : index
    %42 = vector.load %arg4[%c0_42, %c0_43, %c0_44] : memref<3x384x128xf32, #tpu.memory_space<vmem>>, vector<1x384x128xf32>
    %43 = vector.shape_cast %42 : vector<1x384x128xf32> to vector<384x128xf32>
    %cst_45 = arith.constant dense<0.000000e+00> : vector<256x128xf32>
    %44 = tpu.matmul %41, %43, %cst_45 {dimension_numbers = #tpu.dot_dimension_numbers<[1], [0], [0], [1], [0, 0, 1, 1], [], []>} : vector<256x384xf32>, vector<384x128xf32>, vector<256x128xf32> -> vector<256x128xf32>
    %45 = arith.addf %39, %44 : vector<256x128xf32>
    %46 = vector.extract_strided_slice %38 {offsets = [1, 0, 0], sizes = [16, 16, 384], strides = [1, 1, 1]} : vector<18x16x384xf32> to vector<16x16x384xf32>
    %47 = vector.shape_cast %46 : vector<16x16x384xf32> to vector<256x384xf32>
    %c1_46 = arith.constant 1 : index
    %c0_47 = arith.constant 0 : index
    %c0_48 = arith.constant 0 : index
    %48 = vector.load %arg4[%c1_46, %c0_47, %c0_48] : memref<3x384x128xf32, #tpu.memory_space<vmem>>, vector<1x384x128xf32>
    %49 = vector.shape_cast %48 : vector<1x384x128xf32> to vector<384x128xf32>
    %cst_49 = arith.constant dense<0.000000e+00> : vector<256x128xf32>
    %50 = tpu.matmul %47, %49, %cst_49 {dimension_numbers = #tpu.dot_dimension_numbers<[1], [0], [0], [1], [0, 0, 1, 1], [], []>} : vector<256x384xf32>, vector<384x128xf32>, vector<256x128xf32> -> vector<256x128xf32>
    %51 = arith.addf %45, %50 : vector<256x128xf32>
    %52 = vector.extract_strided_slice %38 {offsets = [2, 0, 0], sizes = [16, 16, 384], strides = [1, 1, 1]} : vector<18x16x384xf32> to vector<16x16x384xf32>
    %53 = vector.shape_cast %52 : vector<16x16x384xf32> to vector<256x384xf32>
    %c2_50 = arith.constant 2 : index
    %c0_51 = arith.constant 0 : index
    %c0_52 = arith.constant 0 : index
    %54 = vector.load %arg4[%c2_50, %c0_51, %c0_52] : memref<3x384x128xf32, #tpu.memory_space<vmem>>, vector<1x384x128xf32>
    %55 = vector.shape_cast %54 : vector<1x384x128xf32> to vector<384x128xf32>
    %cst_53 = arith.constant dense<0.000000e+00> : vector<256x128xf32>
    %56 = tpu.matmul %53, %55, %cst_53 {dimension_numbers = #tpu.dot_dimension_numbers<[1], [0], [0], [1], [0, 0, 1, 1], [], []>} : vector<256x384xf32>, vector<384x128xf32>, vector<256x128xf32> -> vector<256x128xf32>
    %57 = arith.addf %51, %56 : vector<256x128xf32>
    %c0_54 = arith.constant 0 : index
    %c0_55 = arith.constant 0 : index
    %58 = vector.load %arg5[%c0_54, %c0_55] : memref<1x128xf32, #tpu.memory_space<vmem>>, vector<1x128xf32>
    %59 = vector.broadcast %58 : vector<1x128xf32> to vector<256x128xf32>
    %60 = arith.addf %57, %59 : vector<256x128xf32>
    %c0_56 = arith.constant 0 : index
    %c0_57 = arith.constant 0 : index
    %c0_58 = arith.constant 0 : index
    %c0_59 = arith.constant 0 : index
    %61 = vector.load %arg1[%c0_56, %c0_57, %c0_58, %c0_59] : memref<1x16x16x128xf32, #tpu.memory_space<vmem>>, vector<1x16x16x128xf32>
    %62 = vector.shape_cast %61 : vector<1x16x16x128xf32> to vector<16x16x128xf32>
    %63 = vector.shape_cast %62 : vector<16x16x128xf32> to vector<256x128xf32>
    %64 = arith.addf %60, %63 : vector<256x128xf32>
    %cst_60 = arith.constant 0.000000e+00 : f32
    %65 = vector.broadcast %cst_60 : f32 to vector<256x128xf32>
    %66 = arith.maximumf %64, %65 : vector<256x128xf32>
    %67 = vector.shape_cast %66 : vector<256x128xf32> to vector<16x16x128xf32>
    %c0_61 = arith.constant 0 : index
    %c0_62 = arith.constant 0 : index
    %c0_63 = arith.constant 0 : index
    %c0_64 = arith.constant 0 : index
    %68 = vector.load %arg6[%c0_61, %c0_62, %c0_63, %c0_64] : memref<1x16x16x128xf32, #tpu.memory_space<vmem>>, vector<1x16x16x128xf32>
    %69 = vector.shape_cast %68 : vector<1x16x16x128xf32> to vector<16x16x128xf32>
    %70 = vector.shape_cast %67 : vector<16x16x128xf32> to vector<1x16x16x128xf32>
    tpu.vector_store %arg6[%c0_61, %c0_62, %c0_63, %c0_64], %70 {strides = array<i32>} : memref<1x16x16x128xf32, #tpu.memory_space<vmem>>, vector<1x16x16x128xf32>,
    return
  }
  func.func @transform_0(%arg0: i32) -> (i32, i32, i32, i32) {
    %c0_i32 = arith.constant 0 : i32
    %c0_i32_0 = arith.constant 0 : i32
    %c0_i32_1 = arith.constant 0 : i32
    %c0_i32_2 = arith.constant 0 : i32
    return %arg0, %c0_i32, %c0_i32_0, %c0_i32_1 : i32, i32, i32, i32
  }
  func.func @transform_1(%arg0: i32) -> (i32, i32, i32) {
    %c0_i32 = arith.constant 0 : i32
    %c0_i32_0 = arith.constant 0 : i32
    %c0_i32_1 = arith.constant 0 : i32
    %c0_i32_2 = arith.constant 0 : i32
    return %c0_i32, %c0_i32_0, %c0_i32_1 : i32, i32, i32
  }
  func.func @transform_2(%arg0: i32) -> (i32, i32) {
    %c0_i32 = arith.constant 0 : i32
    %c0_i32_0 = arith.constant 0 : i32
    %c0_i32_1 = arith.constant 0 : i32
    return %c0_i32, %c0_i32_0 : i32, i32
  }
  func.func @transform_3(%arg0: i32) -> (i32, i32, i32) {
    %c0_i32 = arith.constant 0 : i32
    %c0_i32_0 = arith.constant 0 : i32
    %c0_i32_1 = arith.constant 0 : i32
    %c0_i32_2 = arith.constant 0 : i32
    return %c0_i32, %c0_i32_0, %c0_i32_1 : i32, i32, i32
  }
  func.func @transform_4(%arg0: i32) -> (i32, i32) {
    %c0_i32 = arith.constant 0 : i32
    %c0_i32_0 = arith.constant 0 : i32
    %c0_i32_1 = arith.constant 0 : i32
    return %c0_i32, %c0_i32_0 : i32, i32
  }
  func.func @transform_5(%arg0: i32) -> (i32, i32, i32, i32) {
    %c0_i32 = arith.constant 0 : i32
    %c0_i32_0 = arith.constant 0 : i32
    %c0_i32_1 = arith.constant 0 : i32
    %c0_i32_2 = arith.constant 0 : i32
    return %arg0, %c0_i32, %c0_i32_0, %c0_i32_1 : i32, i32, i32, i32
  }
}

</mosaic_0001>

<bundles_post_ra>
// kernel: tpu_custom_call.1
= control target key start
LH: loop header
LB: loop body
LE: loop exit
PB: predicated region body
PF: predicated region fallthrough
CT: control target
= control target key end

     0   :  { %10 = vsyncpa [#allocation4], 0  ;;  %s7778_s0 = inlined_call_operand.hbm [shape: f32[2,16,16,128], index: 0, kind: input, shape index: {}]   ;;  %s7779_s1 = inlined_call_operand.hbm [shape: f32[3,384,128], index: 1, kind: input, shape index: {}]   ;;  %s7780_s2 = inlined_call_operand.vmem [shape: f32[1,128], index: 2, kind: input, shape index: {}]   ;;  %s7781_s3 = inlined_call_operand.hbm [shape: f32[3,384,128], index: 3, kind: input, shape index: {}]   ;;  %s7782_s4 = inlined_call_operand.vmem [shape: f32[1,128], index: 4, kind: input, shape index: {}]   ;;  %s7783_s5 = inlined_call_operand.hbm [shape: f32[2,16,16,128], index: 5, kind: output, shape index: {}]  }
   0x1   :  { %12 = vsyncpa [#allocation4 + $0x1], 0 }
   0x2   :  { %13 = vsyncpa [#allocation7], 0 }
   0x3   :  { %14 = vsyncpa [#allocation5], 0 }
   0x4   :  { %16 = vsyncpa [#allocation5 + $0x1], 0  ;;  %s5682_s18 = smov 0   ;;  %s5684_s19 = smov 0  }
   0x5   :  { %s5686_s20 = smov 0   ;;  %s5688_s21 = smov 0  }
   0x6 LB: > { %s5703_s22 = sadd.s32 4294967295, %s5640_s21   ;;  %s4057_s23 = sadd.s32 4294967294, %s5640_s21   ;;  %s5640_s21 = sphi %s5688_s21, %s8016_s21   ;;  %s5636_s20 = sphi %s5686_s20, %s8015_s20   ;;  %s5632_s19 = sphi %s5684_s19, %s8014_s19   ;;  %s5628_s18 = sphi %s5682_s18, %s8013_s18  }
   0x7   : > { %p42_p0 = scmp.ne.s32.totalorder %s5632_s19, %s5628_s18  ;;  %p7784_p1 = scmp.eq.s32.totalorder %s5703_s22, 0 }
   0x8   : > { %p156_p3 = scmp.eq.s32.totalorder %s4057_s23, 1  ;;  %p4058_p5 = scmp.ge.s32.totalorder %s5640_s21, 1 }
   0x9   : > { %p5712_p4 = por %p7784_p1, %p42_p0  ;;  %p163_p7 = scmp.lt.s32.totalorder %s5640_s21, 3 }
   0xa   : > { %p5717_p6 = por %p156_p3, %p42_p0  ;;  %s5642_s27 = smov [#allocation6]  }
   0xb   : > { %s7882_s24 = scalar_select %p5712_p4, 1, 0 }
   0xc   : > { %s7883_s25 = scalar_select %p5717_p6, 1, 0 }
   0xd   : > { %p5722_p8 = pnand %p4058_p5, %p163_p7  ;;  %s175_s28 = sshll.u32 %s5642_s27, 4  ;;  %s5726_s28 = int_to_ptr.vmem [resolvable:$true] %s175_s28 }
   0xe   : > { %s5643_s30 = smov [#allocation8]   ;;  %s5484_s9 = scalar_lea.hbm %s7779_s1, 18432 }
   0xf   : > { %p5339_p9 = pneg %p5722_p8  ;;  %s191_s6 = sshll.u32 %s5643_s30, 4  ;;  %s5737_s6 = int_to_ptr.vmem [resolvable:$true] %s191_s6 }
  0x10   : > { %p5485_p12 = scmp.ne.s32.totalorder %s7779_s1, %s5484_s9  ;;  %p5491_p5 = scmp.lt.u32.totalorder %s5484_s9, %s7779_s1 }
  0x11   : > { %p5733_p11 = pnand %p5339_p9, %p7784_p1 }
  0x13   : > { %p5486_p13 = pneg %p5733_p11 }
  0x15   : > { %p5487_p0 = pnand %p5486_p13, %p5485_p12 }
  0x17   : > { %p5488_p3 = pneg %p5487_p0 }
  0x19   : > { %p5493_p7 = pnand %p5491_p5, %p5488_p3 }
  0x1b   : > { %5496 = shalt.err (!%p5493_p7)
}
  0x1c   : > { %s5497_s14 = scalar_lea.vmem %s5726_s28, 18432  ;;  %p5505_p2 = scmp.lt.s32.totalorder %s5726_s28, %s5726_s28 }
  0x1d   : > { %p5498_p9 = scmp.ne.s32.totalorder %s5726_s28, %s5497_s14  ;;  %p5506_p12 = scmp.lt.s32.totalorder %s5497_s14, %s5497_s14 }
  0x1f   : > { %p5500_p10 = pnand %p5498_p9, %p5486_p13  ;;  %p5507_p0 = por %p5506_p12, %p5505_p2 }
  0x21   : > { %p5501_p1 = pneg %p5500_p10 }
  0x23   : > { %p5508_p6 = pnand %p5507_p0, %p5501_p1 }
  0x25   : > { %5511 = shalt.err (!%p5508_p6)
}
  0x26   : > { %s5644_s15 = smov 128   ;;  %s5645_s16 = smov 8  }
  0x27   : > { %5342 = dma.hbm_to_vmem [thread:$0]  (!%p5733_p11), %s7779_s1, 18432, %s5726_s28, [#allocation7], %s5644_s15, %s5644_s15, %s5645_s16  }
  0x28   : > { %s5512_s7 = scalar_lea.hbm %s7781_s3, 18432 }
  0x29   : > { %p5513_p1 = scmp.ne.s32.totalorder %s7781_s3, %s5512_s7  ;;  %p5519_p10 = scmp.lt.u32.totalorder %s5512_s7, %s7781_s3 }
  0x2b   : > { %p5515_p2 = pnand %p5513_p1, %p5486_p13 }
  0x2d   : > { %p5516_p6 = pneg %p5515_p2 }
  0x2f   : > { %p5521_p3 = pnand %p5519_p10, %p5516_p6 }
  0x31   : > { %5524 = shalt.err (!%p5521_p3)
}
  0x32   : > { %s5525_s28 = scalar_lea.vmem %s5737_s6, 18432  ;;  %p5533_p12 = scmp.lt.s32.totalorder %s5737_s6, %s5737_s6 }
  0x33   : > { %p5526_p5 = scmp.ne.s32.totalorder %s5737_s6, %s5525_s28  ;;  %p5534_p0 = scmp.lt.s32.totalorder %s5525_s28, %s5525_s28 }
  0x35   : > { %p5528_p7 = pnand %p5526_p5, %p5486_p13  ;;  %p5535_p1 = por %p5534_p0, %p5533_p12 }
  0x37   : > { %p5529_p9 = pneg %p5528_p7 }
  0x39   : > { %p5536_p2 = pnand %p5535_p1, %p5529_p9 }
  0x3b   : > { %5539 = shalt.err (!%p5536_p2)
}
  0x3c   : > { %5345 = dma.hbm_to_vmem [thread:$0]  (!%p5733_p11), %s7781_s3, 18432, %s5737_s6, [#allocation7], %s5644_s15, %s5644_s15, %s5645_s16  }
  0x3d   : > { %s5798_s29 = sadd.s32 1, %s5640_s21   ;;  %s29_s14 = sadd.s32 1, %s5636_s20 }
  0x3e   : > { %s26_s17 = ssub.s32 %s5640_s21, %s5798_s29  ;;  %p36_p13 = scmp.ne.s32.totalorder %s5636_s20, %s5632_s19 }
  0x3f   : > { %p27_p6 = scmp.eq.s32.totalorder %s26_s17, 0  ;;  %p37_p10 = scmp.eq.s32.totalorder %s5640_s21, 0 }
  0x40   : > { %p7886_p3 = scmp.eq.s32.totalorder %s5703_s22, 1  ;;  %p5356_p7 = scmp.lt.s32.totalorder %s5640_s21, 2 }
  0x41   : > { %s5814_s27 = scalar_select %p27_p6, %s5636_s20, %s29_s14  }
  0x42   : > { %p5808_p5 = por %p7886_p3, %p36_p13  ;;  %p38_p9 = por %p37_p10, %p36_p13 }
  0x43   : > { %s208_s30 = sand.u32 1, %s5636_s20   ;;  %s4077_s6 = sshll.u32 %s5640_s21, 12 }
  0x44   : > { %s7887_s23 = scalar_select %p5808_p5, 1, 0 }
  0x45   : > { %s4062_s7 = sshll.u32 %s208_s30, 8  ;;  %s5821_s10 = scalar_lea.hbm %s7778_s0, %s4077_s6 }
  0x46   : > { %s212_s11 = scalar_lea.vmem [#allocation3], %s4062_s7  ;;  %p5825_p11 = pnand %p5356_p7, %p38_p9 }
  0x47   : > { %s219_s28 = sshll.u32 %s212_s11, 4  ;;  %s5829_s13 = scalar_lea.sflag [#allocation4], %s208_s30  ;;  %s5823_s28 = int_to_ptr.vmem [resolvable:$true] %s219_s28 }
  0x48   : > { %s5540_s14 = scalar_lea.hbm %s5821_s10, 4096  ;;  %p5542_p0 = pneg %p5825_p11 }
  0x49   : > { %p5541_p12 = scmp.ne.s32.totalorder %s5821_s10, %s5540_s14  ;;  %s5545_s6 = scalar_lea.hbm %s7778_s0, 8192 }
  0x4a   : > { %p5546_p13 = scmp.lt.u32.totalorder %s5821_s10, %s7778_s0  ;;  %p5547_p6 = scmp.lt.u32.totalorder %s5545_s6, %s5540_s14 }
  0x4b   : > { %p5543_p1 = pnand %p5542_p0, %p5541_p12  ;;  %p5549_p3 = scmp.lt.u32.totalorder %s5540_s14, %s5821_s10 }
  0x4c   : > { %p5548_p10 = por %p5547_p6, %p5546_p13 }
  0x4d   : > { %p5544_p2 = pneg %p5543_p1 }
  0x4e   : > { %p5550_p7 = por %p5549_p3, %p5548_p10 }
  0x50   : > { %p5551_p9 = pnand %p5550_p7, %p5544_p2 }
  0x52   : > { %5554 = shalt.err (!%p5551_p9)
}
  0x53   : > { %s5555_s30 = scalar_lea.vmem %s5823_s28, 4096  ;;  %s5646_s11 = smov [#allocation3]  }
  0x54   : > { %p5556_p12 = scmp.ne.s32.totalorder %s5823_s28, %s5555_s30  ;;  %s5560_s17 = sshll.u32 %s5646_s11, 4  ;;  %s5561_s17 = int_to_ptr.vmem [resolvable:$false] %s5560_s17 }
  0x55   : > { %s5562_s7 = scalar_lea.vmem %s5561_s17, 8192  ;;  %p5563_p4 = scmp.lt.s32.totalorder %s5823_s28, %s5561_s17 }
  0x56   : > { %p5558_p1 = pnand %p5556_p12, %p5542_p0  ;;  %p5564_p13 = scmp.lt.s32.totalorder %s5562_s7, %s5555_s30 }
  0x58   : > { %p5559_p5 = pneg %p5558_p1  ;;  %p5565_p6 = por %p5564_p13, %p5563_p4 }
  0x5a   : > { %p5566_p10 = pnand %p5565_p6, %p5559_p5 }
  0x5c   : > { %5569 = shalt.err (!%p5566_p10)
}
  0x5d   : > { %5349 = dma.hbm_to_vmem [thread:$0]  (!%p5825_p11), %s5821_s10, 4096, %s5823_s28, %s5829_s13, %s5644_s15, %s5644_s15, %s5645_s16  }
  0x5e   : > { %231 = sbr.rel (%p5722_p8) target bundleno = 1149 (0x47d), region = 40 }
  0x65   : > { %s5863_s14 = sand.u32 1, %s5632_s19   ;;  %p7889_p4 = scmp.ne.s32.totalorder %s7882_s24, 0 }
  0x66   : > { %s4066_s6 = sshll.u32 %s5863_s14, 8  ;;  %s234_s8 = scalar_lea.sflag [#allocation4], %s5863_s14 }
  0x67   : > { %s5869_s12 = scalar_lea.vmem [#allocation3], %s4066_s6 }
  0x68   : > { %5615 = dma.done.wait (%p7889_p4), %s234_s8, 4096  }
  0x69   : > { %5617 = vsyncadd (%p7889_p4), %s234_s8, 4294963200  ;;  %p7890_p5 = scmp.eq.s32.totalorder %s5703_s22, 0 }
  0x6b   : > { %5619 = dma.done.wait (%p7890_p5), [#allocation7], 36864   ;;  %p7891_p8 = pmov %p7890_p5 }
  0x6c   : > { %v7789_v0 = vmov 0.0|0.0   ;;  %v7787_v1 = vmov 0.0   ;;  %v566_v2 = vld [vmem:[#allocation6 + $0x180] sm:$0xff]  ;;  %v567_v3 = vld [vmem:[#allocation6 + $0x188] sm:$0xff]  ;;  %v568_v7 = vld [vmem:[#allocation6 + $0x190] sm:$0xff]  ;;  %s7600_s10 = scalar_lea.vmem [#allocation9], %s4066_s6 }
  0x6d   : > { %5621 = vsyncadd (%p7891_p8), [#allocation7], 4294930432  ;;  %4847 = vmatprep.subr.bf16.mxu0 %v7789_v0  ;;  %272 = vst [vmem:[#allocation2] sm:$0xff] %v7787_v1  ;;  %v598_v4 = vld [vmem:[#allocation6 + $0x280] sm:$0xff]  ;;  %v4848_v5 = vpack.c.bf16 %v567_v3, %v566_v2  ;;  %v599_v6 = vld [vmem:[#allocation6 + $0x288] sm:$0xff]  ;;  %s4078_s28 = sshll.u32 %s5703_s22, 12 }
  0x6e   : > { %273 = vst [vmem:[#allocation2 + $0x8] sm:$0xff] %v7787_v1  ;;  %274 = vst [vmem:[#allocation2 + $0x10] sm:$0xff] %v7787_v1  ;;  %v569_v8 = vld [vmem:[#allocation6 + $0x198] sm:$0xff]  ;;  %v4895_v9 = vpack.c.bf16 %v599_v6, %v598_v4  ;;  %v600_v10 = vld [vmem:[#allocation6 + $0x290] sm:$0xff]  ;;  %s3965_s13 = sshll.u32 %s7600_s10, 4  ;;  %s7731_s11 = scalar_lea.hbm %s7783_s5, %s4078_s28  ;;  %s7733_s13 = int_to_ptr.vmem [resolvable:$true] %s3965_s13 }
  0x6f   : > { %275 = vst [vmem:[#allocation2 + $0x18] sm:$0xff] %v7787_v1  ;;  %276 = vst [vmem:[#allocation2 + $0x20] sm:$0xff] %v7787_v1  ;;  %v601_v11 = vld [vmem:[#allocation6 + $0x298] sm:$0xff]  ;;  %4849 = vmatpush1.bf16.msra.mxu0 %v4848_v5  ;;  %v4851_v12 = vpack.c.bf16 %v569_v8, %v568_v7  ;;  %v602_v14 = vld [vmem:[#allocation6 + $0x2a0] sm:$0xff]  ;;  %s3952_s17 = scalar_lea.sflag [#allocation5], %s5863_s14  ;;  %s5570_s7 = scalar_lea.vmem %s7733_s13, 4096 }
  0x70   : > { %279 = vst [vmem:[#allocation2 + $0x38] sm:$0xff] %v7787_v1  ;;  %280 = vst [vmem:[#allocation2 + $0x40] sm:$0xff] %v7787_v1  ;;  %v4899_v13 = vpack.c.bf16 %v601_v11, %v600_v10  ;;  %v603_v15 = vld [vmem:[#allocation6 + $0x2a8] sm:$0xff]  ;;  %4896 = vmatprep.subr.bf16.mxu1 %v4895_v9  ;;  %4850 = vmatprep.subr.bf16.mxu0 %v7789_v0  ;;  %v570_v16 = vld [vmem:[#allocation6 + $0x1a0] sm:$0xff]  ;;  %p5571_p11 = scmp.ne.s32.totalorder %s7733_s13, %s5570_s7  ;;  %p8010_p0 = scmp.ne.s32.totalorder %s7887_s23, 0 }
  0x71   : > { %283 = vst [vmem:[#allocation2 + $0x58] sm:$0xff] %v7787_v1  ;;  %284 = vst [vmem:[#allocation2 + $0x60] sm:$0xff] %v7787_v1  ;;  %v571_v17 = vld [vmem:[#allocation6 + $0x1a8] sm:$0xff]  ;;  %4898 = vmatpush3.bf16.msra.mxu1 %v4895_v9  ;;  %v4903_v18 = vpack.c.bf16 %v603_v15, %v602_v14  ;;  %v604_v20 = vld [vmem:[#allocation6 + $0x2b0] sm:$0xff]  ;;  %s5649_s22 = smov [#allocation9]  }
  0x72   : > { %287 = vst [vmem:[#allocation2 + $0x78] sm:$0xff] %v7787_v1  ;;  %288 = vst [vmem:[#allocation2 + $0x80] sm:$0xff] %v7787_v1  ;;  %4900 = vmatprep.subr.bf16.mxu1 %v4899_v13  ;;  %v4854_v19 = vpack.c.bf16 %v571_v17, %v570_v16  ;;  %v605_v21 = vld [vmem:[#allocation6 + $0x2b8] sm:$0xff]  ;;  %v572_v22 = vld [vmem:[#allocation6 + $0x1b0] sm:$0xff]  ;;  %p5572_p2 = pnand %p5571_p11, %p8010_p0  ;;  %s5574_s6 = sshll.u32 %s5649_s22, 4  ;;  %s5575_s6 = int_to_ptr.vmem [resolvable:$false] %s5574_s6 }
  0x73   : > { %291 = vst [vmem:[#allocation2 + $0x98] sm:$0xff] %v7787_v1  ;;  %292 = vst [vmem:[#allocation2 + $0xa0] sm:$0xff] %v7787_v1  ;;  %4852 = vmatpush1.bf16.msra.mxu0 %v4851_v12  ;;  %v573_v23 = vld [vmem:[#allocation6 + $0x1b8] sm:$0xff]  ;;  %v4907_v24 = vpack.c.bf16 %v605_v21, %v604_v20  ;;  %v5923_v25 = vld [vmem:[%s5869_s12] sm:$0xff]  ;;  %s5576_s8 = scalar_lea.vmem %s5575_s6, 8192  ;;  %p5577_p7 = scmp.lt.s32.totalorder %s7733_s13, %s5575_s6 }
  0x74   : > { %295 = vst [vmem:[#allocation2 + $0xb8] sm:$0xff] %v7787_v1  ;;  %296 = vst [vmem:[#allocation2 + $0xc0] sm:$0xff] %v7787_v1  ;;  %4853 = vmatprep.subr.bf16.mxu0 %v7789_v0  ;;  %v4857_v26 = vpack.c.bf16 %v573_v23, %v572_v22  ;;  %v606_v27 = vld [vmem:[#allocation6 + $0x2c0] sm:$0xff]  ;;  %v607_v28 = vld [vmem:[#allocation6 + $0x2c8] sm:$0xff]  ;;  %678 = vmatprep.mubr.f32.mxu0 %v5923_v25  ;;  %p5573_p3 = pneg %p5572_p2  ;;  %p5578_p9 = scmp.lt.s32.totalorder %s5576_s8, %s5570_s7 }
  0x75   : > { %299 = vst [vmem:[#allocation2 + $0xd8] sm:$0xff] %v7787_v1  ;;  %300 = vst [vmem:[#allocation2 + $0xe0] sm:$0xff] %v7787_v1  ;;  %4902 = vmatpush3.bf16.msra.mxu1 %v4899_v13  ;;  %v5926_v29 = vld [vmem:[%s5869_s12 + $0x8] sm:$0xff]  ;;  %v574_v30 = vld [vmem:[#allocation6 + $0x1c0] sm:$0xff]  ;;  %v4911_v34 = vpack.c.bf16 %v607_v28, %v606_v27 }
  0x76   : > { %303 = vst [vmem:[#allocation2 + $0xf8] sm:$0xff] %v7787_v1  ;;  %304 = vst [vmem:[#allocation2 + $0x100] sm:$0xff] %v7787_v1  ;;  %4904 = vmatprep.subr.bf16.mxu1 %v4903_v18  ;;  %v575_v31 = vld [vmem:[#allocation6 + $0x1c8] sm:$0xff]  ;;  %v5933_v32 = vld [vmem:[%s5869_s12 + $0x10] sm:$0xff]  ;;  %p5579_p12 = por %p5578_p9, %p5577_p7 }
  0x77   : > { %307 = vst [vmem:[#allocation2 + $0x118] sm:$0xff] %v7787_v1  ;;  %308 = vst [vmem:[#allocation2 + $0x120] sm:$0xff] %v7787_v1  ;;  %4855 = vmatpush1.bf16.msra.mxu0 %v4854_v19  ;;  %v5936_v33 = vld [vmem:[%s5869_s12 + $0x18] sm:$0xff]  ;;  %v5941_v35 = vld [vmem:[%s5869_s12 + $0x20] sm:$0xff]  ;;  %v4860_v36 = vpack.c.bf16 %v575_v31, %v574_v30 }
  0x78   : > { %311 = vst [vmem:[#allocation2 + $0x138] sm:$0xff] %v7787_v1  ;;  %312 = vst [vmem:[#allocation2 + $0x140] sm:$0xff] %v7787_v1  ;;  %4856 = vmatprep.subr.bf16.mxu0 %v7789_v0  ;;  %v608_v37 = vld [vmem:[#allocation6 + $0x2d0] sm:$0xff]  ;;  %v609_v38 = vld [vmem:[#allocation6 + $0x2d8] sm:$0xff]  ;;  %p5580_p1 = pnand %p5579_p12, %p5573_p3 }
  0x79   : > { %315 = vst [vmem:[#allocation2 + $0x158] sm:$0xff] %v7787_v1  ;;  %316 = vst [vmem:[#allocation2 + $0x160] sm:$0xff] %v7787_v1  ;;  %4906 = vmatpush3.bf16.msra.mxu1 %v4903_v18  ;;  %v5944_v39 = vld [vmem:[%s5869_s12 + $0x28] sm:$0xff]  ;;  %v576_v40 = vld [vmem:[#allocation6 + $0x1d0] sm:$0xff]  ;;  %v4915_v44 = vpack.c.bf16 %v609_v38, %v608_v37 }
  0x7a   : > { %319 = vst [vmem:[#allocation2 + $0x178] sm:$0xff] %v7787_v1  ;;  %320 = vst [vmem:[#allocation2 + $0x180] sm:$0xff] %v7787_v1  ;;  %4908 = vmatprep.subr.bf16.mxu1 %v4907_v24  ;;  %v577_v41 = vld [vmem:[#allocation6 + $0x1d8] sm:$0xff]  ;;  %v5950_v42 = vld [vmem:[%s5869_s12 + $0x30] sm:$0xff] }
  0x7b   : > { %323 = vst [vmem:[#allocation2 + $0x198] sm:$0xff] %v7787_v1  ;;  %324 = vst [vmem:[#allocation2 + $0x1a0] sm:$0xff] %v7787_v1  ;;  %4858 = vmatpush1.bf16.msra.mxu0 %v4857_v26  ;;  %v5953_v43 = vld [vmem:[%s5869_s12 + $0x38] sm:$0xff]  ;;  %v610_v45 = vld [vmem:[#allocation6 + $0x2e0] sm:$0xff]  ;;  %v4863_v47 = vpack.c.bf16 %v577_v41, %v576_v40 }
  0x7c   : > { %327 = vst [vmem:[#allocation2 + $0x1b8] sm:$0xff] %v7787_v1  ;;  %328 = vst [vmem:[#allocation2 + $0x1c0] sm:$0xff] %v7787_v1  ;;  %4859 = vmatprep.subr.bf16.mxu0 %v7789_v0  ;;  %v5958_v46 = vld [vmem:[%s5869_s12 + $0x40] sm:$0xff]  ;;  %v611_v48 = vld [vmem:[#allocation6 + $0x2e8] sm:$0xff] }
  0x7d   : > { %331 = vst [vmem:[#allocation2 + $0x1d8] sm:$0xff] %v7787_v1  ;;  %332 = vst [vmem:[#allocation2 + $0x1e0] sm:$0xff] %v7787_v1  ;;  %4910 = vmatpush3.bf16.msra.mxu1 %v4907_v24  ;;  %v5961_v50 = vld [vmem:[%s5869_s12 + $0x48] sm:$0xff]  ;;  %v578_v51 = vld [vmem:[#allocation6 + $0x1e0] sm:$0xff]  ;;  %v4919_v53 = vpack.c.bf16 %v611_v48, %v610_v45 }
  0x7e   : > { %335 = vst [vmem:[#allocation2 + $0x1f8] sm:$0xff] %v7787_v1  ;;  %336 = vst [vmem:[#allocation2 + $0x200] sm:$0xff] %v7787_v1  ;;  %4912 = vmatprep.subr.bf16.mxu1 %v4911_v34  ;;  %v579_v52 = vld [vmem:[#allocation6 + $0x1e8] sm:$0xff]  ;;  %v5967_v54 = vld [vmem:[%s5869_s12 + $0x50] sm:$0xff] }
  0x7f   : > { %339 = vst [vmem:[#allocation2 + $0x218] sm:$0xff] %v7787_v1  ;;  %340 = vst [vmem:[#allocation2 + $0x220] sm:$0xff] %v7787_v1  ;;  %4861 = vmatpush1.bf16.msra.mxu0 %v4860_v36  ;;  %v5970_v55 = vld [vmem:[%s5869_s12 + $0x58] sm:$0xff]  ;;  %v4866_v56 = vpack.c.bf16 %v579_v52, %v578_v51  ;;  %v612_v57 = vld [vmem:[#allocation6 + $0x2f0] sm:$0xff] }
  0x80   : > { %341 = vst [vmem:[#allocation2 + $0x228] sm:$0xff] %v7787_v1  ;;  %342 = vst [vmem:[#allocation2 + $0x230] sm:$0xff] %v7787_v1  ;;  %4862 = vmatprep.subr.bf16.mxu0 %v7789_v0  ;;  %v613_v58 = vld [vmem:[#allocation6 + $0x2f8] sm:$0xff]  ;;  %v580_v59 = vld [vmem:[#allocation6 + $0x1f0] sm:$0xff] }
  0x81   : > { %343 = vst [vmem:[#allocation2 + $0x238] sm:$0xff] %v7787_v1  ;;  %377 = vst [vmem:[#allocation2 + $0x28] sm:$0xff] %v5923_v25  ;;  %4914 = vmatpush3.bf16.msra.mxu1 %v4911_v34  ;;  %v581_v60 = vld [vmem:[#allocation6 + $0x1f8] sm:$0xff]  ;;  %v5976_v61 = vld [vmem:[%s5869_s12 + $0x60] sm:$0xff]  ;;  %v4923_v63 = vpack.c.bf16 %v613_v58, %v612_v57 }
  0x82   : > { %378 = vst [vmem:[#allocation2 + $0x30] sm:$0xff] %v5926_v29  ;;  %379 = vst [vmem:[#allocation2 + $0x48] sm:$0xff] %v5933_v32  ;;  %4916 = vmatprep.subr.bf16.mxu1 %v4915_v44  ;;  %v5979_v62 = vld [vmem:[%s5869_s12 + $0x68] sm:$0xff]  ;;  %v4869_v2 = vpack.c.bf16 %v581_v60, %v580_v59  ;;  %v582_v3 = vld [vmem:[#allocation6 + $0x200] sm:$0xff] }
  0x83   : > { %380 = vst [vmem:[#allocation2 + $0x50] sm:$0xff] %v5936_v33  ;;  %381 = vst [vmem:[#allocation2 + $0x68] sm:$0xff] %v5941_v35  ;;  %4864 = vmatpush1.bf16.msra.mxu0 %v4863_v47  ;;  %v583_v4 = vld [vmem:[#allocation6 + $0x208] sm:$0xff]  ;;  %v5985_v5 = vld [vmem:[%s5869_s12 + $0x70] sm:$0xff] }
  0x84   : > { %382 = vst [vmem:[#allocation2 + $0x70] sm:$0xff] %v5944_v39  ;;  %383 = vst [vmem:[#allocation2 + $0x88] sm:$0xff] %v5950_v42  ;;  %4865 = vmatprep.subr.bf16.mxu0 %v7789_v0  ;;  %v5988_v6 = vld [vmem:[%s5869_s12 + $0x78] sm:$0xff]  ;;  %v517_v7 = vld [vmem:[#allocation6] sm:$0xff]  ;;  %v4872_v9 = vpack.c.bf16 %v583_v4, %v582_v3 }
  0x85   : > { %384 = vst [vmem:[#allocation2 + $0x90] sm:$0xff] %v5953_v43  ;;  %385 = vst [vmem:[#allocation2 + $0xa8] sm:$0xff] %v5958_v46  ;;  %4918 = vmatpush3.bf16.msra.mxu1 %v4915_v44  ;;  %v518_v8 = vld [vmem:[#allocation6 + $0x8] sm:$0xff]  ;;  %v5993_v10 = vld [vmem:[%s5869_s12 + $0x80] sm:$0xff] }
  0x86   : > { %386 = vst [vmem:[#allocation2 + $0xb0] sm:$0xff] %v5961_v50  ;;  %387 = vst [vmem:[#allocation2 + $0xc8] sm:$0xff] %v5967_v54  ;;  %4920 = vmatprep.subr.bf16.mxu1 %v4919_v53  ;;  %v5996_v11 = vld [vmem:[%s5869_s12 + $0x88] sm:$0xff]  ;;  %v584_v12 = vld [vmem:[#allocation6 + $0x210] sm:$0xff]  ;;  %v4928_v15 = vpack.c.bf16 %v518_v8, %v517_v7 }
  0x87   : > { %388 = vst [vmem:[#allocation2 + $0xd0] sm:$0xff] %v5970_v55  ;;  %389 = vst [vmem:[#allocation2 + $0xe8] sm:$0xff] %v5976_v61  ;;  %4867 = vmatpush1.bf16.msra.mxu0 %v4866_v56  ;;  %v585_v13 = vld [vmem:[#allocation6 + $0x218] sm:$0xff]  ;;  %v519_v16 = vld [vmem:[#allocation6 + $0x10] sm:$0xff] }
  0x88   : > { %390 = vst [vmem:[#allocation2 + $0xf0] sm:$0xff] %v5979_v62  ;;  %4868 = vmatprep.subr.bf16.mxu0 %v7789_v0  ;;  %391 = vst [vmem:[#allocation2 + $0x108] sm:$0xff] %v5985_v5  ;;  %v520_v17 = vld [vmem:[#allocation6 + $0x18] sm:$0xff]  ;;  %v6007_v19 = vld [vmem:[%s5869_s12 + $0x90] sm:$0xff]  ;;  %v4875_v21 = vpack.c.bf16 %v585_v13, %v584_v12 }
  0x89   : > { %v483_v49 = vld [vmem:[#allocation2 + $0x29] sm:$0xff]  ;;  %4922 = vmatpush3.bf16.msra.mxu1 %v4919_v53  ;;  %392 = vst [vmem:[#allocation2 + $0x110] sm:$0xff] %v5988_v6  ;;  %393 = vst [vmem:[#allocation2 + $0x128] sm:$0xff] %v5993_v10  ;;  %v6001_v14 = vld [vmem:[#allocation2 + $0x31] sm:$0xff]  ;;  %v4931_v28 = vpack.c.bf16 %v520_v17, %v519_v16 }
  0x8a   : > { %4399 = vmatprep.mubr.f32.mxu1 %v483_v49  ;;  %4924 = vmatprep.subr.bf16.mxu1 %v4923_v63  ;;  %394 = vst [vmem:[#allocation2 + $0x130] sm:$0xff] %v5996_v11  ;;  %v6004_v18 = vld [vmem:[#allocation2 + $0x49] sm:$0xff]  ;;  %v6010_v20 = vld [vmem:[%s5869_s12 + $0x98] sm:$0xff]  ;;  %395 = vst [vmem:[#allocation2 + $0x148] sm:$0xff] %v6007_v19 }
  0x8b   : > { %4870 = vmatpush1.bf16.msra.mxu0 %v4869_v2  ;;  %396 = vst [vmem:[#allocation2 + $0x150] sm:$0xff] %v6010_v20  ;;  %v6015_v22 = vld [vmem:[%s5869_s12 + $0xa0] sm:$0xff]  ;;  %v587_v24 = vld [vmem:[#allocation6 + $0x228] sm:$0xff]  ;;  %v6024_v27 = vld [vmem:[#allocation2 + $0x51] sm:$0xff] }
  0x8c   : > { %4871 = vmatprep.subr.bf16.mxu0 %v7789_v0  ;;  %v586_v23 = vld [vmem:[#allocation6 + $0x220] sm:$0xff]  ;;  %v6020_v26 = vld [vmem:[%s5869_s12 + $0xa8] sm:$0xff]  ;;  %397 = vst [vmem:[#allocation2 + $0x168] sm:$0xff] %v6015_v22  ;;  %v6031_v36 = vld [vmem:[%s5869_s12 + $0xb0] sm:$0xff] }
  0x8d   : > { %4926 = vmatpush3.bf16.msra.mxu1 %v4923_v63  ;;  %v521_v30 = vld [vmem:[#allocation6 + $0x20] sm:$0xff]  ;;  %v522_v31 = vld [vmem:[#allocation6 + $0x28] sm:$0xff]  ;;  %398 = vst [vmem:[#allocation2 + $0x170] sm:$0xff] %v6020_v26  ;;  %v6034_v37 = vld [vmem:[%s5869_s12 + $0xb8] sm:$0xff]  ;;  %v4878_v38 = vpack.c.bf16 %v587_v24, %v586_v23 }
  0x8e   : > { %4927 = vmatprep.subr.bf16.mxu1 %v7789_v0  ;;  %v6028_v34 = vld [vmem:[#allocation2 + $0x69] sm:$0xff]  ;;  %399 = vst [vmem:[#allocation2 + $0x188] sm:$0xff] %v6031_v36  ;;  %400 = vst [vmem:[#allocation2 + $0x190] sm:$0xff] %v6034_v37  ;;  %v589_v41 = vld [vmem:[#allocation6 + $0x238] sm:$0xff]  ;;  %v4934_v48 = vpack.c.bf16 %v522_v31, %v521_v30 }
  0x8f   : > { %4873 = vmatpush1.bf16.msra.mxu0 %v4872_v9  ;;  %v588_v40 = vld [vmem:[#allocation6 + $0x230] sm:$0xff]  ;;  %v6041_v44 = vld [vmem:[%s5869_s12 + $0xc0] sm:$0xff]  ;;  %v6044_v45 = vld [vmem:[%s5869_s12 + $0xc8] sm:$0xff] }
  0x90   : > { %4400 = vmatmul.mubr.f32.vlgmr.msra.gmra.mrb[0].mxu1 %v6001_v14  ;;  %4874 = vmatprep.subr.bf16.mxu0 %v7789_v0  ;;  %v6047_v47 = vld [vmem:[#allocation2 + $0x71] sm:$0xff]  ;;  %401 = vst [vmem:[#allocation2 + $0x1a8] sm:$0xff] %v6041_v44  ;;  %402 = vst [vmem:[#allocation2 + $0x1b0] sm:$0xff] %v6044_v45  ;;  %v6052_v49 = vld [vmem:[#allocation2 + $0x89] sm:$0xff]  ;;  %v4881_v53 = vpack.c.bf16 %v589_v41, %v588_v40 }
  0x91   : > { %4929 = vmatpush1.bf16.msra.mxu1 %v4928_v15  ;;  %4402 = vmatprep.mubr.f32.mxu1 %v6004_v18  ;;  %v523_v51 = vld [vmem:[#allocation6 + $0x30] sm:$0xff]  ;;  %v524_v52 = vld [vmem:[#allocation6 + $0x38] sm:$0xff]  ;;  %v590_v58 = vld [vmem:[#allocation6 + $0x240] sm:$0xff] }
  0x92   : > { %4930 = vmatprep.subr.bf16.mxu1 %v7789_v0  ;;  %v6055_v56 = vld [vmem:[%s5869_s12 + $0xd0] sm:$0xff]  ;;  %v6058_v57 = vld [vmem:[%s5869_s12 + $0xd8] sm:$0xff]  ;;  %v591_v59 = vld [vmem:[#allocation6 + $0x248] sm:$0xff]  ;;  %v4937_v63 = vpack.c.bf16 %v524_v52, %v523_v51 }
  0x93   : > { %4876 = vmatpush1.bf16.msra.mxu0 %v4875_v21  ;;  %403 = vst [vmem:[#allocation2 + $0x1c8] sm:$0xff] %v6055_v56  ;;  %404 = vst [vmem:[#allocation2 + $0x1d0] sm:$0xff] %v6058_v57  ;;  %v6065_v60 = vld [vmem:[#allocation2 + $0x91] sm:$0xff]  ;;  %v525_v2 = vld [vmem:[#allocation6 + $0x40] sm:$0xff]  ;;  %v4884_v9 = vpack.c.bf16 %v591_v59, %v590_v58 }
  0x94   : > { %4403 = vmatmul.mubr.f32.gmra.mrb[2].mxu1 %v6024_v27  ;;  %4877 = vmatprep.subr.bf16.mxu0 %v7789_v0  ;;  %v6068_v3 = vld [vmem:[%s5869_s12 + $0xe0] sm:$0xff]  ;;  %v6071_v4 = vld [vmem:[#allocation2 + $0xa9] sm:$0xff]  ;;  %v593_v13 = vld [vmem:[#allocation6 + $0x258] sm:$0xff] }
  0x95   : > { %4932 = vmatpush1.bf16.msra.mxu1 %v4931_v28  ;;  %4405 = vmatprep.mubr.f32.mxu1 %v6028_v34  ;;  %v526_v7 = vld [vmem:[#allocation6 + $0x48] sm:$0xff]  ;;  %405 = vst [vmem:[#allocation2 + $0x1e8] sm:$0xff] %v6068_v3  ;;  %v592_v12 = vld [vmem:[#allocation6 + $0x250] sm:$0xff]  ;;  %v6087_v21 = vld [vmem:[%s5869_s12 + $0xf8] sm:$0xff] }
  0x96   : > { %4933 = vmatprep.subr.bf16.mxu1 %v7789_v0  ;;  %v6074_v8 = vld [vmem:[%s5869_s12 + $0xe8] sm:$0xff]  ;;  %v6081_v15 = vld [vmem:[%s5869_s12 + $0xf0] sm:$0xff]  ;;  %v4940_v17 = vpack.c.bf16 %v526_v7, %v525_v2  ;;  %v528_v28 = vld [vmem:[#allocation6 + $0x58] sm:$0xff]  ;;  %408 = vst [vmem:[#allocation2 + $0x210] sm:$0xff] %v6087_v21  ;;  %v4887_v30 = vpack.c.bf16 %v593_v13, %v592_v12 }
  0x97   : > { %4879 = vmatpush1.bf16.msra.mxu0 %v4878_v38  ;;  %406 = vst [vmem:[#allocation2 + $0x1f0] sm:$0xff] %v6074_v8  ;;  %v6084_v16 = vld [vmem:[#allocation2 + $0xb1] sm:$0xff]  ;;  %407 = vst [vmem:[#allocation2 + $0x208] sm:$0xff] %v6081_v15  ;;  %v6091_v23 = vld [vmem:[#allocation2 + $0xc9] sm:$0xff] }
  0x98   : > { %4406 = vmatmul.mubr.f32.gmra.mrb[4].mxu1 %v6047_v47  ;;  %4880 = vmatprep.subr.bf16.mxu0 %v7789_v0  ;;  %7892 = vst [vmem:[#allocation13_spill] sm:$0xff] %v6084_v16  ;;  %7893 = vst [vmem:[#allocation14_spill] sm:$0xff] %v6091_v23  ;;  %v527_v24 = vld [vmem:[#allocation6 + $0x50] sm:$0xff]  ;;  %v594_v31 = vld [vmem:[#allocation6 + $0x260] sm:$0xff] }
  0x99   : > { %4935 = vmatpush1.bf16.msra.mxu1 %v4934_v48  ;;  %4408 = vmatprep.mubr.f32.mxu1 %v6052_v49  ;;  %v595_v38 = vld [vmem:[#allocation6 + $0x268] sm:$0xff]  ;;  %v6097_v40 = vld [vmem:[#allocation2 + $0xd1] sm:$0xff]  ;;  %v4943_v41 = vpack.c.bf16 %v528_v28, %v527_v24  ;;  %v529_v51 = vld [vmem:[#allocation6 + $0x60] sm:$0xff] }
  0x9a   : > { %4936 = vmatprep.subr.bf16.mxu1 %v7789_v0  ;;  %7894 = vst [vmem:[#allocation15_spill] sm:$0xff] %v6097_v40  ;;  %v6100_v48 = vld [vmem:[#allocation2 + $0xe9] sm:$0xff]  ;;  %v597_v59 = vld [vmem:[#allocation6 + $0x278] sm:$0xff]  ;;  %v549_v7 = vld [vmem:[#allocation6 + $0x100] sm:$0xff] }
  0x9b   : > { %4882 = vmatpush1.bf16.msra.mxu0 %v4881_v53  ;;  %7895 = vst [vmem:[#allocation16_spill] sm:$0xff] %v6100_v48  ;;  %v530_v52 = vld [vmem:[#allocation6 + $0x68] sm:$0xff]  ;;  %v4890_v53 = vpack.c.bf16 %v595_v38, %v594_v31  ;;  %v596_v58 = vld [vmem:[#allocation6 + $0x270] sm:$0xff]  ;;  %v536_v1 = vld [vmem:[#allocation6 + $0x98] sm:$0xff] }
  0x9c   : > { %4409 = vmatmul.mubr.f32.gmra.mrb[6].mxu1 %v6065_v60  ;;  %4883 = vmatprep.subr.bf16.mxu0 %v7789_v0  ;;  %v4946_v2 = vpack.c.bf16 %v530_v52, %v529_v51  ;;  %v6108_v12 = vld [vmem:[#allocation2 + $0x109] sm:$0xff]  ;;  %v4893_v24 = vpack.c.bf16 %v597_v59, %v596_v58  ;;  %v533_v52 = vld [vmem:[#allocation6 + $0x80] sm:$0xff] }
  0x9d   : > { %4938 = vmatpush1.bf16.msra.mxu1 %v4937_v63  ;;  %4411 = vmatprep.mubr.f32.mxu1 %v6071_v4  ;;  %v6105_v63 = vld [vmem:[#allocation2 + $0xf1] sm:$0xff]  ;;  %7897 = vst [vmem:[#allocation18_spill] sm:$0xff] %v6108_v12  ;;  %v6116_v51 = vld [vmem:[#allocation2 + $0x129] sm:$0xff] }
  0x9e   : > { %4939 = vmatprep.subr.bf16.mxu1 %v7789_v0  ;;  %7896 = vst [vmem:[#allocation17_spill] sm:$0xff] %v6105_v63  ;;  %v531_v13 = vld [vmem:[#allocation6 + $0x70] sm:$0xff]  ;;  %7899 = vst [vmem:[#allocation20_spill] sm:$0xff] %v6116_v51  ;;  %v6118_v58 = vld [vmem:[#allocation2 + $0x27] sm:$0xff] }
  0x9f   : > { %4885 = vmatpush1.bf16.msra.mxu0 %v4884_v9  ;;  %v550_v9 = vld [vmem:[#allocation6 + $0x108] sm:$0xff]  ;;  %v551_v38 = vld [vmem:[#allocation6 + $0x110] sm:$0xff] }
  0xa0   : > { %4412 = vmatmul.mubr.f32.gmra.mrb[8].mxu1 %v6084_v16  ;;  %4886 = vmatprep.subr.bf16.mxu0 %v7789_v0  ;;  %v4975_v28 = vpack.c.bf16 %v550_v9, %v549_v7  ;;  %v553_v9 = vld [vmem:[#allocation6 + $0x120] sm:$0xff]  ;;  %v547_v16 = vld [vmem:[#allocation6 + $0xf0] sm:$0xff] }
  0xa1   : > { %4941 = vmatpush1.bf16.msra.mxu1 %v4940_v17  ;;  %4414 = vmatprep.mubr.f32.mxu1 %v6091_v23  ;;  %v532_v17 = vld [vmem:[#allocation6 + $0x78] sm:$0xff]  ;;  %v545_v23 = vld [vmem:[#allocation6 + $0xe0] sm:$0xff] }
  0xa2   : > { %4942 = vmatprep.subr.bf16.mxu1 %v7789_v0  ;;  %v4949_v31 = vpack.c.bf16 %v532_v17, %v531_v13  ;;  %v554_v13 = vld [vmem:[#allocation6 + $0x128] sm:$0xff] }
  0xa3   : > { %4888 = vmatpush1.bf16.msra.mxu0 %v4887_v30  ;;  %v6113_v30 = vld [vmem:[#allocation2 + $0x111] sm:$0xff]  ;;  %v6126_v17 = vld [vmem:[#allocation2 + $0x149] sm:$0xff] }
  0xa4   : > { %4415 = vmatmul.mubr.f32.gmra.mrb[10].mxu1 %v6097_v40  ;;  %4889 = vmatprep.subr.bf16.mxu0 %v7789_v0  ;;  %7898 = vst [vmem:[#allocation19_spill] sm:$0xff] %v6113_v30  ;;  %7901 = vst [vmem:[#allocation22_spill] sm:$0xff] %v6126_v17  ;;  %v543_v40 = vld [vmem:[#allocation6 + $0xd0] sm:$0xff] }
  0xa5   : > { %4944 = vmatpush1.bf16.msra.mxu1 %v4943_v41  ;;  %4417 = vmatprep.mubr.f32.mxu1 %v6100_v48  ;;  %v552_v41 = vld [vmem:[#allocation6 + $0x118] sm:$0xff]  ;;  %v541_v48 = vld [vmem:[#allocation6 + $0xc0] sm:$0xff] }
  0xa6   : > { %4945 = vmatprep.subr.bf16.mxu1 %v7789_v0  ;;  %v4979_v59 = vpack.c.bf16 %v552_v41, %v551_v38  ;;  %v6129_v38 = vld [vmem:[#allocation2 + $0x2f] sm:$0xff] }
  0xa7   : > { %4891 = vmatpush1.bf16.msra.mxu0 %v4890_v53  ;;  %v534_v53 = vld [vmem:[#allocation6 + $0x88] sm:$0xff]  ;;  %v6133_v41 = vld [vmem:[#allocation2 + $0x151] sm:$0xff] }
  0xa8   : > { %4418 = vmatmul.mubr.f32.gmra.mrb[12].mxu1 %v6105_v63  ;;  %4892 = vmatprep.subr.bf16.mxu0 %v7789_v0  ;;  %v4952_v7 = vpack.c.bf16 %v534_v53, %v533_v52  ;;  %7902 = vst [vmem:[#allocation23_spill] sm:$0xff] %v6133_v41  ;;  %v555_v53 = vld [vmem:[#allocation6 + $0x130] sm:$0xff] }
  0xa9   : > { %4947 = vmatpush1.bf16.msra.mxu1 %v4946_v2  ;;  %4420 = vmatprep.mubr.f32.mxu1 %v6108_v12  ;;  %v6122_v2 = vld [vmem:[#allocation2 + $0x131] sm:$0xff]  ;;  %v538_v12 = vld [vmem:[#allocation6 + $0xa8] sm:$0xff] }
  0xaa   : > { %4948 = vmatprep.subr.bf16.mxu1 %v7789_v0  ;;  %7900 = vst [vmem:[#allocation21_spill] sm:$0xff] %v6122_v2  ;;  %v539_v63 = vld [vmem:[#allocation6 + $0xb0] sm:$0xff] }
  0xab   : > { %4894 = vmatpush1.bf16.msra.mxu0 %v4893_v24  ;;  %v535_v24 = vld [vmem:[#allocation6 + $0x90] sm:$0xff] }
  0xac   : > { %4421 = vmatmul.mubr.f32.gmra.mrb[14].mxu1 %v6113_v30  ;;  %4976 = vmatprep.subr.bf16.mxu0 %v4975_v28  ;;  %v4955_v52 = vpack.c.bf16 %v536_v1, %v535_v24  ;;  %v537_v30 = vld [vmem:[#allocation6 + $0xa0] sm:$0xff]  ;;  %v6144_v1 = vld [vmem:[#allocation2 + $0x171] sm:$0xff]  ;;  %v558_v24 = vld [vmem:[#allocation6 + $0x148] sm:$0xff] }
  0xad   : > { %4950 = vmatpush1.bf16.msra.mxu1 %v4949_v31  ;;  %4423 = vmatprep.mubr.f32.mxu1 %v6116_v51  ;;  %v4983_v31 = vpack.c.bf16 %v554_v13, %v553_v9  ;;  %v7903_v51 = vmov 0.0|0.0   ;;  %7905 = vst [vmem:[#allocation25_spill] sm:$0xff] %v6144_v1  ;;  %v4958_v9 = vpack.c.bf16 %v538_v12, %v537_v30  ;;  %v557_v13 = vld [vmem:[#allocation6 + $0x140] sm:$0xff]  ;;  %v6155_v12 = vld [vmem:[#allocation2 + $0x191] sm:$0xff] }
  0xae   : > { %679 = vmatmul.mubr.f32.vlgmr.msra.gmra.mrb[0].mxu0 %v6118_v58  ;;  %4951 = vmatprep.subr.bf16.mxu1 %v7789_v0  ;;  %v556_v0 = vld [vmem:[#allocation6 + $0x138] sm:$0xff]  ;;  %7907 = vst [vmem:[#allocation27_spill] sm:$0xff] %v6155_v12 }
  0xaf   : > { %4978 = vmatpush3.bf16.msra.mxu0 %v4975_v28  ;;  %683 = vmatprep.mubr.f32.mxu0 %v5926_v29  ;;  %v6137_v28 = vld [vmem:[#allocation2 + $0x169] sm:$0xff] }
  0xb0   : > { %4424 = vmatmul.mubr.f32.gmra.mrb[16].mxu1 %v6122_v2  ;;  %4980 = vmatprep.subr.bf16.mxu0 %v4979_v59  ;;  %7904 = vst [vmem:[#allocation24_spill] sm:$0xff] %v6137_v28  ;;  %v6140_v2 = vld [vmem:[#allocation2 + $0x47] sm:$0xff] }
  0xb1   : > { %4953 = vmatpush1.bf16.msra.mxu1 %v4952_v7  ;;  %4426 = vmatprep.mubr.f32.mxu1 %v6126_v17  ;;  %v4987_v7 = vpack.c.bf16 %v556_v0, %v555_v53  ;;  %v6148_v17 = vld [vmem:[#allocation2 + $0x189] sm:$0xff]  ;;  %v4991_v0 = vpack.c.bf16 %v558_v24, %v557_v13  ;;  %v560_v53 = vld [vmem:[#allocation6 + $0x158] sm:$0xff]  ;;  %v561_v24 = vld [vmem:[#allocation6 + $0x160] sm:$0xff] }
  0xb2   : > { %684 = vmatmul.mubr.f32.gmra.mrb[2].mxu0 %v6129_v38  ;;  %4954 = vmatprep.subr.bf16.mxu1 %v7903_v51  ;;  %7906 = vst [vmem:[#allocation26_spill] sm:$0xff] %v6148_v17 }
  0xb3   : > { %688 = vmatprep.mubr.f32.mxu0 %v5933_v32  ;;  %4982 = vmatpush3.bf16.msra.mxu0 %v4979_v59  ;;  %v540_v59 = vld [vmem:[#allocation6 + $0xb8] sm:$0xff] }
  0xb4   : > { %4427 = vmatmul.mubr.f32.gmra.mrb[18].mxu1 %v6133_v41  ;;  %4984 = vmatprep.subr.bf16.mxu0 %v4983_v31  ;;  %v6151_v41 = vld [vmem:[#allocation2 + $0x4f] sm:$0xff]  ;;  %v4961_v30 = vpack.c.bf16 %v540_v59, %v539_v63 }
  0xb5   : > { %4956 = vmatpush1.bf16.msra.mxu1 %v4955_v52  ;;  %4429 = vmatprep.mubr.f32.mxu1 %v6137_v28  ;;  %v559_v52 = vld [vmem:[#allocation6 + $0x150] sm:$0xff]  ;;  %v562_v59 = vld [vmem:[#allocation6 + $0x168] sm:$0xff] }
  0xb6   : > { %689 = vmatmul.mubr.f32.gmra.mrb[4].mxu0 %v6140_v2  ;;  %4957 = vmatprep.subr.bf16.mxu1 %v7903_v51  ;;  %v6159_v28 = vld [vmem:[#allocation2 + $0x1a9] sm:$0xff]  ;;  %v6166_v63 = vld [vmem:[#allocation2 + $0x1b1] sm:$0xff] }
  0xb7   : > { %693 = vmatprep.mubr.f32.mxu0 %v5936_v33  ;;  %4986 = vmatpush3.bf16.msra.mxu0 %v4983_v31  ;;  %7908 = vst [vmem:[#allocation28_spill] sm:$0xff] %v6159_v28  ;;  %v542_v31 = vld [vmem:[#allocation6 + $0xc8] sm:$0xff]  ;;  %7909 = vst [vmem:[#allocation29_spill] sm:$0xff] %v6166_v63 }
  0xb8   : > { %4430 = vmatmul.mubr.f32.gmra.mrb[20].mxu1 %v6144_v1  ;;  %4988 = vmatprep.subr.bf16.mxu0 %v4987_v7  ;;  %v6162_v1 = vld [vmem:[#allocation2 + $0x67] sm:$0xff]  ;;  %v4964_v13 = vpack.c.bf16 %v542_v31, %v541_v48  ;;  %v6177_v48 = vld [vmem:[#allocation2 + $0x1d1] sm:$0xff] }
  0xb9   : > { %4959 = vmatpush1.bf16.msra.mxu1 %v4958_v9  ;;  %4432 = vmatprep.mubr.f32.mxu1 %v6148_v17  ;;  %v4995_v9 = vpack.c.bf16 %v560_v53, %v559_v52  ;;  %v6170_v17 = vld [vmem:[#allocation2 + $0x1c9] sm:$0xff]  ;;  %7911 = vst [vmem:[#allocation31_spill] sm:$0xff] %v6177_v48  ;;  %v564_v31 = vld [vmem:[#allocation6 + $0x178] sm:$0xff] }
  0xba   : > { %694 = vmatmul.mubr.f32.gmra.mrb[6].mxu0 %v6151_v41  ;;  %4960 = vmatprep.subr.bf16.mxu1 %v7903_v51  ;;  %7910 = vst [vmem:[#allocation30_spill] sm:$0xff] %v6170_v17  ;;  %v563_v53 = vld [vmem:[#allocation6 + $0x170] sm:$0xff] }
  0xbb   : > { %698 = vmatprep.mubr.f32.mxu0 %v5941_v35  ;;  %4990 = vmatpush3.bf16.msra.mxu0 %v4987_v7  ;;  %v544_v7 = vld [vmem:[#allocation6 + $0xd8] sm:$0xff] }
  0xbc   : > { %4433 = vmatmul.mubr.f32.gmra.mrb[22].mxu1 %v6155_v12  ;;  %4992 = vmatprep.subr.bf16.mxu0 %v4991_v0  ;;  %v6173_v12 = vld [vmem:[#allocation2 + $0x6f] sm:$0xff]  ;;  %v4967_v52 = vpack.c.bf16 %v544_v7, %v543_v40 }
  0xbd   : > { %4962 = vmatpush1.bf16.msra.mxu1 %v4961_v30  ;;  %4435 = vmatprep.mubr.f32.mxu1 %v6159_v28  ;;  %v4999_v30 = vpack.c.bf16 %v562_v59, %v561_v24  ;;  %v6181_v28 = vld [vmem:[#allocation2 + $0x1e9] sm:$0xff]  ;;  %v6188_v40 = vld [vmem:[#allocation2 + $0x1f1] sm:$0xff]  ;;  %v1547_v59 = vld [vmem:[#allocation6 + $0x400] sm:$0xff] }
  0xbe   : > { %699 = vmatmul.mubr.f32.gmra.mrb[8].mxu0 %v6162_v1  ;;  %4963 = vmatprep.subr.bf16.mxu1 %v7903_v51  ;;  %v1548_v7 = vld [vmem:[#allocation6 + $0x408] sm:$0xff] }
  0xbf   : > { %703 = vmatprep.mubr.f32.mxu0 %v5944_v39  ;;  %4994 = vmatpush3.bf16.msra.mxu0 %v4991_v0  ;;  %v546_v0 = vld [vmem:[#allocation6 + $0xe8] sm:$0xff] }
  0xc0   : > { %4436 = vmatmul.mubr.f32.gmra.mrb[24].mxu1 %v6166_v63  ;;  %4996 = vmatprep.subr.bf16.mxu0 %v4995_v9  ;;  %v6184_v63 = vld [vmem:[#allocation2 + $0x87] sm:$0xff]  ;;  %v4970_v24 = vpack.c.bf16 %v546_v0, %v545_v23  ;;  %v6201_v23 = vld [vmem:[#allocation2 + $0x211] sm:$0xff] }
  0xc1   : > { %4965 = vmatpush1.bf16.msra.mxu1 %v4964_v13  ;;  %4438 = vmatprep.mubr.f32.mxu1 %v6170_v17  ;;  %v5003_v13 = vpack.c.bf16 %v564_v31, %v563_v53  ;;  %v6192_v17 = vld [vmem:[#allocation2 + $0x209] sm:$0xff]  ;;  %7913 = vst [vmem:[#allocation33_spill] sm:$0xff] %v6201_v23  ;;  %v1515_v31 = vld [vmem:[#allocation6 + $0x300] sm:$0xff] }
  0xc2   : > { %704 = vmatmul.mubr.f32.gmra.mrb[10].mxu0 %v6173_v12  ;;  %4966 = vmatprep.subr.bf16.mxu1 %v7903_v51  ;;  %7912 = vst [vmem:[#allocation32_spill] sm:$0xff] %v6192_v17  ;;  %v1516_v0 = vld [vmem:[#allocation6 + $0x308] sm:$0xff] }
  0xc3   : > { %708 = vmatprep.mubr.f32.mxu0 %v5950_v42  ;;  %4998 = vmatpush3.bf16.msra.mxu0 %v4995_v9  ;;  %v548_v9 = vld [vmem:[#allocation6 + $0xf8] sm:$0xff] }
  0xc4   : > { %4439 = vmatmul.mubr.f32.gmra.mrb[26].mxu1 %v6177_v48  ;;  %5000 = vmatprep.subr.bf16.mxu0 %v4999_v30  ;;  %v6195_v48 = vld [vmem:[#allocation2 + $0x8f] sm:$0xff]  ;;  %v4973_v53 = vpack.c.bf16 %v548_v9, %v547_v16  ;;  %v5008_v16 = vpack.c.bf16 %v1516_v0, %v1515_v31  ;;  %v1518_v9 = vld [vmem:[#allocation6 + $0x318] sm:$0xff]  ;;  %v1519_v31 = vld [vmem:[#allocation6 + $0x320] sm:$0xff] }
  0xc5   : > { %4968 = vmatpush1.bf16.msra.mxu1 %v4967_v52  ;;  %4441 = vmatprep.mubr.f32.mxu1 %v6181_v28  ;;  %v6198_v52 = vpack.c.bf16 %v1548_v7, %v1547_v59  ;;  %v409_v59 = vld [vmem:[#allocation2 + $0x7] sm:$0xff]  ;;  %v1517_v7 = vld [vmem:[#allocation6 + $0x310] sm:$0xff] }
  0xc6   : > { %709 = vmatmul.mubr.f32.gmra.mrb[12].mxu0 %v6184_v63  ;;  %4969 = vmatprep.subr.bf16.mxu1 %v7903_v51  ;;  %v1520_v0 = vld [vmem:[#allocation6 + $0x328] sm:$0xff] }
  0xc7   : > { %713 = vmatprep.mubr.f32.mxu0 %v5953_v43  ;;  %5002 = vmatpush3.bf16.msra.mxu0 %v4999_v30  ;;  %v6206_v30 = vld [vmem:[#allocation2 + $0xa7] sm:$0xff] }
  0xc8   : > { %4442 = vmatmul.mubr.f32.gmra.mrb[28].mxu1 %v6188_v40  ;;  %5004 = vmatprep.subr.bf16.mxu0 %v5003_v13 }
  0xc9   : > { %4971 = vmatpush1.bf16.msra.mxu1 %v4970_v24  ;;  %4444 = vmatprep.mubr.f32.mxu1 %v6192_v17  ;;  %v7914_v24 = vmov 0.0   ;;  %v6214_v17 = vld [vmem:[#allocation2 + $0xaf] sm:$0xff] }
  0xca   : > { %714 = vmatmul.mubr.f32.gmra.mrb[14].mxu0 %v6195_v48  ;;  %4972 = vmatprep.subr.bf16.mxu1 %v7903_v51 }
  0xcb   : > { %718 = vmatprep.mubr.f32.mxu0 %v5958_v46  ;;  %5006 = vmatpush3.bf16.msra.mxu0 %v5003_v13  ;;  %v410_v13 = vld [vmem:[#allocation2 + $0xf] sm:$0xff] }
  0xcc   : > { %4445 = vmatmul.mubr.f32.gmra.mrb[30].mxu1 %v6201_v23  ;;  %5056 = vmatprep.subr.bf16.mxu0 %v6198_v52  ;;  %v6220_v23 = vld [vmem:[#allocation2 + $0xc7] sm:$0xff] }
  0xcd   : > { %4974 = vmatpush1.bf16.msra.mxu1 %v4973_v53  ;;  %1128 = vmatprep.mubr.f32.mxu1 %v7914_v24  ;;  %v5011_v53 = vpack.c.bf16 %v1518_v9, %v1517_v7  ;;  %v6226_v7 = vld [vmem:[#allocation2 + $0xcf] sm:$0xff] }
  0xce   : > { %719 = vmatmul.mubr.f32.gmra.mrb[16].mxu0 %v6206_v30  ;;  %5007 = vmatprep.subr.bf16.mxu1 %v7903_v51 }
  0xcf   : > { %723 = vmatprep.mubr.f32.mxu0 %v5961_v50 }
  0xd0   : > { %1129 = vmatmul.mubr.f32.vlgmr.msra.gmra.mrb[32].mxu1 %v409_v59  ;;  %v5014_v59 = vpack.c.bf16 %v1520_v0, %v1519_v31  ;;  %v1526_v31 = vld [vmem:[#allocation6 + $0x358] sm:$0xff]  ;;  %v6240_v0 = vld [vmem:[#allocation2 + $0xef] sm:$0xff] }
  0xd1   : > { %1133 = vmatprep.mubr.f32.mxu1 %v7914_v24  ;;  %5009 = vmatpush1.bf16.msra.mxu1 %v5008_v16  ;;  %v1521_v24 = vld [vmem:[#allocation6 + $0x330] sm:$0xff]  ;;  %v1522_v16 = vld [vmem:[#allocation6 + $0x338] sm:$0xff] }
  0xd2   : > { %724 = vmatmul.mubr.f32.gmra.mrb[18].mxu0 %v6214_v17  ;;  %5010 = vmatprep.subr.bf16.mxu1 %v7903_v51  ;;  %v5017_v9 = vpack.c.bf16 %v1522_v16, %v1521_v24  ;;  %v6247_v24 = vld [vmem:[#allocation2 + $0x107] sm:$0xff] }
  0xd3   : > { %728 = vmatprep.mubr.f32.mxu0 %v5967_v54 }
  0xd4   : > { %1134 = vmatmul.mubr.f32.gmra.mrb[34].mxu1 %v410_v13  ;;  %v1524_v13 = vld [vmem:[#allocation6 + $0x348] sm:$0xff] }
  0xd5   : > { %1138 = vmatprep.mubr.f32.mxu1 %v5923_v25  ;;  %5012 = vmatpush1.bf16.msra.mxu1 %v5011_v53  ;;  %v1523_v25 = vld [vmem:[#allocation6 + $0x340] sm:$0xff] }
  0xd6   : > { %729 = vmatmul.mubr.f32.gmra.mrb[20].mxu0 %v6220_v23  ;;  %5013 = vmatprep.subr.bf16.mxu1 %v7903_v51  ;;  %v6233_v53 = vld [vmem:[#allocation2 + $0xe7] sm:$0xff] }
  0xd7   : > { %733 = vmatprep.mubr.f32.mxu0 %v5970_v55 }
  0xd8   : > { %1139 = vmatmul.mubr.f32.gmra.mrb[36].mxu1 %v6118_v58  ;;  %v5020_v58 = vpack.c.bf16 %v1524_v13, %v1523_v25  ;;  %v6254_v25 = vld [vmem:[#allocation2 + $0x10f] sm:$0xff] }
  0xd9   : > { %1143 = vmatprep.mubr.f32.mxu1 %v5926_v29  ;;  %5015 = vmatpush1.bf16.msra.mxu1 %v5014_v59  ;;  %v1525_v29 = vld [vmem:[#allocation6 + $0x350] sm:$0xff]  ;;  %v1528_v59 = vld [vmem:[#allocation6 + $0x368] sm:$0xff] }
  0xda   : > { %734 = vmatmul.mubr.f32.gmra.mrb[22].mxu0 %v6226_v7  ;;  %5016 = vmatprep.subr.bf16.mxu1 %v7903_v51 }
  0xdb   : > { %738 = vmatprep.mubr.f32.mxu0 %v5976_v61 }
  0xdc   : > { %1144 = vmatmul.mubr.f32.gmra.mrb[38].mxu1 %v6129_v38  ;;  %v5023_v38 = vpack.c.bf16 %v1526_v31, %v1525_v29  ;;  %v6261_v29 = vld [vmem:[#allocation2 + $0x127] sm:$0xff] }
  0xdd   : > { %1148 = vmatprep.mubr.f32.mxu1 %v5933_v32  ;;  %5018 = vmatpush1.bf16.msra.mxu1 %v5017_v9  ;;  %v1527_v32 = vld [vmem:[#allocation6 + $0x360] sm:$0xff]  ;;  %v1530_v9 = vld [vmem:[#allocation6 + $0x378] sm:$0xff] }
  0xde   : > { %739 = vmatmul.mubr.f32.gmra.mrb[24].mxu0 %v6233_v53  ;;  %5019 = vmatprep.subr.bf16.mxu1 %v7903_v51  ;;  %v5026_v16 = vpack.c.bf16 %v1528_v59, %v1527_v32  ;;  %v6268_v32 = vld [vmem:[#allocation2 + $0x12f] sm:$0xff] }
  0xdf   : > { %743 = vmatprep.mubr.f32.mxu0 %v5979_v62 }
  0xe0   : > { %1149 = vmatmul.mubr.f32.gmra.mrb[40].mxu1 %v6140_v2 }
  0xe1   : > { %1153 = vmatprep.mubr.f32.mxu1 %v5936_v33  ;;  %5021 = vmatpush1.bf16.msra.mxu1 %v5020_v58  ;;  %v1529_v33 = vld [vmem:[#allocation6 + $0x370] sm:$0xff]  ;;  %v1532_v58 = vld [vmem:[#allocation6 + $0x388] sm:$0xff] }
  0xe2   : > { %744 = vmatmul.mubr.f32.gmra.mrb[26].mxu0 %v6240_v0  ;;  %5022 = vmatprep.subr.bf16.mxu1 %v7903_v51  ;;  %v5029_v13 = vpack.c.bf16 %v1530_v9, %v1529_v33  ;;  %v6275_v33 = vld [vmem:[#allocation2 + $0x147] sm:$0xff] }
  0xe3   : > { %748 = vmatprep.mubr.f32.mxu0 %v5985_v5 }
  0xe4   : > { %1154 = vmatmul.mubr.f32.gmra.mrb[42].mxu1 %v6151_v41 }
  0xe5   : > { %1158 = vmatprep.mubr.f32.mxu1 %v5941_v35  ;;  %5024 = vmatpush1.bf16.msra.mxu1 %v5023_v38  ;;  %v1531_v35 = vld [vmem:[#allocation6 + $0x380] sm:$0xff]  ;;  %v1534_v38 = vld [vmem:[#allocation6 + $0x398] sm:$0xff] }
  0xe6   : > { %749 = vmatmul.mubr.f32.gmra.mrb[28].mxu0 %v6247_v24  ;;  %5025 = vmatprep.subr.bf16.mxu1 %v7903_v51  ;;  %v5032_v31 = vpack.c.bf16 %v1532_v58, %v1531_v35  ;;  %v6282_v35 = vld [vmem:[#allocation2 + $0x14f] sm:$0xff] }
  0xe7   : > { %753 = vmatprep.mubr.f32.mxu0 %v5988_v6 }
  0xe8   : > { %1159 = vmatmul.mubr.f32.gmra.mrb[44].mxu1 %v6162_v1 }
  0xe9   : > { %1163 = vmatprep.mubr.f32.mxu1 %v5944_v39  ;;  %5027 = vmatpush1.bf16.msra.mxu1 %v5026_v16  ;;  %v1533_v39 = vld [vmem:[#allocation6 + $0x390] sm:$0xff]  ;;  %v1536_v16 = vld [vmem:[#allocation6 + $0x3a8] sm:$0xff] }
  0xea   : > { %754 = vmatmul.mubr.f32.gmra.mrb[30].mxu0 %v6254_v25  ;;  %5028 = vmatprep.subr.bf16.mxu1 %v7903_v51  ;;  %v5035_v59 = vpack.c.bf16 %v1534_v38, %v1533_v39  ;;  %v6289_v39 = vld [vmem:[#allocation2 + $0x167] sm:$0xff] }
  0xeb   : > { %758 = vmatprep.mubr.f32.mxu0 %v5993_v10 }
  0xec   : > { %1164 = vmatmul.mubr.f32.gmra.mrb[46].mxu1 %v6173_v12 }
  0xed   : > { %1168 = vmatprep.mubr.f32.mxu1 %v5950_v42  ;;  %5030 = vmatpush1.bf16.msra.mxu1 %v5029_v13  ;;  %v1535_v42 = vld [vmem:[#allocation6 + $0x3a0] sm:$0xff]  ;;  %v1538_v13 = vld [vmem:[#allocation6 + $0x3b8] sm:$0xff] }
  0xee   : > { %759 = vmatmul.mubr.f32.gmra.mrb[32].mxu0 %v6261_v29  ;;  %5031 = vmatprep.subr.bf16.mxu1 %v7903_v51  ;;  %v5038_v9 = vpack.c.bf16 %v1536_v16, %v1535_v42  ;;  %v6296_v42 = vld [vmem:[#allocation2 + $0x16f] sm:$0xff] }
  0xef   : > { %763 = vmatprep.mubr.f32.mxu0 %v5996_v11 }
  0xf0   : > { %1169 = vmatmul.mubr.f32.gmra.mrb[48].mxu1 %v6184_v63 }
  0xf1   : > { %1173 = vmatprep.mubr.f32.mxu1 %v5953_v43  ;;  %5033 = vmatpush1.bf16.msra.mxu1 %v5032_v31  ;;  %v1537_v43 = vld [vmem:[#allocation6 + $0x3b0] sm:$0xff]  ;;  %v1540_v31 = vld [vmem:[#allocation6 + $0x3c8] sm:$0xff] }
  0xf2   : > { %764 = vmatmul.mubr.f32.gmra.mrb[34].mxu0 %v6268_v32  ;;  %5034 = vmatprep.subr.bf16.mxu1 %v7903_v51  ;;  %v5041_v58 = vpack.c.bf16 %v1538_v13, %v1537_v43  ;;  %v6303_v43 = vld [vmem:[#allocation2 + $0x187] sm:$0xff] }
  0xf3   : > { %768 = vmatprep.mubr.f32.mxu0 %v6007_v19 }
  0xf4   : > { %1174 = vmatmul.mubr.f32.gmra.mrb[50].mxu1 %v6195_v48 }
  0xf5   : > { %1178 = vmatprep.mubr.f32.mxu1 %v5958_v46  ;;  %5036 = vmatpush1.bf16.msra.mxu1 %v5035_v59  ;;  %v1539_v46 = vld [vmem:[#allocation6 + $0x3c0] sm:$0xff]  ;;  %v1542_v59 = vld [vmem:[#allocation6 + $0x3d8] sm:$0xff] }
  0xf6   : > { %769 = vmatmul.mubr.f32.gmra.mrb[36].mxu0 %v6275_v33  ;;  %5037 = vmatprep.subr.bf16.mxu1 %v7903_v51  ;;  %v5044_v38 = vpack.c.bf16 %v1540_v31, %v1539_v46  ;;  %v6310_v46 = vld [vmem:[#allocation2 + $0x18f] sm:$0xff] }
  0xf7   : > { %773 = vmatprep.mubr.f32.mxu0 %v6010_v20 }
  0xf8   : > { %1179 = vmatmul.mubr.f32.gmra.mrb[52].mxu1 %v6206_v30 }
  0xf9   : > { %1183 = vmatprep.mubr.f32.mxu1 %v5961_v50  ;;  %5039 = vmatpush1.bf16.msra.mxu1 %v5038_v9  ;;  %v1541_v50 = vld [vmem:[#allocation6 + $0x3d0] sm:$0xff]  ;;  %v1544_v9 = vld [vmem:[#allocation6 + $0x3e8] sm:$0xff] }
  0xfa   : > { %774 = vmatmul.mubr.f32.gmra.mrb[38].mxu0 %v6282_v35  ;;  %5040 = vmatprep.subr.bf16.mxu1 %v7903_v51  ;;  %v5047_v16 = vpack.c.bf16 %v1542_v59, %v1541_v50  ;;  %v481_v50 = vld [vmem:[#allocation2 + $0x9] sm:$0xff]  ;;  %v1550_v59 = vld [vmem:[#allocation6 + $0x418] sm:$0xff] }
  0xfb   : > { %778 = vmatprep.mubr.f32.mxu0 %v6015_v22 }
  0xfc   : > { %1184 = vmatmul.mubr.f32.gmra.mrb[54].mxu1 %v6214_v17 }
  0xfd   : > { %1188 = vmatprep.mubr.f32.mxu1 %v5967_v54  ;;  %5042 = vmatpush1.bf16.msra.mxu1 %v5041_v58  ;;  %v1543_v54 = vld [vmem:[#allocation6 + $0x3e0] sm:$0xff]  ;;  %v1546_v58 = vld [vmem:[#allocation6 + $0x3f8] sm:$0xff] }
  0xfe   : > { %779 = vmatmul.mubr.f32.gmra.mrb[40].mxu0 %v6289_v39  ;;  %5043 = vmatprep.subr.bf16.mxu1 %v7903_v51  ;;  %v5050_v13 = vpack.c.bf16 %v1544_v9, %v1543_v54  ;;  %v5400_v54 = vld [vmem:[#allocation2 + $0x29] sm:$0xff] }
  0xff   : > { %783 = vmatprep.mubr.f32.mxu0 %v6020_v26  ;;  %v1553_v9 = vld [vmem:[#allocation6 + $0x430] sm:$0xff] }
 0x100   : > { %1189 = vmatmul.mubr.f32.gmra.mrb[56].mxu1 %v6220_v23 }
 0x101   : > { %1193 = vmatprep.mubr.f32.mxu1 %v5970_v55  ;;  %5045 = vmatpush1.bf16.msra.mxu1 %v5044_v38  ;;  %v1545_v55 = vld [vmem:[#allocation6 + $0x3f0] sm:$0xff]  ;;  %v6329_v38 = vld [vmem:[#allocation2 + $0x1c7] sm:$0xff] }
 0x102   : > { %784 = vmatmul.mubr.f32.gmra.mrb[42].mxu0 %v6296_v42  ;;  %5046 = vmatprep.subr.bf16.mxu1 %v7903_v51  ;;  %v5053_v31 = vpack.c.bf16 %v1546_v58, %v1545_v55  ;;  %v1556_v55 = vld [vmem:[#allocation6 + $0x448] sm:$0xff]  ;;  %v7915_v58 = vld [vmem:[#allocation13_spill] sm:$0xff] }
 0x103   : > { %788 = vmatprep.mubr.f32.mxu0 %v6031_v36 }
 0x104   : > { %1194 = vmatmul.mubr.f32.gmra.mrb[58].mxu1 %v6226_v7 }
 0x105   : > { %1198 = vmatprep.mubr.f32.mxu1 %v5976_v61  ;;  %5048 = vmatpush1.bf16.msra.mxu1 %v5047_v16  ;;  %v6317_v61 = vld [vmem:[#allocation2 + $0x1a7] sm:$0xff] }
 0x106   : > { %789 = vmatmul.mubr.f32.gmra.mrb[44].mxu0 %v6303_v43  ;;  %5049 = vmatprep.subr.bf16.mxu1 %v7903_v51  ;;  %v1551_v16 = vld [vmem:[#allocation6 + $0x420] sm:$0xff] }
 0x107   : > { %793 = vmatprep.mubr.f32.mxu0 %v6034_v37 }
 0x108   : > { %1199 = vmatmul.mubr.f32.gmra.mrb[60].mxu1 %v6233_v53 }
 0x109   : > { %1203 = vmatprep.mubr.f32.mxu1 %v5979_v62  ;;  %5051 = vmatpush1.bf16.msra.mxu1 %v5050_v13  ;;  %v6323_v62 = vld [vmem:[#allocation2 + $0x1af] sm:$0xff]  ;;  %v1554_v13 = vld [vmem:[#allocation6 + $0x438] sm:$0xff] }
 0x10a   : > { %794 = vmatmul.mubr.f32.gmra.mrb[46].mxu0 %v6310_v46  ;;  %5052 = vmatprep.subr.bf16.mxu1 %v7903_v51 }
 0x10b   : > { %798 = vmatprep.mubr.f32.mxu0 %v6041_v44 }
 0x10c   : > { %1204 = vmatmul.mubr.f32.gmra.mrb[62].mxu1 %v6240_v0 }
 0x10d   : > { %1208 = vmatprep.mubr.f32.mxu1 %v5985_v5  ;;  %5054 = vmatpush1.bf16.msra.mxu1 %v5053_v31  ;;  %v6335_v5 = vld [vmem:[#allocation2 + $0x1cf] sm:$0xff] }
 0x10e   : > { %799 = vmatmul.mubr.f32.gmra.mrb[48].mxu0 %v6317_v61  ;;  %v7916_v31 = vld [vmem:[#allocation14_spill] sm:$0xff] }
 0x10f   : > { %803 = vmatprep.mubr.f32.mxu0 %v6044_v45 }
 0x110   : > { %1209 = vmatmul.mubr.f32.gmra.mrb[64].mxu1 %v6247_v24 }
 0x111   : > { %1213 = vmatprep.mubr.f32.mxu1 %v5988_v6  ;;  %v6341_v6 = vld [vmem:[#allocation2 + $0x1e7] sm:$0xff] }
 0x112   : > { %804 = vmatmul.mubr.f32.gmra.mrb[50].mxu0 %v6323_v62 }
 0x113   : > { %808 = vmatprep.mubr.f32.mxu0 %v6055_v56 }
 0x114   : > { %1214 = vmatmul.mubr.f32.gmra.mrb[66].mxu1 %v6254_v25 }
 0x115   : > { %1218 = vmatprep.mubr.f32.mxu1 %v5993_v10  ;;  %v6347_v10 = vld [vmem:[#allocation2 + $0x1ef] sm:$0xff] }
 0x116   : > { %809 = vmatmul.mubr.f32.gmra.mrb[52].mxu0 %v6329_v38 }
 0x117   : > { %813 = vmatprep.mubr.f32.mxu0 %v6058_v57 }
 0x118   : > { %1219 = vmatmul.mubr.f32.gmra.mrb[68].mxu1 %v6261_v29 }
 0x119   : > { %1223 = vmatprep.mubr.f32.mxu1 %v5996_v11  ;;  %v6353_v11 = vld [vmem:[#allocation2 + $0x207] sm:$0xff] }
 0x11a   : > { %814 = vmatmul.mubr.f32.gmra.mrb[54].mxu0 %v6335_v5 }
 0x11b   : > { %818 = vmatprep.mubr.f32.mxu0 %v6068_v3 }
 0x11c   : > { %1224 = vmatmul.mubr.f32.gmra.mrb[70].mxu1 %v6268_v32 }
 0x11d   : > { %1228 = vmatprep.mubr.f32.mxu1 %v6007_v19  ;;  %v6359_v19 = vld [vmem:[#allocation2 + $0x20f] sm:$0xff] }
 0x11e   : > { %819 = vmatmul.mubr.f32.gmra.mrb[56].mxu0 %v6341_v6 }
 0x11f   : > { %823 = vmatprep.mubr.f32.mxu0 %v6074_v8 }
 0x120   : > { %1229 = vmatmul.mubr.f32.gmra.mrb[72].mxu1 %v6275_v33 }
 0x121   : > { %1233 = vmatprep.mubr.f32.mxu1 %v6010_v20  ;;  %v1549_v20 = vld [vmem:[#allocation6 + $0x410] sm:$0xff] }
 0x122   : > { %824 = vmatmul.mubr.f32.gmra.mrb[58].mxu0 %v6347_v10 }
 0x123   : > { %828 = vmatprep.mubr.f32.mxu0 %v6081_v15  ;;  %v482_v15 = vld [vmem:[#allocation2 + $0x11] sm:$0xff] }
 0x124   : > { %1234 = vmatmul.mubr.f32.gmra.mrb[74].mxu1 %v6282_v35 }
 0x125   : > { %1238 = vmatprep.mubr.f32.mxu1 %v6015_v22  ;;  %v5059_v22 = vpack.c.bf16 %v1550_v59, %v1549_v20  ;;  %v7921_v20 = vld [vmem:[#allocation19_spill] sm:$0xff]  ;;  %v7922_v59 = vld [vmem:[#allocation20_spill] sm:$0xff] }
 0x126   : > { %829 = vmatmul.mubr.f32.gmra.mrb[60].mxu0 %v6353_v11 }
 0x127   : > { %833 = vmatprep.mubr.f32.mxu0 %v6087_v21  ;;  %v1552_v21 = vld [vmem:[#allocation6 + $0x428] sm:$0xff] }
 0x128   : > { %1239 = vmatmul.mubr.f32.gmra.mrb[76].mxu1 %v6289_v39 }
 0x129   : > { %1243 = vmatprep.mubr.f32.mxu1 %v6020_v26  ;;  %v5063_v26 = vpack.c.bf16 %v1552_v21, %v1551_v16  ;;  %v5403_v16 = vld [vmem:[#allocation2 + $0x68] sm:$0xff]  ;;  %v7925_v21 = vld [vmem:[#allocation23_spill] sm:$0xff] }
 0x12a   : > { %834 = vmatmul.mubr.f32.gmra.mrb[62].mxu0 %v6359_v19 }
 0x12b   : > { %4479 = vmatprep.mubr.f32.mxu0 %v481_v50  ;;  %v7920_v50 = vld [vmem:[#allocation18_spill] sm:$0xff] }
 0x12c   : > { %1244 = vmatmul.mubr.f32.gmra.mrb[78].mxu1 %v6296_v42 }
 0x12d   : > { %1248 = vmatprep.mubr.f32.mxu1 %v6031_v36  ;;  %v5067_v36 = vpack.c.bf16 %v1554_v13, %v1553_v9  ;;  %v7927_v9 = vld [vmem:[#allocation25_spill] sm:$0xff]  ;;  %v5405_v13 = vld [vmem:[#allocation2 + $0x88] sm:$0xff] }
 0x12e   : > { %4480 = vmatmul.mubr.f32.vlgmr.msra.gmra.mrb[64].mxu0 %v482_v15  ;;  %v5402_v15 = vld [vmem:[#allocation2 + $0x50] sm:$0xff] }
 0x12f   : > { %5058 = vmatpush3.bf16.msra.mxu0 %v6198_v52  ;;  %4482 = vmatprep.mubr.f32.mxu0 %v5400_v54  ;;  %v1555_v52 = vld [vmem:[#allocation6 + $0x440] sm:$0xff]  ;;  %v7926_v54 = vld [vmem:[#allocation24_spill] sm:$0xff] }
 0x130   : > { %1249 = vmatmul.mubr.f32.gmra.mrb[80].mxu1 %v6303_v43  ;;  %5060 = vmatprep.subr.bf16.mxu0 %v5059_v22 }
 0x131   : > { %1253 = vmatprep.mubr.f32.mxu1 %v6034_v37  ;;  %v1558_v37 = vld [vmem:[#allocation6 + $0x458] sm:$0xff] }
 0x132   : > { %4483 = vmatmul.mubr.f32.gmra.mrb[66].mxu0 %v6001_v14  ;;  %v5071_v14 = vpack.c.bf16 %v1556_v55, %v1555_v52  ;;  %v5406_v52 = vld [vmem:[#allocation2 + $0x90] sm:$0xff]  ;;  %v7931_v55 = vld [vmem:[#allocation29_spill] sm:$0xff] }
 0x133   : > { %4485 = vmatprep.mubr.f32.mxu0 %v6004_v18  ;;  %5062 = vmatpush3.bf16.msra.mxu0 %v5059_v22  ;;  %v1557_v18 = vld [vmem:[#allocation6 + $0x450] sm:$0xff]  ;;  %v7924_v22 = vld [vmem:[#allocation22_spill] sm:$0xff] }
 0x134   : > { %1254 = vmatmul.mubr.f32.gmra.mrb[82].mxu1 %v6310_v46  ;;  %5064 = vmatprep.subr.bf16.mxu0 %v5063_v26 }
 0x135   : > { %1258 = vmatprep.mubr.f32.mxu1 %v6041_v44  ;;  %v1560_v44 = vld [vmem:[#allocation6 + $0x468] sm:$0xff] }
 0x136   : > { %4486 = vmatmul.mubr.f32.gmra.mrb[68].mxu0 %v6024_v27  ;;  %v5075_v27 = vpack.c.bf16 %v1558_v37, %v1557_v18  ;;  %v7933_v37 = vld [vmem:[#allocation31_spill] sm:$0xff] }
 0x137   : > { %4488 = vmatprep.mubr.f32.mxu0 %v6028_v34  ;;  %5066 = vmatpush3.bf16.msra.mxu0 %v5063_v26  ;;  %v1559_v34 = vld [vmem:[#allocation6 + $0x460] sm:$0xff]  ;;  %v5404_v26 = vld [vmem:[#allocation2 + $0x70] sm:$0xff] }
 0x138   : > { %1259 = vmatmul.mubr.f32.gmra.mrb[84].mxu1 %v6317_v61  ;;  %5068 = vmatprep.subr.bf16.mxu0 %v5067_v36 }
 0x139   : > { %1263 = vmatprep.mubr.f32.mxu1 %v6044_v45  ;;  %v5079_v45 = vpack.c.bf16 %v1560_v44, %v1559_v34  ;;  %v5408_v34 = vld [vmem:[#allocation2 + $0xb0] sm:$0xff] }
 0x13a   : > { %4489 = vmatmul.mubr.f32.gmra.mrb[70].mxu0 %v6047_v47  ;;  %v1561_v47 = vld [vmem:[#allocation6 + $0x470] sm:$0xff] }
 0x13b   : > { %4491 = vmatprep.mubr.f32.mxu0 %v6052_v49  ;;  %5070 = vmatpush3.bf16.msra.mxu0 %v5067_v36  ;;  %v1562_v49 = vld [vmem:[#allocation6 + $0x478] sm:$0xff]  ;;  %v7929_v36 = vld [vmem:[#allocation27_spill] sm:$0xff] }
 0x13c   : > { %1264 = vmatmul.mubr.f32.gmra.mrb[86].mxu1 %v6323_v62  ;;  %5072 = vmatprep.subr.bf16.mxu0 %v5071_v14  ;;  %v5409_v44 = vld [vmem:[#allocation2 + $0x49] sm:$0xff] }
 0x13d   : > { %1268 = vmatprep.mubr.f32.mxu1 %v6055_v56  ;;  %v5083_v56 = vpack.c.bf16 %v1562_v49, %v1561_v47  ;;  %v5410_v47 = vld [vmem:[#allocation2 + $0xc8] sm:$0xff]  ;;  %v5411_v49 = vld [vmem:[#allocation2 + $0x51] sm:$0xff] }
 0x13e   : > { %4492 = vmatmul.mubr.f32.gmra.mrb[72].mxu0 %v6065_v60  ;;  %v7917_v60 = vld [vmem:[#allocation15_spill] sm:$0xff] }
 0x13f   : > { %4494 = vmatprep.mubr.f32.mxu0 %v6071_v4  ;;  %5074 = vmatpush3.bf16.msra.mxu0 %v5071_v14  ;;  %v7918_v4 = vld [vmem:[#allocation16_spill] sm:$0xff] }
 0x140   : > { %1269 = vmatmul.mubr.f32.gmra.mrb[88].mxu1 %v6329_v38  ;;  %5076 = vmatprep.subr.bf16.mxu0 %v5075_v27 }
 0x141   : > { %1273 = vmatprep.mubr.f32.mxu1 %v6058_v57  ;;  %v7919_v57 = vld [vmem:[#allocation17_spill] sm:$0xff] }
 0x142   : > { %4495 = vmatmul.mubr.f32.gmra.mrb[74].mxu0 %v7915_v58  ;;  %v5412_v58 = vld [vmem:[#allocation2 + $0x69] sm:$0xff] }
 0x143   : > { %4497 = vmatprep.mubr.f32.mxu0 %v7916_v31  ;;  %5078 = vmatpush3.bf16.msra.mxu0 %v5075_v27 }
 0x144   : > { %1274 = vmatmul.mubr.f32.gmra.mrb[90].mxu1 %v6335_v5  ;;  %5080 = vmatprep.subr.bf16.mxu0 %v5079_v45 }
 0x145   : > { %1278 = vmatprep.mubr.f32.mxu1 %v6068_v3  ;;  %v5401_v3 = vld [vmem:[#allocation2 + $0x48] sm:$0xff] }
 0x146   : > { %4498 = vmatmul.mubr.f32.gmra.mrb[76].mxu0 %v7917_v60 }
 0x147   : > { %4500 = vmatprep.mubr.f32.mxu0 %v7918_v4  ;;  %5082 = vmatpush3.bf16.msra.mxu0 %v5079_v45 }
 0x148   : > { %1279 = vmatmul.mubr.f32.gmra.mrb[92].mxu1 %v6341_v6  ;;  %5084 = vmatprep.subr.bf16.mxu0 %v5083_v56 }
 0x149   : > { %1283 = vmatprep.mubr.f32.mxu1 %v6074_v8  ;;  %v7923_v8 = vld [vmem:[#allocation21_spill] sm:$0xff] }
 0x14a   : > { %4501 = vmatmul.mubr.f32.gmra.mrb[78].mxu0 %v7919_v57 }
 0x14b   : > { %4503 = vmatprep.mubr.f32.mxu0 %v7920_v50  ;;  %5086 = vmatpush3.bf16.msra.mxu0 %v5083_v56  ;;  %v5413_v56 = vld [vmem:[#allocation2 + $0xd0] sm:$0xff] }
 0x14c   : > { %1284 = vmatmul.mubr.f32.gmra.mrb[94].mxu1 %v6347_v10  ;;  %5087 = vmatprep.subr.bf16.mxu0 %v7903_v51 }
 0x14d   : > { %1627 = vmatprep.mubr.f32.mxu1 %v5401_v3  ;;  %v5414_v3 = vld [vmem:[#allocation2 + $0x71] sm:$0xff] }
 0x14e   : > { %4504 = vmatmul.mubr.f32.gmra.mrb[80].mxu0 %v7921_v20 }
 0x14f   : > { %4506 = vmatprep.mubr.f32.mxu0 %v7922_v59 }
 0x150   : > { %1628 = vmatmul.mubr.f32.vlgmr.msra.gmra.mrb[96].mxu1 %v6140_v2  ;;  %v7928_v2 = vld [vmem:[#allocation26_spill] sm:$0xff] }
 0x151   : > { %1632 = vmatprep.mubr.f32.mxu1 %v5402_v15  ;;  %v5415_v15 = vld [vmem:[#allocation2 + $0x89] sm:$0xff] }
 0x152   : > { %4507 = vmatmul.mubr.f32.gmra.mrb[82].mxu0 %v7923_v8 }
 0x153   : > { %4509 = vmatprep.mubr.f32.mxu0 %v7924_v22 }
 0x154   : > { %1633 = vmatmul.mubr.f32.gmra.mrb[98].mxu1 %v6151_v41  ;;  %v7930_v41 = vld [vmem:[#allocation28_spill] sm:$0xff] }
 0x155   : > { %1637 = vmatprep.mubr.f32.mxu1 %v5403_v16 }
 0x156   : > { %4510 = vmatmul.mubr.f32.gmra.mrb[84].mxu0 %v7925_v21 }
 0x157   : > { %4512 = vmatprep.mubr.f32.mxu0 %v7926_v54 }
 0x158   : > { %1638 = vmatmul.mubr.f32.gmra.mrb[100].mxu1 %v6162_v1  ;;  %v7932_v1 = vld [vmem:[#allocation30_spill] sm:$0xff] }
 0x159   : > { %1642 = vmatprep.mubr.f32.mxu1 %v5404_v26  ;;  %v5416_v26 = vld [vmem:[#allocation2 + $0xe8] sm:$0xff] }
 0x15a   : > { %4513 = vmatmul.mubr.f32.gmra.mrb[86].mxu0 %v7927_v9 }
 0x15b   : > { %4515 = vmatprep.mubr.f32.mxu0 %v7928_v2 }
 0x15c   : > { %1643 = vmatmul.mubr.f32.gmra.mrb[102].mxu1 %v6173_v12  ;;  %v5407_v12 = vld [vmem:[#allocation2 + $0xa8] sm:$0xff] }
 0x15d   : > { %1647 = vmatprep.mubr.f32.mxu1 %v5405_v13  ;;  %v5417_v13 = vld [vmem:[#allocation2 + $0x91] sm:$0xff] }
 0x15e   : > { %4516 = vmatmul.mubr.f32.gmra.mrb[88].mxu0 %v7929_v36 }
 0x15f   : > { %4518 = vmatprep.mubr.f32.mxu0 %v7930_v41 }
 0x160   : > { %1648 = vmatmul.mubr.f32.gmra.mrb[104].mxu1 %v6184_v63 }
 0x161   : > { %1652 = vmatprep.mubr.f32.mxu1 %v5406_v52  ;;  %v5418_v52 = vld [vmem:[#allocation2 + $0xa9] sm:$0xff] }
 0x162   : > { %4519 = vmatmul.mubr.f32.gmra.mrb[90].mxu0 %v7931_v55 }
 0x163   : > { %4521 = vmatprep.mubr.f32.mxu0 %v7932_v1  ;;  %v6414_v14 = vpop.f32.mrb[0].mxu1 }
 0x164   : > { %1653 = vmatmul.mubr.f32.gmra.mrb[106].mxu1 %v6195_v48  ;;  %v6417_v18 = vpop.f32.mrb[1].mxu1 }
 0x165   : > { %1657 = vmatprep.mubr.f32.mxu1 %v5407_v12 }
 0x166   : > { %4522 = vmatmul.mubr.f32.gmra.mrb[92].mxu0 %v7933_v37 }
 0x167   : > { %4524 = vmatprep.mubr.f32.mxu0 %v6181_v28  ;;  %v6421_v27 = vpop.f32.mrb[2].mxu1 }
 0x168   : > { %1658 = vmatmul.mubr.f32.gmra.mrb[108].mxu1 %v6206_v30  ;;  %v6424_v63 = vpop.f32.mrb[3].mxu1 }
 0x169   : > { %1662 = vmatprep.mubr.f32.mxu1 %v5408_v34  ;;  %v5419_v34 = vld [vmem:[#allocation2 + $0xf0] sm:$0xff] }
 0x16a   : > { %4525 = vmatmul.mubr.f32.gmra.mrb[94].mxu0 %v6188_v40 }
 0x16b   : > { %4559 = vmatprep.mubr.f32.mxu0 %v5409_v44  ;;  %v6427_v48 = vpop.f32.mrb[4].mxu1  ;;  %v5420_v44 = vld [vmem:[#allocation2 + $0xb1] sm:$0xff] }
 0x16c   : > { %1663 = vmatmul.mubr.f32.gmra.mrb[110].mxu1 %v6214_v17  ;;  %v6430_v45 = vpop.f32.mrb[5].mxu1 }
 0x16d   : > { %1667 = vmatprep.mubr.f32.mxu1 %v5410_v47  ;;  %v5421_v47 = vld [vmem:[#allocation2 + $0xc9] sm:$0xff] }
 0x16e   : > { %4560 = vmatmul.mubr.f32.vlgmr.msra.gmra.mrb[96].mxu0 %v5411_v49 }
 0x16f   : > { %4562 = vmatprep.mubr.f32.mxu0 %v5412_v58  ;;  %v6432_v30 = vpop.f32.mrb[6].mxu1  ;;  %v5422_v58 = vld [vmem:[#allocation2 + $0x108] sm:$0xff] }
 0x170   : > { %1668 = vmatmul.mubr.f32.gmra.mrb[112].mxu1 %v6220_v23  ;;  %v6435_v31 = vpop.f32.mrb[7].mxu1 }
 0x171   : > { %1672 = vmatprep.mubr.f32.mxu1 %v5413_v56 }
 0x172   : > { %4563 = vmatmul.mubr.f32.gmra.mrb[98].mxu0 %v5414_v3 }
 0x173   : > { %4565 = vmatprep.mubr.f32.mxu0 %v5415_v15  ;;  %v6437_v17 = vpop.f32.mrb[8].mxu1  ;;  %v5423_v15 = vld [vmem:[#allocation2 + $0x110] sm:$0xff] }
 0x174   : > { %1673 = vmatmul.mubr.f32.gmra.mrb[114].mxu1 %v6226_v7  ;;  %v6440_v16 = vpop.f32.mrb[9].mxu1 }
 0x175   : > { %1677 = vmatprep.mubr.f32.mxu1 %v5416_v26 }
 0x176   : > { %4566 = vmatmul.mubr.f32.gmra.mrb[100].mxu0 %v5417_v13  ;;  %v5424_v13 = vld [vmem:[#allocation2 + $0x128] sm:$0xff] }
 0x177   : > { %4568 = vmatprep.mubr.f32.mxu0 %v5418_v52  ;;  %v6442_v23 = vpop.f32.mrb[10].mxu1 }
 0x178   : > { %1678 = vmatmul.mubr.f32.gmra.mrb[116].mxu1 %v6233_v53  ;;  %v6445_v12 = vpop.f32.mrb[11].mxu1 }
 0x179   : > { %1682 = vmatprep.mubr.f32.mxu1 %v5419_v34 }
 0x17a   : > { %4569 = vmatmul.mubr.f32.gmra.mrb[102].mxu0 %v5420_v44 }
 0x17b   : > { %4571 = vmatprep.mubr.f32.mxu0 %v5421_v47  ;;  %v6447_v7 = vpop.f32.mrb[12].mxu1 }
 0x17c   : > { %1683 = vmatmul.mubr.f32.gmra.mrb[118].mxu1 %v6240_v0  ;;  %v6450_v49 = vpop.f32.mrb[13].mxu1 }
 0x17d   : > { %1687 = vmatprep.mubr.f32.mxu1 %v5422_v58 }
 0x17e   : > { %4572 = vmatmul.mubr.f32.gmra.mrb[104].mxu0 %v7917_v60 }
 0x17f   : > { %4574 = vmatprep.mubr.f32.mxu0 %v7918_v4  ;;  %v6454_v53 = vpop.f32.mrb[14].mxu1 }
 0x180   : > { %1688 = vmatmul.mubr.f32.gmra.mrb[120].mxu1 %v6247_v24  ;;  %v6457_v56 = vpop.f32.mrb[15].mxu1 }
 0x181   : > { %v680_v3 = vpop.f32.mrb[0].mxu0  ;;  %1692 = vmatprep.mubr.f32.mxu1 %v5423_v15 }
 0x182   : > { %v682_v26 = vpop.f32.mrb[1].mxu0  ;;  %4575 = vmatmul.mubr.f32.gmra.mrb[106].mxu0 %v7919_v57  ;;  %v6461_v0 = vadd.f32 %v6417_v18, %v680_v3  ;;  %v5425_v18 = vld [vmem:[#allocation2 + $0x130] sm:$0xff] }
 0x183   : > { %4577 = vmatprep.mubr.f32.mxu0 %v7920_v50  ;;  %v6464_v60 = vpop.f32.mrb[16].mxu1 }
 0x184   : > { %1693 = vmatmul.mubr.f32.gmra.mrb[122].mxu1 %v6254_v25  ;;  %v6467_v4 = vpop.f32.mrb[17].mxu1 }
 0x185   : > { %v685_v24 = vpop.f32.mrb[2].mxu0  ;;  %1697 = vmatprep.mubr.f32.mxu1 %v5424_v13  ;;  %v2337_v13 = vld [vmem:[#allocation8 + $0x280] sm:$0xff] }
 0x186   : > { %v687_v52 = vpop.f32.mrb[3].mxu0  ;;  %4578 = vmatmul.mubr.f32.gmra.mrb[108].mxu0 %v7921_v20  ;;  %v6471_v34 = vadd.f32 %v6414_v14, %v685_v24  ;;  %v5426_v14 = vld [vmem:[#allocation2 + $0x148] sm:$0xff] }
 0x187   : > { %4580 = vmatprep.mubr.f32.mxu0 %v7922_v59  ;;  %v6474_v57 = vpop.f32.mrb[18].mxu1  ;;  %v2338_v52 = vld [vmem:[#allocation8 + $0x288] sm:$0xff] }
 0x188   : > { %1698 = vmatmul.mubr.f32.gmra.mrb[124].mxu1 %v6261_v29  ;;  %v6477_v50 = vpop.f32.mrb[19].mxu1 }
 0x189   : > { %v690_v25 = vpop.f32.mrb[4].mxu0  ;;  %1702 = vmatprep.mubr.f32.mxu1 %v5425_v18  ;;  %v5428_v18 = vld [vmem:[#allocation2 + $0x168] sm:$0xff] }
 0x18a   : > { %v692_v44 = vpop.f32.mrb[5].mxu0  ;;  %4581 = vmatmul.mubr.f32.gmra.mrb[110].mxu0 %v7923_v8  ;;  %v6481_v47 = vadd.f32 %v6424_v63, %v690_v25  ;;  %v5427_v63 = vld [vmem:[#allocation2 + $0x150] sm:$0xff] }
 0x18b   : > { %4583 = vmatprep.mubr.f32.mxu0 %v7924_v22  ;;  %v6484_v20 = vpop.f32.mrb[20].mxu1 }
 0x18c   : > { %1703 = vmatmul.mubr.f32.gmra.mrb[126].mxu1 %v6268_v32  ;;  %v6487_v59 = vpop.f32.mrb[21].mxu1 }
 0x18d   : > { %v695_v29 = vpop.f32.mrb[6].mxu0  ;;  %1707 = vmatprep.mubr.f32.mxu1 %v5426_v14 }
 0x18e   : > { %v697_v58 = vpop.f32.mrb[7].mxu0  ;;  %4584 = vmatmul.mubr.f32.gmra.mrb[112].mxu0 %v7925_v21  ;;  %v6491_v3 = vadd.f32 %v6421_v27, %v695_v29  ;;  %v2305_v21 = vld [vmem:[#allocation8 + $0x180] sm:$0xff]  ;;  %v2306_v27 = vld [vmem:[#allocation8 + $0x188] sm:$0xff]  ;;  %v2308_v29 = vld [vmem:[#allocation8 + $0x198] sm:$0xff] }
 0x18f   : > { %4586 = vmatprep.mubr.f32.mxu0 %v7926_v54  ;;  %v6494_v8 = vpop.f32.mrb[22].mxu1  ;;  %v5088_v54 = vpack.c.bf16 %v2306_v27, %v2305_v21  ;;  %v2310_v21 = vld [vmem:[#allocation8 + $0x1a8] sm:$0xff] }
 0x190   : > { %1708 = vmatmul.mubr.f32.gmra.mrb[128].mxu1 %v6275_v33  ;;  %v6497_v22 = vpop.f32.mrb[23].mxu1 }
 0x191   : > { %v700_v32 = vpop.f32.mrb[8].mxu0  ;;  %1712 = vmatprep.mubr.f32.mxu1 %v5427_v63  ;;  %5089 = vmatpush1.bf16.msra.mxu0 %v5088_v54  ;;  %v5429_v63 = vld [vmem:[#allocation2 + $0x170] sm:$0xff] }
 0x192   : > { %v702_v15 = vpop.f32.mrb[9].mxu0  ;;  %4587 = vmatmul.mubr.f32.gmra.mrb[114].mxu0 %v7927_v9  ;;  %v6501_v26 = vadd.f32 %v6430_v45, %v700_v32  ;;  %v5135_v9 = vpack.c.bf16 %v2338_v52, %v2337_v13  ;;  %5090 = vmatprep.subr.bf16.mxu0 %v7903_v51  ;;  %v5430_v13 = vld [vmem:[#allocation2 + $0x188] sm:$0xff]  ;;  %v2311_v52 = vld [vmem:[#allocation8 + $0x1b0] sm:$0xff] }
 0x193   : > { %v6503_v24 = vpop.f32.mrb[24].mxu1  ;;  %4589 = vmatprep.mubr.f32.mxu0 %v7928_v2  ;;  %v2307_v2 = vld [vmem:[#allocation8 + $0x190] sm:$0xff]  ;;  %v2309_v15 = vld [vmem:[#allocation8 + $0x1a0] sm:$0xff] }
 0x194   : > { %1713 = vmatmul.mubr.f32.gmra.mrb[130].mxu1 %v6282_v35  ;;  %v6507_v33 = vpop.f32.mrb[25].mxu1  ;;  %5136 = vmatprep.subr.bf16.mxu1 %v5135_v9  ;;  %v5091_v14 = vpack.c.bf16 %v2308_v29, %v2307_v2  ;;  %v2313_v2 = vld [vmem:[#allocation8 + $0x1c0] sm:$0xff]  ;;  %v2314_v29 = vld [vmem:[#allocation8 + $0x1c8] sm:$0xff] }
 0x195   : > { %v705_v25 = vpop.f32.mrb[10].mxu0  ;;  %1717 = vmatprep.mubr.f32.mxu1 %v5428_v18  ;;  %5138 = vmatpush3.bf16.msra.mxu1 %v5135_v9 }
 0x196   : > { %v707_v45 = vpop.f32.mrb[11].mxu0  ;;  %4590 = vmatmul.mubr.f32.gmra.mrb[116].mxu0 %v7929_v36  ;;  %v6511_v44 = vadd.f32 %v6427_v48, %v705_v25  ;;  %v2312_v25 = vld [vmem:[#allocation8 + $0x1b8] sm:$0xff] }
 0x197   : > { %v6514_v35 = vpop.f32.mrb[26].mxu1  ;;  %4592 = vmatprep.mubr.f32.mxu0 %v7930_v41  ;;  %5092 = vmatpush1.bf16.msra.mxu0 %v5091_v14  ;;  %v5431_v45 = vld [vmem:[#allocation2 + $0x190] sm:$0xff]  ;;  %v7934_v14 = vld [vmem:[#allocation32_spill] sm:$0xff] }
 0x198   : > { %1718 = vmatmul.mubr.f32.gmra.mrb[132].mxu1 %v6289_v39  ;;  %v6518_v58 = vpop.f32.mrb[27].mxu1  ;;  %v5094_v39 = vpack.c.bf16 %v2310_v21, %v2309_v15  ;;  %5093 = vmatprep.subr.bf16.mxu0 %v7903_v51  ;;  %v515_v15 = vld [vmem:[#allocation2 + $0x229] sm:$0xff] }
 0x199   : > { %v710_v32 = vpop.f32.mrb[12].mxu0  ;;  %1722 = vmatprep.mubr.f32.mxu1 %v5429_v63 }
 0x19a   : > { %v712_v36 = vpop.f32.mrb[13].mxu0  ;;  %4593 = vmatmul.mubr.f32.gmra.mrb[118].mxu0 %v7931_v55  ;;  %v6522_v48 = vadd.f32 %v6435_v31, %v710_v32  ;;  %v2340_v32 = vld [vmem:[#allocation8 + $0x298] sm:$0xff] }
 0x19b   : > { %v6524_v27 = vpop.f32.mrb[28].mxu1  ;;  %4595 = vmatprep.mubr.f32.mxu0 %v7932_v1  ;;  %5095 = vmatpush1.bf16.msra.mxu0 %v5094_v39  ;;  %v5432_v39 = vld [vmem:[#allocation2 + $0x1a8] sm:$0xff] }
 0x19c   : > { %1723 = vmatmul.mubr.f32.gmra.mrb[134].mxu1 %v6296_v42  ;;  %v6528_v41 = vpop.f32.mrb[29].mxu1  ;;  %v5097_v42 = vpack.c.bf16 %v2312_v25, %v2311_v52  ;;  %5096 = vmatprep.subr.bf16.mxu0 %v7903_v51  ;;  %v2316_v52 = vld [vmem:[#allocation8 + $0x1d8] sm:$0xff] }
 0x19d   : > { %v715_v54 = vpop.f32.mrb[14].mxu0  ;;  %1727 = vmatprep.mubr.f32.mxu1 %v5430_v13  ;;  %v7935_v13 = vld [vmem:[#allocation33_spill] sm:$0xff] }
 0x19e   : > { %v717_v55 = vpop.f32.mrb[15].mxu0  ;;  %4596 = vmatmul.mubr.f32.gmra.mrb[120].mxu0 %v7933_v37  ;;  %v6533_v31 = vadd.f32 %v6432_v30, %v715_v54 }
 0x19f   : > { %v6535_v1 = vpop.f32.mrb[30].mxu1  ;;  %4598 = vmatprep.mubr.f32.mxu0 %v6181_v28  ;;  %5098 = vmatpush1.bf16.msra.mxu0 %v5097_v42 }
 0x1a0   : > { %1728 = vmatmul.mubr.f32.gmra.mrb[136].mxu1 %v6303_v43  ;;  %v6539_v18 = vpop.f32.mrb[31].mxu1  ;;  %v2339_v43 = vld [vmem:[#allocation8 + $0x290] sm:$0xff]  ;;  %5099 = vmatprep.subr.bf16.mxu0 %v7903_v51 }
 0x1a1   : > { %v720_v9 = vpop.f32.mrb[16].mxu0  ;;  %1732 = vmatprep.mubr.f32.mxu1 %v5431_v45  ;;  %v5139_v21 = vpack.c.bf16 %v2340_v32, %v2339_v43 }
 0x1a2   : > { %v722_v37 = vpop.f32.mrb[17].mxu0  ;;  %4599 = vmatmul.mubr.f32.gmra.mrb[122].mxu0 %v6188_v40  ;;  %v6544_v30 = vadd.f32 %v6440_v16, %v720_v9  ;;  %v5100_v40 = vpack.c.bf16 %v2314_v29, %v2313_v2  ;;  %v5433_v2 = vld [vmem:[#allocation2 + $0x1b0] sm:$0xff] }
 0x1a3   : > { %v1130_v28 = vpop.f32.mrb[32].mxu1  ;;  %4601 = vmatprep.mubr.f32.mxu0 %v7934_v14  ;;  %5140 = vmatprep.subr.bf16.mxu1 %v5139_v21  ;;  %v2318_v14 = vld [vmem:[#allocation8 + $0x1e8] sm:$0xff] }
 0x1a4   : > { %v6548_v63 = vadd.f32 %v1130_v28, %v6461_v0  ;;  %1733 = vmatmul.mubr.f32.gmra.mrb[138].mxu1 %v6310_v46  ;;  %v1132_v36 = vpop.f32.mrb[33].mxu1  ;;  %v2315_v0 = vld [vmem:[#allocation8 + $0x1d0] sm:$0xff]  ;;  %5101 = vmatpush1.bf16.msra.mxu0 %v5100_v40  ;;  %v2317_v28 = vld [vmem:[#allocation8 + $0x1e0] sm:$0xff] }
 0x1a5   : > { %v725_v16 = vpop.f32.mrb[18].mxu0  ;;  %1737 = vmatprep.mubr.f32.mxu1 %v5432_v39  ;;  %v516_v46 = vld [vmem:[#allocation2 + $0x231] sm:$0xff]  ;;  %5142 = vmatpush3.bf16.msra.mxu1 %v5139_v21  ;;  %v5103_v45 = vpack.c.bf16 %v2316_v52, %v2315_v0  ;;  %v5106_v32 = vpack.c.bf16 %v2318_v14, %v2317_v28  ;;  %v5436_v14 = vld [vmem:[#allocation2 + $0x1e8] sm:$0xff] }
 0x1a6   : > { %v727_v54 = vpop.f32.mrb[19].mxu0  ;;  %4602 = vmatmul.mubr.f32.gmra.mrb[124].mxu0 %v7935_v13  ;;  %v6554_v55 = vadd.f32 %v6437_v17, %v725_v16  ;;  %5102 = vmatprep.subr.bf16.mxu0 %v7903_v51  ;;  %v2319_v40 = vld [vmem:[#allocation8 + $0x1f0] sm:$0xff]  ;;  %v2320_v16 = vld [vmem:[#allocation8 + $0x1f8] sm:$0xff] }
 0x1a7   : > { %v1135_v25 = vpop.f32.mrb[34].mxu1  ;;  %4604 = vmatprep.mubr.f32.mxu0 %v515_v15  ;;  %v5434_v15 = vld [vmem:[#allocation2 + $0x1c8] sm:$0xff]  ;;  %v5109_v54 = vpack.c.bf16 %v2320_v16, %v2319_v40  ;;  %v5435_v0 = vld [vmem:[#allocation2 + $0x1d0] sm:$0xff] }
 0x1a8   : > { %v6557_v42 = vadd.f32 %v1135_v25, %v6471_v34  ;;  %1738 = vmatmul.mubr.f32.gmra.mrb[140].mxu1 %v6317_v61  ;;  %v1137_v9 = vpop.f32.mrb[35].mxu1  ;;  %5104 = vmatpush1.bf16.msra.mxu0 %v5103_v45  ;;  %v2321_v25 = vld [vmem:[#allocation8 + $0x200] sm:$0xff]  ;;  %v5437_v40 = vld [vmem:[#allocation2 + $0x1f0] sm:$0xff] }
 0x1a9   : > { %v730_v37 = vpop.f32.mrb[20].mxu0  ;;  %1742 = vmatprep.mubr.f32.mxu1 %v5433_v2  ;;  %5105 = vmatprep.subr.bf16.mxu0 %v7903_v51  ;;  %v2341_v45 = vld [vmem:[#allocation8 + $0x2a0] sm:$0xff] }
 0x1aa   : > { %v732_v17 = vpop.f32.mrb[21].mxu0  ;;  %4605 = vmatmul.mubr.f32.gmra.mrb[126].mxu0 %v516_v46  ;;  %v6562_v29 = vadd.f32 %v6445_v12, %v730_v37  ;;  %v2322_v46 = vld [vmem:[#allocation8 + $0x208] sm:$0xff] }
 0x1ab   : > { %v1140_v43 = vpop.f32.mrb[36].mxu1  ;;  %v5112_v17 = vpack.c.bf16 %v2322_v46, %v2321_v25  ;;  %v2343_v46 = vld [vmem:[#allocation8 + $0x2b0] sm:$0xff] }
 0x1ac   : > { %v6565_v34 = vadd.f32 %v1140_v43, %v6481_v47  ;;  %1743 = vmatmul.mubr.f32.gmra.mrb[142].mxu1 %v6323_v62  ;;  %v1142_v61 = vpop.f32.mrb[37].mxu1  ;;  %5107 = vmatpush1.bf16.msra.mxu0 %v5106_v32  ;;  %v2324_v32 = vld [vmem:[#allocation8 + $0x218] sm:$0xff] }
 0x1ad   : > { %v735_v36 = vpop.f32.mrb[22].mxu0  ;;  %1747 = vmatprep.mubr.f32.mxu1 %v5434_v15  ;;  %5108 = vmatprep.subr.bf16.mxu0 %v7903_v51  ;;  %v2323_v61 = vld [vmem:[#allocation8 + $0x210] sm:$0xff] }
 0x1ae   : > { %v737_v21 = vpop.f32.mrb[23].mxu0  ;;  %v6570_v12 = vadd.f32 %v6442_v23, %v735_v36  ;;  %v5115_v15 = vpack.c.bf16 %v2324_v32, %v2323_v61  ;;  %v2345_v61 = vld [vmem:[#allocation8 + $0x2c0] sm:$0xff]  ;;  %v2346_v32 = vld [vmem:[#allocation8 + $0x2c8] sm:$0xff] }
 0x1af   : > { %v1145_v39 = vpop.f32.mrb[38].mxu1 }
 0x1b0   : > { %v6573_v47 = vadd.f32 %v1145_v39, %v6491_v3  ;;  %1748 = vmatmul.mubr.f32.gmra.mrb[144].mxu1 %v6329_v38  ;;  %v1147_v62 = vpop.f32.mrb[39].mxu1  ;;  %v2342_v3 = vld [vmem:[#allocation8 + $0x2a8] sm:$0xff]  ;;  %5110 = vmatpush1.bf16.msra.mxu0 %v5109_v54  ;;  %v2325_v39 = vld [vmem:[#allocation8 + $0x220] sm:$0xff] }
 0x1b1   : > { %v740_v13 = vpop.f32.mrb[24].mxu0  ;;  %1752 = vmatprep.mubr.f32.mxu1 %v5435_v0  ;;  %v5143_v2 = vpack.c.bf16 %v2342_v3, %v2341_v45  ;;  %5111 = vmatprep.subr.bf16.mxu0 %v7903_v51  ;;  %v2326_v62 = vld [vmem:[#allocation8 + $0x228] sm:$0xff]  ;;  %v2327_v45 = vld [vmem:[#allocation8 + $0x230] sm:$0xff] }
 0x1b2   : > { %v742_v52 = vpop.f32.mrb[25].mxu0  ;;  %v6578_v23 = vadd.f32 %v6450_v49, %v740_v13  ;;  %v5118_v13 = vpack.c.bf16 %v2326_v62, %v2325_v39  ;;  %v443_v39 = vld [vmem:[#allocation2 + $0x227] sm:$0xff] }
 0x1b3   : > { %v1150_v9 = vpop.f32.mrb[40].mxu1  ;;  %5144 = vmatprep.subr.bf16.mxu1 %v5143_v2  ;;  %v5438_v52 = vld [vmem:[#allocation2 + $0x208] sm:$0xff] }
 0x1b4   : > { %v6581_v37 = vadd.f32 %v1150_v9, %v6501_v26  ;;  %1753 = vmatmul.mubr.f32.gmra.mrb[146].mxu1 %v6335_v5  ;;  %v1152_v38 = vpop.f32.mrb[41].mxu1  ;;  %5113 = vmatpush1.bf16.msra.mxu0 %v5112_v17  ;;  %v2344_v9 = vld [vmem:[#allocation8 + $0x2b8] sm:$0xff] }
 0x1b5   : > { %v745_v28 = vpop.f32.mrb[26].mxu0  ;;  %1757 = vmatprep.mubr.f32.mxu1 %v5436_v14  ;;  %5146 = vmatpush3.bf16.msra.mxu1 %v5143_v2  ;;  %v2328_v38 = vld [vmem:[#allocation8 + $0x238] sm:$0xff]  ;;  %v5439_v14 = vld [vmem:[#allocation2 + $0x210] sm:$0xff] }
 0x1b6   : > { %v747_v49 = vpop.f32.mrb[27].mxu0  ;;  %v6586_v43 = vadd.f32 %v6447_v7, %v745_v28  ;;  %5114 = vmatprep.subr.bf16.mxu0 %v7903_v51  ;;  %v5121_v17 = vpack.c.bf16 %v2328_v38, %v2327_v45  ;;  %v2349_v38 = vld [vmem:[#allocation8 + $0x2e0] sm:$0xff] }
 0x1b7   : > { %v1155_v26 = vpop.f32.mrb[42].mxu1 }
 0x1b8   : > { %v6589_v5 = vadd.f32 %v1155_v26, %v6511_v44  ;;  %1758 = vmatmul.mubr.f32.gmra.mrb[148].mxu1 %v6341_v6  ;;  %v1157_v36 = vpop.f32.mrb[43].mxu1  ;;  %5116 = vmatpush1.bf16.msra.mxu0 %v5115_v15  ;;  %v2329_v26 = vld [vmem:[#allocation8 + $0x240] sm:$0xff] }
 0x1b9   : > { %v750_v21 = vpop.f32.mrb[28].mxu0  ;;  %1762 = vmatprep.mubr.f32.mxu1 %v5437_v40  ;;  %5117 = vmatprep.subr.bf16.mxu0 %v7903_v51  ;;  %v5151_v36 = vpack.c.bf16 %v2346_v32, %v2345_v61 }
 0x1ba   : > { %v752_v7 = vpop.f32.mrb[29].mxu0  ;;  %v6594_v16 = vadd.f32 %v6457_v56, %v750_v21 }
 0x1bb   : > { %v1160_v54 = vpop.f32.mrb[44].mxu1 }
 0x1bc   : > { %v6597_v44 = vadd.f32 %v1160_v54, %v6522_v48  ;;  %1763 = vmatmul.mubr.f32.gmra.mrb[150].mxu1 %v6347_v10  ;;  %v1162_v6 = vpop.f32.mrb[45].mxu1  ;;  %v5147_v48 = vpack.c.bf16 %v2344_v9, %v2343_v46  ;;  %5119 = vmatpush1.bf16.msra.mxu0 %v5118_v13  ;;  %v2348_v13 = vld [vmem:[#allocation8 + $0x2d8] sm:$0xff] }
 0x1bd   : > { %v755_v0 = vpop.f32.mrb[30].mxu0  ;;  %1767 = vmatprep.mubr.f32.mxu1 %v5438_v52  ;;  %5120 = vmatprep.subr.bf16.mxu0 %v7903_v51  ;;  %v2347_v6 = vld [vmem:[#allocation8 + $0x2d0] sm:$0xff]  ;;  %v2332_v52 = vld [vmem:[#allocation8 + $0x258] sm:$0xff] }
 0x1be   : > { %v757_v25 = vpop.f32.mrb[31].mxu0  ;;  %v6602_v56 = vadd.f32 %v6454_v53, %v755_v0  ;;  %5148 = vmatprep.subr.bf16.mxu1 %v5147_v48 }
 0x1bf   : > { %v1165_v3 = vpop.f32.mrb[46].mxu1  ;;  %5150 = vmatpush3.bf16.msra.mxu1 %v5147_v48 }
 0x1c0   : > { %v6605_v10 = vadd.f32 %v1165_v3, %v6533_v31  ;;  %1768 = vmatmul.mubr.f32.gmra.mrb[152].mxu1 %v6353_v11  ;;  %v1167_v2 = vpop.f32.mrb[47].mxu1  ;;  %v2330_v11 = vld [vmem:[#allocation8 + $0x248] sm:$0xff]  ;;  %5122 = vmatpush1.bf16.msra.mxu0 %v5121_v17  ;;  %v2333_v17 = vld [vmem:[#allocation8 + $0x260] sm:$0xff] }
 0x1c1   : > { %v760_v28 = vpop.f32.mrb[32].mxu0  ;;  %1772 = vmatprep.mubr.f32.mxu1 %v5439_v14  ;;  %v5124_v40 = vpack.c.bf16 %v2330_v11, %v2329_v26  ;;  %5123 = vmatprep.subr.bf16.mxu0 %v7903_v51  ;;  %v2350_v2 = vld [vmem:[#allocation8 + $0x2e8] sm:$0xff]  ;;  %v2352_v11 = vld [vmem:[#allocation8 + $0x2f8] sm:$0xff] }
 0x1c2   : > { %v6610_v53 = vadd.f32 %v6467_v4, %v760_v28  ;;  %v762_v49 = vpop.f32.mrb[33].mxu0  ;;  %v5440_v4 = vld [vmem:[#allocation2] sm:$0xff]  ;;  %5152 = vmatprep.subr.bf16.mxu1 %v5151_v36  ;;  %v2334_v14 = vld [vmem:[#allocation8 + $0x268] sm:$0xff] }
 0x1c3   : > { %v1170_v31 = vpop.f32.mrb[48].mxu1  ;;  %5154 = vmatpush3.bf16.msra.mxu1 %v5151_v36  ;;  %v5130_v32 = vpack.c.bf16 %v2334_v14, %v2333_v17  ;;  %v2351_v36 = vld [vmem:[#allocation8 + $0x2f0] sm:$0xff]  ;;  %v2289_v17 = vld [vmem:[#allocation8 + $0x108] sm:$0xff] }
 0x1c4   : > { %v6613_v15 = vadd.f32 %v1170_v31, %v6544_v30  ;;  %1773 = vmatmul.mubr.f32.gmra.mrb[154].mxu1 %v6359_v19  ;;  %v1172_v21 = vpop.f32.mrb[49].mxu1  ;;  %v2331_v30 = vld [vmem:[#allocation8 + $0x250] sm:$0xff]  ;;  %v5155_v19 = vpack.c.bf16 %v2348_v13, %v2347_v6  ;;  %5125 = vmatpush1.bf16.msra.mxu0 %v5124_v40 }
 0x1c5   : > { %v765_v7 = vpop.f32.mrb[34].mxu0  ;;  %1777 = vmatprep.mubr.f32.mxu1 %v5440_v4  ;;  %v5127_v9 = vpack.c.bf16 %v2332_v52, %v2331_v30  ;;  %5126 = vmatprep.subr.bf16.mxu0 %v7903_v51  ;;  %v2335_v21 = vld [vmem:[#allocation8 + $0x270] sm:$0xff] }
 0x1c6   : > { %v6618_v62 = vadd.f32 %v6464_v60, %v765_v7  ;;  %v767_v54 = vpop.f32.mrb[35].mxu0  ;;  %v444_v60 = vld [vmem:[#allocation2 + $0x22f] sm:$0xff]  ;;  %5156 = vmatprep.subr.bf16.mxu1 %v5155_v19  ;;  %v5163_v7 = vpack.c.bf16 %v2352_v11, %v2351_v36 }
 0x1c7   : > { %v1175_v0 = vpop.f32.mrb[50].mxu1  ;;  %5158 = vmatpush3.bf16.msra.mxu1 %v5155_v19 }
 0x1c8   : > { %v6621_v25 = vadd.f32 %v1175_v0, %v6554_v55  ;;  %1778 = vmatmul.mubr.f32.gmra.mrb[156].mxu1 %v443_v39  ;;  %v1177_v46 = vpop.f32.mrb[51].mxu1  ;;  %v5159_v55 = vpack.c.bf16 %v2350_v2, %v2349_v38  ;;  %5128 = vmatpush1.bf16.msra.mxu0 %v5127_v9 }
 0x1c9   : > { %v770_v45 = vpop.f32.mrb[36].mxu0  ;;  %1782 = vmatprep.mubr.f32.mxu1 %v5440_v4  ;;  %5129 = vmatprep.subr.bf16.mxu0 %v7903_v51 }
 0x1ca   : > { %v6625_v3 = vadd.f32 %v6477_v50, %v770_v45  ;;  %v772_v48 = vpop.f32.mrb[37].mxu0  ;;  %5160 = vmatprep.subr.bf16.mxu1 %v5159_v55 }
 0x1cb   : > { %v1180_v28 = vpop.f32.mrb[52].mxu1  ;;  %5162 = vmatpush3.bf16.msra.mxu1 %v5159_v55 }
 0x1cc   : > { %v6628_v49 = vadd.f32 %v1180_v28, %v6562_v29  ;;  %1783 = vmatmul.mubr.f32.gmra.mrb[158].mxu1 %v444_v60  ;;  %v1182_v61 = vpop.f32.mrb[53].mxu1  ;;  %v2336_v29 = vld [vmem:[#allocation8 + $0x278] sm:$0xff]  ;;  %5131 = vmatpush1.bf16.msra.mxu0 %v5130_v32 }
 0x1cd   : > { %v775_v26 = vpop.f32.mrb[38].mxu0  ;;  %v5133_v54 = vpack.c.bf16 %v2336_v29, %v2335_v21  ;;  %5132 = vmatprep.subr.bf16.mxu0 %v7903_v51  ;;  %5164 = vmatprep.subr.bf16.mxu1 %v5163_v7 }
 0x1ce   : > { %v6632_v50 = vadd.f32 %v6474_v57, %v775_v26  ;;  %v777_v31 = vpop.f32.mrb[39].mxu0 }
 0x1cf   : > { %v1185_v40 = vpop.f32.mrb[54].mxu1  ;;  %5166 = vmatpush3.bf16.msra.mxu1 %v5163_v7 }
 0x1d0   : > { %v6635_v4 = vadd.f32 %v1185_v40, %v6570_v12  ;;  %v1187_v39 = vpop.f32.mrb[55].mxu1  ;;  %5134 = vmatpush1.bf16.msra.mxu0 %v5133_v54  ;;  %5167 = vmatprep.subr.bf16.mxu1 %v7903_v51 }
 0x1d1   : > { %v780_v6 = vpop.f32.mrb[40].mxu0 }
 0x1d2   : > { %v1006_v57 = vadd.f32 %v6487_v59, %v780_v6  ;;  %v782_v13 = vpop.f32.mrb[41].mxu0 }
 0x1d3   : > { %v1190_v30 = vpop.f32.mrb[56].mxu1 }
 0x1d4   : > { %v6640_v0 = vadd.f32 %v1190_v30, %v6578_v23  ;;  %v1192_v19 = vpop.f32.mrb[57].mxu1  ;;  %v2288_v23 = vld [vmem:[#allocation8 + $0x100] sm:$0xff] }
 0x1d5   : > { %v785_v12 = vpop.f32.mrb[42].mxu0  ;;  %v6651_v14 = vpack.c.bf16 %v2289_v17, %v2288_v23 }
 0x1d6   : > { %v1011_v52 = vadd.f32 %v6484_v20, %v785_v12  ;;  %v787_v46 = vpop.f32.mrb[43].mxu0 }
 0x1d7   : > { %v1195_v9 = vpop.f32.mrb[58].mxu1  ;;  %5216 = vmatprep.subr.bf16.mxu0 %v6651_v14 }
 0x1d8   : > { %v6645_v45 = vadd.f32 %v1195_v9, %v6586_v43  ;;  %v1197_v60 = vpop.f32.mrb[59].mxu1 }
 0x1d9   : > { %v790_v59 = vpop.f32.mrb[44].mxu0 }
 0x1da   : > { %v1016_v48 = vadd.f32 %v6497_v22, %v790_v59  ;;  %v792_v38 = vpop.f32.mrb[45].mxu0 }
 0x1db   : > { %v1200_v2 = vpop.f32.mrb[60].mxu1 }
 0x1dc   : > { %v6649_v28 = vadd.f32 %v1200_v2, %v6594_v16  ;;  %v1202_v55 = vpop.f32.mrb[61].mxu1 }
 0x1dd   : > { %v795_v20 = vpop.f32.mrb[46].mxu0 }
 0x1de   : > { %v1021_v61 = vadd.f32 %v6494_v8, %v795_v20  ;;  %v797_v32 = vpop.f32.mrb[47].mxu0 }
 0x1df   : > { %v1205_v43 = vpop.f32.mrb[62].mxu1 }
 0x1e0   : > { %v6656_v26 = vadd.f32 %v1205_v43, %v6602_v56  ;;  %v1207_v22 = vpop.f32.mrb[63].mxu1 }
 0x1e1   : > { %v800_v31 = vpop.f32.mrb[48].mxu0 }
 0x1e2   : > { %v1026_v36 = vadd.f32 %v6507_v33, %v800_v31  ;;  %v802_v11 = vpop.f32.mrb[49].mxu0 }
 0x1e3   : > { %v1210_v16 = vpop.f32.mrb[64].mxu1 }
 0x1e4   : > { %v6660_v21 = vadd.f32 %v1210_v16, %v6610_v53  ;;  %v1212_v40 = vpop.f32.mrb[65].mxu1 }
 0x1e5   : > { %v805_v7 = vpop.f32.mrb[50].mxu0 }
 0x1e6   : > { %v1031_v8 = vadd.f32 %v6503_v24, %v805_v7  ;;  %v807_v29 = vpop.f32.mrb[51].mxu0 }
 0x1e7   : > { %v1215_v39 = vpop.f32.mrb[66].mxu1 }
 0x1e8   : > { %v6664_v54 = vadd.f32 %v1215_v39, %v6618_v62  ;;  %v1217_v56 = vpop.f32.mrb[67].mxu1 }
 0x1e9   : > { %v810_v6 = vpop.f32.mrb[52].mxu0 }
 0x1ea   : > { %v1036_v13 = vadd.f32 %v6518_v58, %v810_v6  ;;  %v812_v30 = vpop.f32.mrb[53].mxu0 }
 0x1eb   : > { %v1220_v33 = vpop.f32.mrb[68].mxu1 }
 0x1ec   : > { %v6668_v19 = vadd.f32 %v1220_v33, %v6625_v3  ;;  %v1222_v53 = vpop.f32.mrb[69].mxu1 }
 0x1ed   : > { %v815_v12 = vpop.f32.mrb[54].mxu0 }
 0x1ee   : > { %v1041_v46 = vadd.f32 %v6514_v35, %v815_v12  ;;  %v817_v9 = vpop.f32.mrb[55].mxu0 }
 0x1ef   : > { %v1225_v24 = vpop.f32.mrb[70].mxu1 }
 0x1f0   : > { %v6672_v60 = vadd.f32 %v1225_v24, %v6632_v50  ;;  %v1227_v62 = vpop.f32.mrb[71].mxu1 }
 0x1f1   : > { %v820_v59 = vpop.f32.mrb[56].mxu0 }
 0x1f2   : > { %v1046_v38 = vadd.f32 %v6528_v41, %v820_v59  ;;  %v822_v2 = vpop.f32.mrb[57].mxu0 }
 0x1f3   : > { %v1230_v58 = vpop.f32.mrb[72].mxu1 }
 0x1f4   : > { %v6675_v23 = vadd.f32 %v1230_v58, %v1006_v57  ;;  %v1232_v17 = vpop.f32.mrb[73].mxu1 }
 0x1f5   : > { %v825_v3 = vpop.f32.mrb[58].mxu0 }
 0x1f6   : > { %v1051_v55 = vadd.f32 %v6524_v27, %v825_v3  ;;  %v827_v20 = vpop.f32.mrb[59].mxu0 }
 0x1f7   : > { %v1235_v32 = vpop.f32.mrb[74].mxu1 }
 0x1f8   : > { %v6678_v35 = vadd.f32 %v1235_v32, %v1011_v52  ;;  %v1237_v43 = vpop.f32.mrb[75].mxu1 }
 0x1f9   : > { %v830_v22 = vpop.f32.mrb[60].mxu0 }
 0x1fa   : > { %v1056_v50 = vadd.f32 %v6539_v18, %v830_v22  ;;  %v832_v31 = vpop.f32.mrb[61].mxu0 }
 0x1fb   : > { %v1240_v11 = vpop.f32.mrb[76].mxu1 }
 0x1fc   : > { %v6681_v16 = vadd.f32 %v1240_v11, %v1016_v48  ;;  %v1242_v41 = vpop.f32.mrb[77].mxu1 }
 0x1fd   : > { %v835_v40 = vpop.f32.mrb[62].mxu0 }
 0x1fe   : > { %v1061_v57 = vadd.f32 %v6535_v1, %v835_v40  ;;  %v837_v7 = vpop.f32.mrb[63].mxu0 }
 0x1ff   : > { %v1245_v29 = vpop.f32.mrb[78].mxu1 }
 0x200   : > { %v6684_v39 = vadd.f32 %v1245_v29, %v1021_v61  ;;  %v1247_v27 = vpop.f32.mrb[79].mxu1 }
 0x201   : > { %v4481_v56 = vpop.f32.mrb[64].mxu0 }
 0x202   : > { %v6687_v52 = vadd.f32 %v4481_v56, %v6557_v42  ;;  %v1355_v6 = vpop.f32.mrb[65].mxu0 }
 0x203   : > { %v1250_v30 = vpop.f32.mrb[80].mxu1  ;;  %v6690_v18 = vadd.f32 %v1355_v6, %v6548_v63 }
 0x204   : > { %v6692_v48 = vadd.f32 %v1250_v30, %v1026_v36  ;;  %v1252_v33 = vpop.f32.mrb[81].mxu1 }
 0x205   : > { %v4484_v53 = vpop.f32.mrb[66].mxu0 }
 0x206   : > { %v6695_v1 = vadd.f32 %v4484_v53, %v6573_v47  ;;  %v1365_v12 = vpop.f32.mrb[67].mxu0 }
 0x207   : > { %v1255_v61 = vpop.f32.mrb[82].mxu1  ;;  %v6698_v9 = vadd.f32 %v1365_v12, %v6565_v34 }
 0x208   : > { %v6700_v24 = vadd.f32 %v1255_v61, %v1031_v8  ;;  %v1257_v42 = vpop.f32.mrb[83].mxu1 }
 0x209   : > { %v4487_v62 = vpop.f32.mrb[68].mxu0 }
 0x20a   : > { %v6703_v59 = vadd.f32 %v4487_v62, %v6589_v5  ;;  %v1375_v63 = vpop.f32.mrb[69].mxu0 }
 0x20b   : > { %v1260_v36 = vpop.f32.mrb[84].mxu1  ;;  %v6706_v2 = vadd.f32 %v1375_v63, %v6581_v37 }
 0x20c   : > { %v6708_v58 = vadd.f32 %v1260_v36, %v1036_v13  ;;  %v1262_v47 = vpop.f32.mrb[85].mxu1 }
 0x20d   : > { %v4490_v17 = vpop.f32.mrb[70].mxu0 }
 0x20e   : > { %v6711_v3 = vadd.f32 %v4490_v17, %v6605_v10  ;;  %v1385_v34 = vpop.f32.mrb[71].mxu0 }
 0x20f   : > { %v1265_v8 = vpop.f32.mrb[86].mxu1  ;;  %v6714_v20 = vadd.f32 %v1385_v34, %v6597_v44 }
 0x210   : > { %v1266_v32 = vadd.f32 %v1265_v8, %v1041_v46  ;;  %v1267_v5 = vpop.f32.mrb[87].mxu1 }
 0x211   : > { %v4493_v43 = vpop.f32.mrb[72].mxu0 }
 0x212   : > { %v6717_v22 = vadd.f32 %v4493_v43, %v6621_v25  ;;  %v1395_v37 = vpop.f32.mrb[73].mxu0 }
 0x213   : > { %v1270_v31 = vpop.f32.mrb[88].mxu1  ;;  %v6720_v13 = vadd.f32 %v1395_v37, %v6613_v15 }
 0x214   : > { %v1271_v11 = vadd.f32 %v1270_v31, %v1046_v38  ;;  %v1272_v41 = vpop.f32.mrb[89].mxu1 }
 0x215   : > { %v4496_v10 = vpop.f32.mrb[74].mxu0 }
 0x216   : > { %v6723_v40 = vadd.f32 %v4496_v10, %v6635_v4  ;;  %v1405_v7 = vpop.f32.mrb[75].mxu0 }
 0x217   : > { %v1275_v44 = vpop.f32.mrb[90].mxu1  ;;  %v6726_v46 = vadd.f32 %v1405_v7, %v6628_v49 }
 0x218   : > { %v1276_v29 = vadd.f32 %v1275_v44, %v1051_v55  ;;  %v1277_v27 = vpop.f32.mrb[91].mxu1 }
 0x219   : > { %v4499_v25 = vpop.f32.mrb[76].mxu0 }
 0x21a   : > { %v6729_v56 = vadd.f32 %v4499_v25, %v6645_v45  ;;  %v1415_v6 = vpop.f32.mrb[77].mxu0 }
 0x21b   : > { %v1280_v15 = vpop.f32.mrb[92].mxu1  ;;  %v6732_v38 = vadd.f32 %v1415_v6, %v6640_v0 }
 0x21c   : > { %v1281_v30 = vadd.f32 %v1280_v15, %v1056_v50  ;;  %v1282_v33 = vpop.f32.mrb[93].mxu1 }
 0x21d   : > { %v4502_v4 = vpop.f32.mrb[78].mxu0 }
 0x21e   : > { %v6735_v53 = vadd.f32 %v4502_v4, %v6656_v26  ;;  %v1425_v12 = vpop.f32.mrb[79].mxu0 }
 0x21f   : > { %v1285_v49 = vpop.f32.mrb[94].mxu1  ;;  %v6738_v55 = vadd.f32 %v1425_v12, %v6649_v28 }
 0x220   : > { %v1286_v61 = vadd.f32 %v1285_v49, %v1061_v57  ;;  %v1287_v42 = vpop.f32.mrb[95].mxu1 }
 0x221   : > { %v4505_v45 = vpop.f32.mrb[80].mxu0 }
 0x222   : > { %v6741_v62 = vadd.f32 %v4505_v45, %v6664_v54  ;;  %v1435_v63 = vpop.f32.mrb[81].mxu0 }
 0x223   : > { %v6744_v0 = vadd.f32 %v1435_v63, %v6660_v21  ;;  %v1629_v50 = vpop.f32.mrb[96].mxu1 }
 0x224   : > { %v1631_v36 = vpop.f32.mrb[97].mxu1 }
 0x225   : > { %v4508_v47 = vpop.f32.mrb[82].mxu0 }
 0x226   : > { %v6747_v26 = vadd.f32 %v4508_v47, %v6672_v60  ;;  %v1445_v17 = vpop.f32.mrb[83].mxu0 }
 0x227   : > { %v6750_v28 = vadd.f32 %v1445_v17, %v6668_v19  ;;  %v1634_v57 = vpop.f32.mrb[98].mxu1 }
 0x228   : > { %v1636_v34 = vpop.f32.mrb[99].mxu1 }
 0x229   : > { %v4511_v8 = vpop.f32.mrb[84].mxu0 }
 0x22a   : > { %v6753_v54 = vadd.f32 %v4511_v8, %v6678_v35  ;;  %v1455_v5 = vpop.f32.mrb[85].mxu0 }
 0x22b   : > { %v6756_v21 = vadd.f32 %v1455_v5, %v6675_v23  ;;  %v1639_v43 = vpop.f32.mrb[100].mxu1 }
 0x22c   : > { %v1641_v37 = vpop.f32.mrb[101].mxu1 }
 0x22d   : > { %v4514_v31 = vpop.f32.mrb[86].mxu0 }
 0x22e   : > { %v6759_v60 = vadd.f32 %v4514_v31, %v6684_v39  ;;  %v1465_v41 = vpop.f32.mrb[87].mxu0 }
 0x22f   : > { %v6762_v19 = vadd.f32 %v1465_v41, %v6681_v16  ;;  %v1644_v10 = vpop.f32.mrb[102].mxu1 }
 0x230   : > { %v1646_v7 = vpop.f32.mrb[103].mxu1 }
 0x231   : > { %v4517_v44 = vpop.f32.mrb[88].mxu0 }
 0x232   : > { %v6765_v35 = vadd.f32 %v4517_v44, %v6700_v24  ;;  %v1475_v27 = vpop.f32.mrb[89].mxu0 }
 0x233   : > { %v6768_v23 = vadd.f32 %v1475_v27, %v6692_v48  ;;  %v1649_v25 = vpop.f32.mrb[104].mxu1 }
 0x234   : > { %v1651_v6 = vpop.f32.mrb[105].mxu1 }
 0x235   : > { %v4520_v15 = vpop.f32.mrb[90].mxu0 }
 0x236   : > { %v6770_v33 = vadd.f32 %v4520_v15, %v1266_v32  ;;  %v1485_v39 = vpop.f32.mrb[91].mxu0 }
 0x237   : > { %v6773_v4 = vadd.f32 %v1485_v39, %v6708_v58  ;;  %v1654_v16 = vpop.f32.mrb[106].mxu1 }
 0x238   : > { %v1656_v12 = vpop.f32.mrb[107].mxu1 }
 0x239   : > { %v4523_v49 = vpop.f32.mrb[92].mxu0 }
 0x23a   : > { %v6775_v42 = vadd.f32 %v4523_v49, %v1276_v29  ;;  %v1495_v24 = vpop.f32.mrb[93].mxu0  ;;  %v6786_v29 = vld [vmem:[%s7780_s2] ss:$0 sm:$0xff] }
 0x23b   : > { %v6777_v45 = vadd.f32 %v1495_v24, %v1271_v11  ;;  %v1659_v63 = vpop.f32.mrb[108].mxu1 }
 0x23c   : > { %v1661_v48 = vpop.f32.mrb[109].mxu1 }
 0x23d   : > { %v4526_v36 = vpop.f32.mrb[94].mxu0 }
 0x23e   : > { %v6779_v47 = vadd.f32 %v4526_v36, %v1286_v61  ;;  %v1505_v17 = vpop.f32.mrb[95].mxu0 }
 0x23f   : > { %v6781_v32 = vadd.f32 %v1505_v17, %v1281_v30  ;;  %v1664_v34 = vpop.f32.mrb[110].mxu1 }
 0x240   : > { %v1666_v8 = vpop.f32.mrb[111].mxu1 }
 0x241   : > { %v4561_v58 = vpop.f32.mrb[96].mxu0 }
 0x242   : > { %v1860_v5 = vadd.f32 %v4561_v58, %v1634_v57  ;;  %v1854_v37 = vpop.f32.mrb[97].mxu0 }
 0x243   : > { %v1855_v11 = vadd.f32 %v1854_v37, %v1629_v50  ;;  %v1669_v31 = vpop.f32.mrb[112].mxu1 }
 0x244   : > { %v2014_v41 = vadd.f32 %v1860_v5, %v6687_v52  ;;  %v1671_v7 = vpop.f32.mrb[113].mxu1 }
 0x245   : > { %v2013_v61 = vadd.f32 %v1855_v11, %v6690_v18  ;;  %v4564_v44 = vpop.f32.mrb[98].mxu0  ;;  %v2256_v7 = vld [vmem:[#allocation8] sm:$0xff] }
 0x246   : > { %v2053_v30 = vadd.f32 %v6786_v29, %v2014_v41  ;;  %v1870_v27 = vadd.f32 %v4564_v44, %v1644_v10  ;;  %v1864_v6 = vpop.f32.mrb[99].mxu0 }
 0x247   : > { %v2052_v57 = vadd.f32 %v6786_v29, %v2013_v61  ;;  %v1865_v15 = vadd.f32 %v1864_v6, %v1639_v43  ;;  %v1674_v39 = vpop.f32.mrb[114].mxu1  ;;  %v2257_v61 = vld [vmem:[#allocation8 + $0x8] sm:$0xff]  ;;  %v2291_v6 = vld [vmem:[#allocation8 + $0x118] sm:$0xff] }
 0x248   : > { %v6792_v12 = vmax.f32 %v2053_v30, 0.0  ;;  %v2016_v49 = vadd.f32 %v1870_v27, %v6695_v1  ;;  %v1676_v50 = vpop.f32.mrb[115].mxu1  ;;  %v2290_v27 = vld [vmem:[#allocation8 + $0x110] sm:$0xff] }
 0x249   : > { %v6795_v24 = vmax.f32 %v2052_v57, 0.0  ;;  %v2015_v52 = vadd.f32 %v1865_v15, %v6698_v9  ;;  %v4567_v48 = vpop.f32.mrb[100].mxu0 }
 0x24a   : > { %2117 = vst [vmem:[#allocation2 + $0x30] sm:$0xff] %v6792_v12  ;;  %v6800_v18 = vadd.f32 %v6786_v29, %v2016_v49  ;;  %v1880_v10 = vadd.f32 %v4567_v48, %v1654_v16  ;;  %v1874_v36 = vpop.f32.mrb[101].mxu0  ;;  %v2258_v48 = vld [vmem:[#allocation8 + $0x10] sm:$0xff] }
 0x24b   : > { %2116 = vst [vmem:[#allocation2 + $0x28] sm:$0xff] %v6795_v24  ;;  %v2054_v43 = vadd.f32 %v6786_v29, %v2015_v52  ;;  %v1875_v17 = vadd.f32 %v1874_v36, %v1649_v25  ;;  %v6804_v8 = vpop.f32.mrb[116].mxu1  ;;  %2417 = vmatprep.mubr.f32.mxu0 %v6795_v24  ;;  %v5168_v52 = vpack.c.bf16 %v2257_v61, %v2256_v7 }
 0x24c   : > { %v2087_v1 = vmax.f32 %v6800_v18, 0.0  ;;  %v2018_v9 = vadd.f32 %v1880_v10, %v6703_v59  ;;  %v1681_v58 = vpop.f32.mrb[117].mxu1  ;;  %v2265_v18 = vld [vmem:[#allocation8 + $0x48] sm:$0xff] }
 0x24d   : > { %v6809_v5 = vmax.f32 %v2054_v43, 0.0  ;;  %v2017_v37 = vadd.f32 %v1875_v17, %v6706_v2  ;;  %v4570_v16 = vpop.f32.mrb[102].mxu0 }
 0x24e   : > { %2119 = vst [vmem:[#allocation2 + $0x50] sm:$0xff] %v2087_v1  ;;  %v6815_v11 = vadd.f32 %v6786_v29, %v2018_v9  ;;  %v1890_v25 = vadd.f32 %v4570_v16, %v1664_v34  ;;  %v1884_v41 = vpop.f32.mrb[103].mxu0  ;;  %v5219_v9 = vpack.c.bf16 %v2291_v6, %v2290_v27  ;;  %v2260_v6 = vld [vmem:[#allocation8 + $0x20] sm:$0xff] }
 0x24f   : > { %2118 = vst [vmem:[#allocation2 + $0x48] sm:$0xff] %v6809_v5  ;;  %v2056_v59 = vadd.f32 %v6786_v29, %v2017_v37  ;;  %v1885_v44 = vadd.f32 %v1884_v41, %v1659_v63  ;;  %v1684_v30 = vpop.f32.mrb[118].mxu1  ;;  %v2293_v41 = vld [vmem:[#allocation8 + $0x128] sm:$0xff] }
 0x250   : > { %v2089_v2 = vmax.f32 %v6815_v11, 0.0  ;;  %v2020_v57 = vadd.f32 %v1890_v25, %v6711_v3  ;;  %v1686_v15 = vpop.f32.mrb[119].mxu1  ;;  %v2259_v3 = vld [vmem:[#allocation8 + $0x18] sm:$0xff]  ;;  %v2292_v25 = vld [vmem:[#allocation8 + $0x120] sm:$0xff]  ;;  %v2269_v11 = vld [vmem:[#allocation8 + $0x68] sm:$0xff] }
 0x251   : > { %v6821_v49 = vmax.f32 %v2056_v59, 0.0  ;;  %v2019_v34 = vadd.f32 %v1885_v44, %v6714_v20  ;;  %v4573_v50 = vpop.f32.mrb[104].mxu0  ;;  %v2223_v37 = vld [vmem:[#allocation2 + $0x31] sm:$0xff]  ;;  %v5171_v27 = vpack.c.bf16 %v2259_v3, %v2258_v48 }
 0x252   : > { %2121 = vst [vmem:[#allocation2 + $0x70] sm:$0xff] %v2089_v2  ;;  %v2059_v63 = vadd.f32 %v6786_v29, %v2020_v57  ;;  %v1900_v10 = vadd.f32 %v4573_v50, %v1674_v39  ;;  %v1894_v36 = vpop.f32.mrb[105].mxu0  ;;  %v2222_v43 = vld [vmem:[#allocation2 + $0x29] sm:$0xff] }
 0x253   : > { %v6827_v17 = vld [vmem:[#allocation2 + $0x27] sm:$0xff]  ;;  %2120 = vst [vmem:[#allocation2 + $0x68] sm:$0xff] %v6821_v49  ;;  %v2058_v58 = vadd.f32 %v6786_v29, %v2019_v34  ;;  %v1895_v20 = vadd.f32 %v1894_v36, %v1669_v31  ;;  %4639 = vmatprep.mubr.f32.mxu1 %v2222_v43  ;;  %v1689_v16 = vpop.f32.mrb[120].mxu1  ;;  %v6844_v50 = vld [vmem:[#allocation2 + $0x2f] sm:$0xff]  ;;  %v2295_v36 = vld [vmem:[#allocation8 + $0x138] sm:$0xff] }
 0x254   : > { %2418 = vmatmul.mubr.f32.vlgmr.msra.gmra.mrb[128].mxu0 %v6827_v17  ;;  %v6832_v7 = vmax.f32 %v2059_v63, 0.0  ;;  %v2022_v39 = vadd.f32 %v1900_v10, %v6717_v22  ;;  %4640 = vmatmul.mubr.f32.vlgmr.msra.gmra.mrb[160].mxu1 %v2223_v37  ;;  %v1691_v61 = vpop.f32.mrb[121].mxu1  ;;  %v5223_v63 = vpack.c.bf16 %v2293_v41, %v2292_v25  ;;  %v2294_v10 = vld [vmem:[#allocation8 + $0x130] sm:$0xff] }
 0x255   : > { %2422 = vmatprep.mubr.f32.mxu0 %v6792_v12  ;;  %v6836_v59 = vmax.f32 %v2058_v58, 0.0  ;;  %v2021_v44 = vadd.f32 %v1895_v20, %v6720_v13  ;;  %v4576_v31 = vpop.f32.mrb[106].mxu0  ;;  %5218 = vmatpush3.bf16.msra.mxu0 %v6651_v14  ;;  %v2261_v13 = vld [vmem:[#allocation8 + $0x28] sm:$0xff]  ;;  %v2262_v41 = vld [vmem:[#allocation8 + $0x30] sm:$0xff] }
 0x256   : > { %5169 = vmatpush1.bf16.msra.mxu1 %v5168_v52  ;;  %2123 = vst [vmem:[#allocation2 + $0x90] sm:$0xff] %v6832_v7  ;;  %v2061_v57 = vadd.f32 %v6786_v29, %v2022_v39  ;;  %v1910_v15 = vadd.f32 %v4576_v31, %v1684_v30  ;;  %v1904_v22 = vpop.f32.mrb[107].mxu0  ;;  %v6842_v34 = vld [vmem:[#allocation2 + $0x49] sm:$0xff]  ;;  %5220 = vmatprep.subr.bf16.mxu0 %v5219_v9  ;;  %v6852_v30 = vld [vmem:[#allocation2 + $0x51] sm:$0xff] }
 0x257   : > { %5170 = vmatprep.subr.bf16.mxu1 %v7903_v51  ;;  %2122 = vst [vmem:[#allocation2 + $0x88] sm:$0xff] %v6836_v59  ;;  %v2060_v14 = vadd.f32 %v6786_v29, %v2021_v44  ;;  %v1905_v52 = vadd.f32 %v1904_v22, %v6804_v8  ;;  %4642 = vmatprep.mubr.f32.mxu1 %v6842_v34  ;;  %v1694_v48 = vpop.f32.mrb[122].mxu1  ;;  %v6866_v31 = vld [vmem:[#allocation2 + $0x47] sm:$0xff] }
 0x258   : > { %2423 = vmatmul.mubr.f32.gmra.mrb[130].mxu0 %v6844_v50  ;;  %v6854_v43 = vmax.f32 %v2061_v57, 0.0  ;;  %v2024_v3 = vadd.f32 %v1910_v15, %v6723_v40  ;;  %4643 = vmatmul.mubr.f32.gmra.mrb[162].mxu1 %v6852_v30  ;;  %v1696_v58 = vpop.f32.mrb[123].mxu1  ;;  %v5174_v25 = vpack.c.bf16 %v2261_v13, %v2260_v6  ;;  %v2263_v57 = vld [vmem:[#allocation8 + $0x38] sm:$0xff]  ;;  %v2296_v22 = vld [vmem:[#allocation8 + $0x140] sm:$0xff]  ;;  %v2297_v13 = vld [vmem:[#allocation8 + $0x148] sm:$0xff] }
 0x259   : > { %2427 = vmatprep.mubr.f32.mxu0 %v6809_v5  ;;  %v6859_v20 = vmax.f32 %v2060_v14, 0.0  ;;  %v2023_v8 = vadd.f32 %v1905_v52, %v6726_v46  ;;  %v4579_v37 = vpop.f32.mrb[108].mxu0  ;;  %5222 = vmatpush3.bf16.msra.mxu0 %v5219_v9  ;;  %v5227_v46 = vpack.c.bf16 %v2295_v36, %v2294_v10  ;;  %v6873_v15 = vld [vmem:[#allocation2 + $0x71] sm:$0xff]  ;;  %v2264_v58 = vld [vmem:[#allocation8 + $0x40] sm:$0xff] }
 0x25a   : > { %5172 = vmatpush1.bf16.msra.mxu1 %v5171_v27  ;;  %2125 = vst [vmem:[#allocation2 + $0xb0] sm:$0xff] %v6854_v43  ;;  %v2063_v39 = vadd.f32 %v6786_v29, %v2024_v3  ;;  %v1920_v61 = vadd.f32 %v4579_v37, %v1694_v48  ;;  %v1914_v40 = vpop.f32.mrb[109].mxu0  ;;  %v6864_v44 = vld [vmem:[#allocation2 + $0x69] sm:$0xff]  ;;  %5224 = vmatprep.subr.bf16.mxu0 %v5223_v63  ;;  %7937 = vst [vmem:[#allocation14_spill] sm:$0xff] %v6873_v15 }
 0x25b   : > { %7936 = vst [vmem:[#allocation13_spill] sm:$0xff] %v6864_v44  ;;  %5173 = vmatprep.subr.bf16.mxu1 %v7903_v51  ;;  %2124 = vst [vmem:[#allocation2 + $0xa8] sm:$0xff] %v6859_v20  ;;  %v2062_v9 = vadd.f32 %v6786_v29, %v2023_v8  ;;  %v1915_v27 = vadd.f32 %v1914_v40, %v1689_v16  ;;  %4645 = vmatprep.mubr.f32.mxu1 %v6864_v44  ;;  %v1699_v6 = vpop.f32.mrb[124].mxu1  ;;  %v2299_v40 = vld [vmem:[#allocation8 + $0x158] sm:$0xff] }
 0x25c   : > { %2428 = vmatmul.mubr.f32.gmra.mrb[132].mxu0 %v6866_v31  ;;  %v6875_v14 = vmax.f32 %v2063_v39, 0.0  ;;  %v2026_v52 = vadd.f32 %v1920_v61, %v6729_v56  ;;  %4646 = vmatmul.mubr.f32.gmra.mrb[164].mxu1 %v6873_v15  ;;  %v1701_v48 = vpop.f32.mrb[125].mxu1  ;;  %v5177_v3 = vpack.c.bf16 %v2263_v57, %v2262_v41  ;;  %v6888_v39 = vld [vmem:[#allocation2 + $0x4f] sm:$0xff]  ;;  %v2276_v15 = vld [vmem:[#allocation8 + $0xa0] sm:$0xff] }
 0x25d   : > { %2432 = vmatprep.mubr.f32.mxu0 %v2087_v1  ;;  %v6881_v16 = vmax.f32 %v2062_v9, 0.0  ;;  %v2025_v10 = vadd.f32 %v1915_v27, %v6732_v38  ;;  %v4582_v36 = vpop.f32.mrb[110].mxu0  ;;  %5226 = vmatpush3.bf16.msra.mxu0 %v5223_v63  ;;  %v5231_v1 = vpack.c.bf16 %v2297_v13, %v2296_v22  ;;  %v6895_v41 = vld [vmem:[#allocation2 + $0x91] sm:$0xff] }
 0x25e   : > { %5175 = vmatpush1.bf16.msra.mxu1 %v5174_v25  ;;  %2127 = vst [vmem:[#allocation2 + $0xd0] sm:$0xff] %v6875_v14  ;;  %v2065_v8 = vadd.f32 %v6786_v29, %v2026_v52  ;;  %v1924_v56 = vpop.f32.mrb[111].mxu0  ;;  %v6886_v37 = vld [vmem:[#allocation2 + $0x89] sm:$0xff]  ;;  %5228 = vmatprep.subr.bf16.mxu0 %v5227_v46  ;;  %7940 = vst [vmem:[#allocation17_spill] sm:$0xff] %v6895_v41  ;;  %v5180_v52 = vpack.c.bf16 %v2265_v18, %v2264_v58 }
 0x25f   : > { %7938 = vst [vmem:[#allocation15_spill] sm:$0xff] %v6881_v16  ;;  %7939 = vst [vmem:[#allocation16_spill] sm:$0xff] %v6886_v37  ;;  %5176 = vmatprep.subr.bf16.mxu1 %v7903_v51  ;;  %v2064_v38 = vadd.f32 %v6786_v29, %v2025_v10  ;;  %v1704_v63 = vpop.f32.mrb[126].mxu1  ;;  %v1925_v25 = vadd.f32 %v1924_v56, %v1699_v6  ;;  %4648 = vmatprep.mubr.f32.mxu1 %v6886_v37  ;;  %v2298_v61 = vld [vmem:[#allocation8 + $0x150] sm:$0xff]  ;;  %v6908_v56 = vld [vmem:[#allocation2 + $0x67] sm:$0xff] }
 0x260   : > { %2126 = vst [vmem:[#allocation2 + $0xc8] sm:$0xff] %v6881_v16  ;;  %2433 = vmatmul.mubr.f32.gmra.mrb[134].mxu0 %v6888_v39  ;;  %v6897_v57 = vmax.f32 %v2065_v8, 0.0  ;;  %v1930_v9 = vadd.f32 %v4582_v36, %v1704_v63  ;;  %4649 = vmatmul.mubr.f32.gmra.mrb[166].mxu1 %v6895_v41  ;;  %v1706_v27 = vpop.f32.mrb[127].mxu1  ;;  %v2266_v48 = vld [vmem:[#allocation8 + $0x50] sm:$0xff]  ;;  %v5235_v63 = vpack.c.bf16 %v2299_v40, %v2298_v61  ;;  %v2301_v58 = vld [vmem:[#allocation8 + $0x168] sm:$0xff] }
 0x261   : > { %2437 = vmatprep.mubr.f32.mxu0 %v6821_v49  ;;  %v6901_v22 = vmax.f32 %v2064_v38, 0.0  ;;  %v2027_v6 = vadd.f32 %v1925_v25, %v6738_v55  ;;  %v4585_v13 = vpop.f32.mrb[112].mxu0  ;;  %5230 = vmatpush3.bf16.msra.mxu0 %v5227_v46  ;;  %v2267_v38 = vld [vmem:[#allocation8 + $0x58] sm:$0xff] }
 0x262   : > { %5178 = vmatpush1.bf16.msra.mxu1 %v5177_v3  ;;  %2129 = vst [vmem:[#allocation2 + $0xf0] sm:$0xff] %v6897_v57  ;;  %v2028_v10 = vadd.f32 %v1930_v9, %v6735_v53  ;;  %v1934_v8 = vpop.f32.mrb[113].mxu0  ;;  %v6906_v36 = vld [vmem:[#allocation2 + $0xa9] sm:$0xff]  ;;  %5232 = vmatprep.subr.bf16.mxu0 %v5231_v1  ;;  %v6915_v53 = vld [vmem:[#allocation2 + $0xb1] sm:$0xff]  ;;  %v2300_v3 = vld [vmem:[#allocation8 + $0x160] sm:$0xff]  ;;  %v5183_v27 = vpack.c.bf16 %v2267_v38, %v2266_v48 }
 0x263   : > { %7941 = vst [vmem:[#allocation18_spill] sm:$0xff] %v6906_v36  ;;  %5179 = vmatprep.subr.bf16.mxu1 %v7903_v51  ;;  %2128 = vst [vmem:[#allocation2 + $0xe8] sm:$0xff] %v6901_v22  ;;  %v2066_v55 = vadd.f32 %v6786_v29, %v2027_v6  ;;  %v1709_v46 = vpop.f32.mrb[128].mxu1  ;;  %4651 = vmatprep.mubr.f32.mxu1 %v6906_v36  ;;  %v2268_v6 = vld [vmem:[#allocation8 + $0x60] sm:$0xff]  ;;  %v2303_v48 = vld [vmem:[#allocation8 + $0x178] sm:$0xff] }
 0x264   : > { %2438 = vmatmul.mubr.f32.gmra.mrb[136].mxu0 %v6908_v56  ;;  %7942 = vst [vmem:[#allocation19_spill] sm:$0xff] %v6915_v53  ;;  %v2067_v18 = vadd.f32 %v6786_v29, %v2028_v10  ;;  %v1935_v25 = vadd.f32 %v1934_v8, %v1709_v46  ;;  %4652 = vmatmul.mubr.f32.gmra.mrb[168].mxu1 %v6915_v53  ;;  %v1711_v9 = vpop.f32.mrb[129].mxu1  ;;  %v6930_v8 = vld [vmem:[#allocation2 + $0x6f] sm:$0xff]  ;;  %v6949_v53 = vld [vmem:[#allocation2 + $0x87] sm:$0xff] }
 0x265   : > { %2442 = vmatprep.mubr.f32.mxu0 %v2089_v2  ;;  %v6921_v61 = vmax.f32 %v2066_v55, 0.0  ;;  %v6923_v40 = vpop.f32.mrb[114].mxu0  ;;  %5234 = vmatpush3.bf16.msra.mxu0 %v5231_v1  ;;  %v5239_v2 = vpack.c.bf16 %v2301_v58, %v2300_v3  ;;  %v6936_v1 = vld [vmem:[#allocation2 + $0xd1] sm:$0xff]  ;;  %v5186_v58 = vpack.c.bf16 %v2269_v11, %v2268_v6 }
 0x266   : > { %5181 = vmatpush1.bf16.msra.mxu1 %v5180_v52  ;;  %v6925_v36 = vmax.f32 %v2067_v18, 0.0  ;;  %v2029_v41 = vadd.f32 %v1935_v25, %v6744_v0  ;;  %v1944_v46 = vpop.f32.mrb[115].mxu0  ;;  %5236 = vmatprep.subr.bf16.mxu0 %v5235_v63  ;;  %7944 = vst [vmem:[#allocation21_spill] sm:$0xff] %v6936_v1  ;;  %v2302_v0 = vld [vmem:[#allocation8 + $0x170] sm:$0xff]  ;;  %v2271_v6 = vld [vmem:[#allocation8 + $0x78] sm:$0xff] }
 0x267   : > { %v6928_v10 = vld [vmem:[#allocation2 + $0xc9] sm:$0xff]  ;;  %5182 = vmatprep.subr.bf16.mxu1 %v7903_v51  ;;  %2130 = vst [vmem:[#allocation2 + $0x108] sm:$0xff] %v6921_v61  ;;  %v1714_v52 = vpop.f32.mrb[130].mxu1 }
 0x268   : > { %7943 = vst [vmem:[#allocation20_spill] sm:$0xff] %v6928_v10  ;;  %4654 = vmatprep.mubr.f32.mxu1 %v6928_v10  ;;  %2443 = vmatmul.mubr.f32.gmra.mrb[138].mxu0 %v6930_v8  ;;  %2131 = vst [vmem:[#allocation2 + $0x110] sm:$0xff] %v6925_v36  ;;  %v2068_v38 = vadd.f32 %v6786_v29, %v2029_v41  ;;  %v1940_v55 = vadd.f32 %v4585_v13, %v1714_v52  ;;  %v1716_v18 = vpop.f32.mrb[131].mxu1 }
 0x269   : > { %4655 = vmatmul.mubr.f32.gmra.mrb[170].mxu1 %v6936_v1  ;;  %2447 = vmatprep.mubr.f32.mxu0 %v6836_v59  ;;  %v6942_v3 = vpop.f32.mrb[116].mxu0  ;;  %v5243_v13 = vpack.c.bf16 %v2303_v48, %v2302_v0  ;;  %v6965_v18 = vld [vmem:[#allocation2 + $0x8f] sm:$0xff]  ;;  %v6986_v1 = vld [vmem:[#allocation2 + $0xa7] sm:$0xff] }
 0x26a   : > { %5184 = vmatpush1.bf16.msra.mxu1 %v5183_v27  ;;  %5238 = vmatpush3.bf16.msra.mxu0 %v5235_v63  ;;  %v6944_v25 = vmax.f32 %v2068_v38, 0.0  ;;  %v2030_v9 = vadd.f32 %v1940_v55, %v6741_v62  ;;  %v6947_v10 = vld [vmem:[#allocation2 + $0xe9] sm:$0xff]  ;;  %v1954_v41 = vpop.f32.mrb[117].mxu0  ;;  %v6954_v27 = vld [vmem:[#allocation2 + $0xf1] sm:$0xff]  ;;  %7949 = vst [vmem:[#allocation26_spill] sm:$0xff] %v6986_v1 }
 0x26b   : > { %7945 = vst [vmem:[#allocation22_spill] sm:$0xff] %v6947_v10  ;;  %5185 = vmatprep.subr.bf16.mxu1 %v7903_v51  ;;  %5240 = vmatprep.subr.bf16.mxu0 %v5239_v2  ;;  %v1719_v52 = vpop.f32.mrb[132].mxu1  ;;  %7946 = vst [vmem:[#allocation23_spill] sm:$0xff] %v6954_v27  ;;  %v2270_v63 = vld [vmem:[#allocation8 + $0x70] sm:$0xff] }
 0x26c   : > { %4657 = vmatprep.mubr.f32.mxu1 %v6947_v10  ;;  %2448 = vmatmul.mubr.f32.gmra.mrb[140].mxu0 %v6949_v53  ;;  %2132 = vst [vmem:[#allocation2 + $0x128] sm:$0xff] %v6944_v25  ;;  %v2069_v62 = vadd.f32 %v6786_v29, %v2030_v9  ;;  %v1945_v11 = vadd.f32 %v1944_v46, %v1719_v52  ;;  %v1721_v38 = vpop.f32.mrb[133].mxu1  ;;  %v2272_v9 = vld [vmem:[#allocation8 + $0x80] sm:$0xff] }
 0x26d   : > { %4658 = vmatmul.mubr.f32.gmra.mrb[172].mxu1 %v6954_v27  ;;  %2452 = vmatprep.mubr.f32.mxu0 %v6832_v7  ;;  %v6960_v0 = vpop.f32.mrb[118].mxu0  ;;  %v5189_v46 = vpack.c.bf16 %v2271_v6, %v2270_v63 }
 0x26e   : > { %5187 = vmatpush1.bf16.msra.mxu1 %v5186_v58  ;;  %5242 = vmatpush3.bf16.msra.mxu0 %v5239_v2  ;;  %v6962_v48 = vmax.f32 %v2069_v62, 0.0  ;;  %v2031_v55 = vadd.f32 %v1945_v11, %v6750_v28  ;;  %v6967_v10 = vpop.f32.mrb[119].mxu0  ;;  %v2273_v2 = vld [vmem:[#allocation8 + $0x88] sm:$0xff] }
 0x26f   : > { %5188 = vmatprep.subr.bf16.mxu1 %v7903_v51  ;;  %5244 = vmatprep.subr.bf16.mxu0 %v5243_v13  ;;  %v1724_v52 = vpop.f32.mrb[134].mxu1  ;;  %v6970_v38 = vld [vmem:[#allocation2 + $0x109] sm:$0xff]  ;;  %v6973_v58 = vld [vmem:[#allocation2 + $0x111] sm:$0xff] }
 0x270   : > { %7947 = vst [vmem:[#allocation24_spill] sm:$0xff] %v6970_v38  ;;  %2453 = vmatmul.mubr.f32.gmra.mrb[142].mxu0 %v6965_v18  ;;  %7948 = vst [vmem:[#allocation25_spill] sm:$0xff] %v6973_v58  ;;  %v2070_v28 = vadd.f32 %v6786_v29, %v2031_v55  ;;  %v1950_v62 = vadd.f32 %v6923_v40, %v1724_v52  ;;  %4660 = vmatprep.mubr.f32.mxu1 %v6970_v38  ;;  %v1726_v11 = vpop.f32.mrb[135].mxu1  ;;  %v2274_v52 = vld [vmem:[#allocation8 + $0x90] sm:$0xff] }
 0x271   : > { %2133 = vst [vmem:[#allocation2 + $0x130] sm:$0xff] %v6962_v48  ;;  %2457 = vmatprep.mubr.f32.mxu0 %v6859_v20  ;;  %4661 = vmatmul.mubr.f32.gmra.mrb[174].mxu1 %v6973_v58  ;;  %v6981_v63 = vpop.f32.mrb[120].mxu0  ;;  %v5192_v40 = vpack.c.bf16 %v2273_v2, %v2272_v9  ;;  %v2275_v11 = vld [vmem:[#allocation8 + $0x98] sm:$0xff]  ;;  %v7001_v2 = vld [vmem:[#allocation2 + $0xaf] sm:$0xff] }
 0x272   : > { %5246 = vmatpush3.bf16.msra.mxu0 %v5243_v13  ;;  %v6983_v6 = vmax.f32 %v2070_v28, 0.0  ;;  %v2032_v27 = vadd.f32 %v1950_v62, %v6747_v26  ;;  %v6988_v37 = vpop.f32.mrb[121].mxu0  ;;  %5190 = vmatpush1.bf16.msra.mxu1 %v5189_v46  ;;  %7950 = vst [vmem:[#allocation27_spill] sm:$0xff] %v7001_v2  ;;  %v5195_v38 = vpack.c.bf16 %v2275_v11, %v2274_v52 }
 0x273   : > { %5247 = vmatprep.subr.bf16.mxu0 %v7903_v51  ;;  %v1729_v55 = vpop.f32.mrb[136].mxu1  ;;  %5191 = vmatprep.subr.bf16.mxu1 %v7903_v51 }
 0x274   : > { %2458 = vmatmul.mubr.f32.gmra.mrb[144].mxu0 %v6986_v1  ;;  %2134 = vst [vmem:[#allocation2 + $0x148] sm:$0xff] %v6983_v6  ;;  %v2071_v13 = vadd.f32 %v6786_v29, %v2032_v27  ;;  %v1955_v26 = vadd.f32 %v1954_v41, %v1729_v55  ;;  %v1731_v28 = vpop.f32.mrb[137].mxu1  ;;  %v2277_v27 = vld [vmem:[#allocation8 + $0xa8] sm:$0xff] }
 0x275   : > { %2462 = vmatprep.mubr.f32.mxu0 %v6854_v43  ;;  %v6996_v62 = vpop.f32.mrb[122].mxu0 }
 0x276   : > { %v6998_v46 = vmax.f32 %v2071_v13, 0.0  ;;  %v2033_v9 = vadd.f32 %v1955_v26, %v6756_v21  ;;  %v7003_v58 = vpop.f32.mrb[123].mxu0  ;;  %5193 = vmatpush1.bf16.msra.mxu1 %v5192_v40  ;;  %v7022_v26 = vld [vmem:[#allocation2 + $0xc7] sm:$0xff] }
 0x277   : > { %v1734_v1 = vpop.f32.mrb[138].mxu1  ;;  %5194 = vmatprep.subr.bf16.mxu1 %v7903_v51  ;;  %7953 = vst [vmem:[#allocation30_spill] sm:$0xff] %v7022_v26 }
 0x278   : > { %v7005_v44 = vld [vmem:[#allocation2 + $0x129] sm:$0xff]  ;;  %2463 = vmatmul.mubr.f32.gmra.mrb[146].mxu0 %v7001_v2  ;;  %v7008_v41 = vld [vmem:[#allocation2 + $0x131] sm:$0xff]  ;;  %2135 = vst [vmem:[#allocation2 + $0x150] sm:$0xff] %v6998_v46  ;;  %v2072_v21 = vadd.f32 %v6786_v29, %v2033_v9  ;;  %v1960_v55 = vadd.f32 %v6942_v3, %v1734_v1  ;;  %v1736_v40 = vpop.f32.mrb[139].mxu1  ;;  %v5198_v9 = vpack.c.bf16 %v2277_v27, %v2276_v15 }
 0x279   : > { %7951 = vst [vmem:[#allocation28_spill] sm:$0xff] %v7005_v44  ;;  %7952 = vst [vmem:[#allocation29_spill] sm:$0xff] %v7008_v41  ;;  %4663 = vmatprep.mubr.f32.mxu1 %v7005_v44  ;;  %2467 = vmatprep.mubr.f32.mxu0 %v6881_v16  ;;  %v7017_v52 = vpop.f32.mrb[124].mxu0  ;;  %v2278_v3 = vld [vmem:[#allocation8 + $0xb0] sm:$0xff]  ;;  %v2279_v40 = vld [vmem:[#allocation8 + $0xb8] sm:$0xff] }
 0x27a   : > { %4664 = vmatmul.mubr.f32.gmra.mrb[176].mxu1 %v7008_v41  ;;  %v7019_v11 = vmax.f32 %v2072_v21, 0.0  ;;  %v2034_v13 = vadd.f32 %v1960_v55, %v6753_v54  ;;  %v7024_v28 = vpop.f32.mrb[125].mxu0  ;;  %v7037_v27 = vld [vmem:[#allocation2 + $0xcf] sm:$0xff]  ;;  %v2280_v16 = vld [vmem:[#allocation8 + $0xc0] sm:$0xff] }
 0x27b   : > { %5196 = vmatpush1.bf16.msra.mxu1 %v5195_v38  ;;  %v1739_v1 = vpop.f32.mrb[140].mxu1  ;;  %7954 = vst [vmem:[#allocation31_spill] sm:$0xff] %v7037_v27 }
 0x27c   : > { %2468 = vmatmul.mubr.f32.gmra.mrb[148].mxu0 %v7022_v26  ;;  %5197 = vmatprep.subr.bf16.mxu1 %v7903_v51  ;;  %2136 = vst [vmem:[#allocation2 + $0x168] sm:$0xff] %v7019_v11  ;;  %v2073_v21 = vadd.f32 %v6786_v29, %v2034_v13  ;;  %v1965_v41 = vadd.f32 %v6967_v10, %v1739_v1  ;;  %v1741_v54 = vpop.f32.mrb[141].mxu1  ;;  %v2281_v1 = vld [vmem:[#allocation8 + $0xc8] sm:$0xff] }
 0x27d   : > { %2472 = vmatprep.mubr.f32.mxu0 %v6875_v14  ;;  %v7032_v55 = vpop.f32.mrb[126].mxu0  ;;  %v5201_v26 = vpack.c.bf16 %v2279_v40, %v2278_v3  ;;  %v5204_v54 = vpack.c.bf16 %v2281_v1, %v2280_v16 }
 0x27e   : > { %v7034_v38 = vmax.f32 %v2073_v21, 0.0  ;;  %v2035_v15 = vadd.f32 %v1965_v41, %v6762_v19  ;;  %v7039_v44 = vpop.f32.mrb[127].mxu0  ;;  %v7056_v21 = vld [vmem:[#allocation2 + $0xe7] sm:$0xff] }
 0x27f   : > { %5199 = vmatpush1.bf16.msra.mxu1 %v5198_v9  ;;  %v1744_v2 = vpop.f32.mrb[142].mxu1  ;;  %v7041_v13 = vld [vmem:[#allocation2 + $0x149] sm:$0xff]  ;;  %v7044_v10 = vld [vmem:[#allocation2 + $0x151] sm:$0xff] }
 0x280   : > { %7955 = vst [vmem:[#allocation32_spill] sm:$0xff] %v7041_v13  ;;  %2473 = vmatmul.mubr.f32.gmra.mrb[150].mxu0 %v7037_v27  ;;  %7956 = vst [vmem:[#allocation33_spill] sm:$0xff] %v7044_v10  ;;  %5200 = vmatprep.subr.bf16.mxu1 %v7903_v51  ;;  %v2074_v19 = vadd.f32 %v6786_v29, %v2035_v15  ;;  %v1970_v41 = vadd.f32 %v6960_v0, %v1744_v2  ;;  %v1746_v9 = vpop.f32.mrb[143].mxu1  ;;  %v2282_v0 = vld [vmem:[#allocation8 + $0xd0] sm:$0xff]  ;;  %v2283_v2 = vld [vmem:[#allocation8 + $0xd8] sm:$0xff] }
 0x281   : > { %2137 = vst [vmem:[#allocation2 + $0x170] sm:$0xff] %v7034_v38  ;;  %4666 = vmatprep.mubr.f32.mxu1 %v7041_v13  ;;  %2477 = vmatprep.mubr.f32.mxu0 %v6901_v22  ;;  %v5207_v1 = vpack.c.bf16 %v2283_v2, %v2282_v0 }
 0x282   : > { %4667 = vmatmul.mubr.f32.gmra.mrb[178].mxu1 %v7044_v10  ;;  %v7053_v3 = vmax.f32 %v2074_v19, 0.0  ;;  %v2036_v40 = vadd.f32 %v1970_v41, %v6759_v60  ;;  %v2284_v41 = vld [vmem:[#allocation8 + $0xe0] sm:$0xff] }
 0x283   : > { %5202 = vmatpush1.bf16.msra.mxu1 %v5201_v26  ;;  %v1749_v27 = vpop.f32.mrb[144].mxu1  ;;  %v7067_v26 = vld [vmem:[#allocation2 + $0xef] sm:$0xff] }
 0x284   : > { %7957 = vst [vmem:[#allocation34_spill] sm:$0xff] %v7053_v3  ;;  %2478 = vmatmul.mubr.f32.gmra.mrb[152].mxu0 %v7056_v21  ;;  %5203 = vmatprep.subr.bf16.mxu1 %v7903_v51  ;;  %2138 = vst [vmem:[#allocation2 + $0x188] sm:$0xff] %v7053_v3  ;;  %v2075_v15 = vadd.f32 %v6786_v29, %v2036_v40  ;;  %v1975_v19 = vadd.f32 %v6988_v37, %v1749_v27  ;;  %v1751_v9 = vpop.f32.mrb[145].mxu1  ;;  %v2285_v37 = vld [vmem:[#allocation8 + $0xe8] sm:$0xff] }
 0x285   : > { %2482 = vmatprep.mubr.f32.mxu0 %v6897_v57 }
 0x286   : > { %v7064_v60 = vmax.f32 %v2075_v15, 0.0  ;;  %v2037_v16 = vadd.f32 %v1975_v19, %v6768_v23  ;;  %v7084_v15 = vld [vmem:[#allocation2 + $0x107] sm:$0xff]  ;;  %v5210_v19 = vpack.c.bf16 %v2285_v37, %v2284_v41  ;;  %v7095_v37 = vld [vmem:[#allocation2 + $0x10f] sm:$0xff] }
 0x287   : > { %5205 = vmatpush1.bf16.msra.mxu1 %v5204_v54  ;;  %v1754_v10 = vpop.f32.mrb[146].mxu1  ;;  %7962 = vst [vmem:[#allocation39_spill] sm:$0xff] %v7084_v15 }
 0x288   : > { %7958 = vst [vmem:[#allocation35_spill] sm:$0xff] %v7064_v60  ;;  %v7069_v13 = vld [vmem:[#allocation2 + $0x169] sm:$0xff]  ;;  %2483 = vmatmul.mubr.f32.gmra.mrb[154].mxu0 %v7067_v26  ;;  %v7072_v40 = vld [vmem:[#allocation2 + $0x171] sm:$0xff]  ;;  %5206 = vmatprep.subr.bf16.mxu1 %v7903_v51  ;;  %2139 = vst [vmem:[#allocation2 + $0x190] sm:$0xff] %v7064_v60  ;;  %v2076_v27 = vadd.f32 %v6786_v29, %v2037_v16  ;;  %v1980_v23 = vadd.f32 %v6981_v63, %v1754_v10  ;;  %v1756_v54 = vpop.f32.mrb[147].mxu1 }
 0x289   : > { %7959 = vst [vmem:[#allocation36_spill] sm:$0xff] %v7069_v13  ;;  %7960 = vst [vmem:[#allocation37_spill] sm:$0xff] %v7072_v40  ;;  %4669 = vmatprep.mubr.f32.mxu1 %v7069_v13  ;;  %2487 = vmatprep.mubr.f32.mxu0 %v6921_v61  ;;  %v2286_v63 = vld [vmem:[#allocation8 + $0xf0] sm:$0xff]  ;;  %v2287_v10 = vld [vmem:[#allocation8 + $0xf8] sm:$0xff] }
 0x28a   : > { %4670 = vmatmul.mubr.f32.gmra.mrb[180].mxu1 %v7072_v40  ;;  %v7081_v0 = vmax.f32 %v2076_v27, 0.0  ;;  %v2038_v2 = vadd.f32 %v1980_v23, %v6765_v35  ;;  %v3286_v35 = vld [vmem:[#allocation8 + $0x400] sm:$0xff]  ;;  %v3287_v23 = vld [vmem:[#allocation8 + $0x408] sm:$0xff]  ;;  %v5213_v40 = vpack.c.bf16 %v2287_v10, %v2286_v63 }
 0x28b   : > { %5208 = vmatpush1.bf16.msra.mxu1 %v5207_v1  ;;  %v1759_v9 = vpop.f32.mrb[148].mxu1 }
 0x28c   : > { %7961 = vst [vmem:[#allocation38_spill] sm:$0xff] %v7081_v0  ;;  %2488 = vmatmul.mubr.f32.gmra.mrb[156].mxu0 %v7084_v15  ;;  %5209 = vmatprep.subr.bf16.mxu1 %v7903_v51  ;;  %2140 = vst [vmem:[#allocation2 + $0x1a8] sm:$0xff] %v7081_v0  ;;  %v2077_v16 = vadd.f32 %v6786_v29, %v2038_v2  ;;  %v1985_v27 = vadd.f32 %v7003_v58, %v1759_v9  ;;  %v1761_v54 = vpop.f32.mrb[149].mxu1 }
 0x28d   : > { %2492 = vmatprep.mubr.f32.mxu0 %v6925_v36  ;;  %v7103_v58 = vpack.c.bf16 %v3287_v23, %v3286_v35  ;;  %v7125_v23 = vld [vmem:[#allocation2 + $0x12f] sm:$0xff] }
 0x28e   : > { %v7092_v1 = vmax.f32 %v2077_v16, 0.0  ;;  %v2039_v41 = vadd.f32 %v1985_v27, %v6773_v4  ;;  %v7114_v16 = vld [vmem:[#allocation2 + $0x127] sm:$0xff] }
 0x28f   : > { %5211 = vmatpush1.bf16.msra.mxu1 %v5210_v19  ;;  %v1764_v13 = vpop.f32.mrb[150].mxu1  ;;  %v7097_v15 = vld [vmem:[#allocation2 + $0x189] sm:$0xff]  ;;  %v7100_v2 = vld [vmem:[#allocation2 + $0x191] sm:$0xff] }
 0x290   : > { %2493 = vmatmul.mubr.f32.gmra.mrb[158].mxu0 %v7095_v37  ;;  %5212 = vmatprep.subr.bf16.mxu1 %v7903_v51  ;;  %2141 = vst [vmem:[#allocation2 + $0x1b0] sm:$0xff] %v7092_v1  ;;  %v2078_v9 = vadd.f32 %v6786_v29, %v2039_v41  ;;  %v1990_v4 = vadd.f32 %v6996_v62, %v1764_v13  ;;  %v1766_v19 = vpop.f32.mrb[151].mxu1 }
 0x291   : > { %4672 = vmatprep.mubr.f32.mxu1 %v7097_v15  ;;  %2497 = vmatprep.mubr.f32.mxu0 %v6944_v25 }
 0x292   : > { %4673 = vmatmul.mubr.f32.gmra.mrb[182].mxu1 %v7100_v2  ;;  %v7111_v63 = vmax.f32 %v2078_v9, 0.0  ;;  %v2040_v10 = vadd.f32 %v1990_v4, %v6770_v33 }
 0x293   : > { %5214 = vmatpush1.bf16.msra.mxu1 %v5213_v40  ;;  %v1769_v27 = vpop.f32.mrb[152].mxu1 }
 0x294   : > { %2498 = vmatmul.mubr.f32.gmra.mrb[160].mxu0 %v7114_v16  ;;  %5296 = vmatprep.subr.bf16.mxu1 %v7103_v58  ;;  %2142 = vst [vmem:[#allocation2 + $0x1c8] sm:$0xff] %v7111_v63  ;;  %v2079_v62 = vadd.f32 %v6786_v29, %v2040_v10  ;;  %v1995_v13 = vadd.f32 %v7024_v28, %v1769_v27  ;;  %v1771_v54 = vpop.f32.mrb[153].mxu1  ;;  %v7141_v27 = vld [vmem:[#allocation2 + $0x147] sm:$0xff] }
 0x295   : > { %2502 = vmatprep.mubr.f32.mxu0 %v6962_v48 }
 0x296   : > { %v7122_v35 = vmax.f32 %v2079_v62, 0.0  ;;  %v2041_v33 = vadd.f32 %v1995_v13, %v6777_v45 }
 0x297   : > { %v1774_v40 = vpop.f32.mrb[154].mxu1  ;;  %v7127_v41 = vld [vmem:[#allocation2 + $0x1a9] sm:$0xff]  ;;  %v7130_v9 = vld [vmem:[#allocation2 + $0x1b1] sm:$0xff] }
 0x298   : > { %2503 = vmatmul.mubr.f32.gmra.mrb[162].mxu0 %v7125_v23  ;;  %2143 = vst [vmem:[#allocation2 + $0x1d0] sm:$0xff] %v7122_v35  ;;  %v2080_v28 = vadd.f32 %v6786_v29, %v2041_v33  ;;  %v2000_v4 = vadd.f32 %v7017_v52, %v1774_v40  ;;  %4675 = vmatprep.mubr.f32.mxu1 %v7127_v41  ;;  %v1776_v19 = vpop.f32.mrb[155].mxu1 }
 0x299   : > { %2507 = vmatprep.mubr.f32.mxu0 %v6983_v6  ;;  %4676 = vmatmul.mubr.f32.gmra.mrb[184].mxu1 %v7130_v9 }
 0x29a   : > { %v7138_v45 = vmax.f32 %v2080_v28, 0.0  ;;  %v2042_v10 = vadd.f32 %v2000_v4, %v6775_v42  ;;  %v7151_v28 = vld [vmem:[#allocation2 + $0x14f] sm:$0xff] }
 0x29b   : > { %v1779_v62 = vpop.f32.mrb[156].mxu1 }
 0x29c   : > { %2508 = vmatmul.mubr.f32.gmra.mrb[164].mxu0 %v7141_v27  ;;  %2144 = vst [vmem:[#allocation2 + $0x1e8] sm:$0xff] %v7138_v45  ;;  %v2081_v52 = vadd.f32 %v6786_v29, %v2042_v10  ;;  %v2005_v13 = vadd.f32 %v7039_v44, %v1779_v62  ;;  %v1781_v54 = vpop.f32.mrb[157].mxu1 }
 0x29d   : > { %2512 = vmatprep.mubr.f32.mxu0 %v6998_v46 }
 0x29e   : > { %v7148_v33 = vmax.f32 %v2081_v52, 0.0  ;;  %v2043_v40 = vadd.f32 %v2005_v13, %v6781_v32  ;;  %v7167_v13 = vld [vmem:[#allocation2 + $0x167] sm:$0xff] }
 0x29f   : > { %v1784_v42 = vpop.f32.mrb[158].mxu1  ;;  %v7153_v4 = vld [vmem:[#allocation2 + $0x1c9] sm:$0xff]  ;;  %v7156_v19 = vld [vmem:[#allocation2 + $0x1d1] sm:$0xff] }
 0x2a0   : > { %2513 = vmatmul.mubr.f32.gmra.mrb[166].mxu0 %v7151_v28  ;;  %2145 = vst [vmem:[#allocation2 + $0x1f0] sm:$0xff] %v7148_v33  ;;  %v2082_v44 = vadd.f32 %v6786_v29, %v2043_v40  ;;  %v2010_v10 = vadd.f32 %v7032_v55, %v1784_v42  ;;  %4678 = vmatprep.mubr.f32.mxu1 %v7153_v4  ;;  %v1786_v32 = vpop.f32.mrb[159].mxu1  ;;  %v7175_v40 = vld [vmem:[#allocation2 + $0x16f] sm:$0xff] }
 0x2a1   : > { %2517 = vmatprep.mubr.f32.mxu0 %v7019_v11  ;;  %4679 = vmatmul.mubr.f32.gmra.mrb[186].mxu1 %v7156_v19  ;;  %7963 = vst [vmem:[#allocation40_spill] sm:$0xff] %v7175_v40 }
 0x2a2   : > { %v7164_v62 = vmax.f32 %v2082_v44, 0.0  ;;  %v2044_v52 = vadd.f32 %v2010_v10, %v6779_v47  ;;  %v7186_v47 = vld [vmem:[#allocation2 + $0x187] sm:$0xff] }
 0x2a3   : > { %7965 = vst [vmem:[#allocation42_spill] sm:$0xff] %v7186_v47 }
 0x2a4   : > { %2518 = vmatmul.mubr.f32.gmra.mrb[168].mxu0 %v7167_v13  ;;  %2146 = vst [vmem:[#allocation2 + $0x208] sm:$0xff] %v7164_v62  ;;  %v2083_v54 = vadd.f32 %v6786_v29, %v2044_v52  ;;  %v7190_v29 = vld [vmem:[#allocation2 + $0x18f] sm:$0xff] }
 0x2a5   : > { %2522 = vmatprep.mubr.f32.mxu0 %v7034_v38  ;;  %7966 = vst [vmem:[#allocation43_spill] sm:$0xff] %v7190_v29  ;;  %v3288_v52 = vld [vmem:[#allocation8 + $0x410] sm:$0xff] }
 0x2a6   : > { %v7173_v55 = vmax.f32 %v2083_v54, 0.0  ;;  %v3289_v54 = vld [vmem:[#allocation8 + $0x418] sm:$0xff] }
 0x2a7   : > { %v7177_v42 = vld [vmem:[#allocation2 + $0x1e9] sm:$0xff]  ;;  %v7180_v44 = vld [vmem:[#allocation2 + $0x1f1] sm:$0xff] }
 0x2a8   : > { %2523 = vmatmul.mubr.f32.gmra.mrb[170].mxu0 %v7175_v40  ;;  %7964 = vst [vmem:[#allocation41_spill] sm:$0xff] %v7180_v44  ;;  %2147 = vst [vmem:[#allocation2 + $0x210] sm:$0xff] %v7173_v55  ;;  %4681 = vmatprep.mubr.f32.mxu1 %v7177_v42  ;;  %v3290_v40 = vld [vmem:[#allocation8 + $0x420] sm:$0xff] }
 0x2a9   : > { %2527 = vmatprep.mubr.f32.mxu0 %v7053_v3  ;;  %4682 = vmatmul.mubr.f32.gmra.mrb[188].mxu1 %v7180_v44  ;;  %v7200_v3 = vld [vmem:[#allocation2] sm:$0xff] }
 0x2aa   : > { %7969 = vst [vmem:[#allocation46_spill] sm:$0xff] %v7200_v3 }
 0x2ac   : > { %2528 = vmatmul.mubr.f32.gmra.mrb[172].mxu0 %v7186_v47  ;;  %v2148_v47 = vld [vmem:[#allocation2 + $0x7] sm:$0xff] }
 0x2ad   : > { %2532 = vmatprep.mubr.f32.mxu0 %v7064_v60  ;;  %v7203_v60 = vld [vmem:[#allocation2 + $0x1a7] sm:$0xff] }
 0x2ae   : > { %7970 = vst [vmem:[#allocation47_spill] sm:$0xff] %v7203_v60 }
 0x2af   : > { %v7192_v10 = vld [vmem:[#allocation2 + $0x209] sm:$0xff]  ;;  %v7195_v32 = vld [vmem:[#allocation2 + $0x211] sm:$0xff] }
 0x2b0   : > { %7967 = vst [vmem:[#allocation44_spill] sm:$0xff] %v7192_v10  ;;  %2533 = vmatmul.mubr.f32.gmra.mrb[174].mxu0 %v7190_v29  ;;  %7968 = vst [vmem:[#allocation45_spill] sm:$0xff] %v7195_v32  ;;  %4684 = vmatprep.mubr.f32.mxu1 %v7192_v10  ;;  %v5299_v29 = vpack.c.bf16 %v3289_v54, %v3288_v52  ;;  %v3291_v10 = vld [vmem:[#allocation8 + $0x428] sm:$0xff]  ;;  %v3293_v52 = vld [vmem:[#allocation8 + $0x438] sm:$0xff] }
 0x2b1   : > { %2537 = vmatprep.mubr.f32.mxu0 %v7081_v0  ;;  %4685 = vmatmul.mubr.f32.gmra.mrb[190].mxu1 %v7195_v32  ;;  %v7208_v0 = vld [vmem:[#allocation2 + $0x1af] sm:$0xff]  ;;  %v5303_v44 = vpack.c.bf16 %v3291_v10, %v3290_v40  ;;  %v7214_v54 = vld [vmem:[#allocation2 + $0x1c7] sm:$0xff]  ;;  %v3297_v10 = vld [vmem:[#allocation8 + $0x458] sm:$0xff] }
 0x2b2   : > { %2867 = vmatprep.mubr.f32.mxu1 %v7200_v3  ;;  %v2149_v32 = vld [vmem:[#allocation2 + $0xf] sm:$0xff] }
 0x2b3   : > { %v7220_v40 = vld [vmem:[#allocation2 + $0x1cf] sm:$0xff] }
 0x2b4   : > { %2538 = vmatmul.mubr.f32.gmra.mrb[176].mxu0 %v7203_v60  ;;  %v3292_v60 = vld [vmem:[#allocation8 + $0x430] sm:$0xff] }
 0x2b5   : > { %2542 = vmatprep.mubr.f32.mxu0 %v7092_v1  ;;  %2868 = vmatmul.mubr.f32.vlgmr.msra.gmra.mrb[192].mxu1 %v2148_v47  ;;  %v5307_v47 = vpack.c.bf16 %v3293_v52, %v3292_v60  ;;  %v7226_v60 = vld [vmem:[#allocation2 + $0x1e7] sm:$0xff]  ;;  %v3301_v52 = vld [vmem:[#allocation8 + $0x478] sm:$0xff] }
 0x2b6   : > { %2872 = vmatprep.mubr.f32.mxu1 %v7200_v3  ;;  %5298 = vmatpush3.bf16.msra.mxu1 %v7103_v58  ;;  %v3294_v58 = vld [vmem:[#allocation8 + $0x440] sm:$0xff]  ;;  %v3295_v3 = vld [vmem:[#allocation8 + $0x448] sm:$0xff] }
 0x2b7   : > { %5300 = vmatprep.subr.bf16.mxu1 %v5299_v29 }
 0x2b8   : > { %2543 = vmatmul.mubr.f32.gmra.mrb[178].mxu0 %v7208_v0 }
 0x2b9   : > { %2547 = vmatprep.mubr.f32.mxu0 %v7111_v63  ;;  %2873 = vmatmul.mubr.f32.gmra.mrb[194].mxu1 %v2149_v32  ;;  %v3300_v32 = vld [vmem:[#allocation8 + $0x470] sm:$0xff] }
 0x2ba   : > { %2877 = vmatprep.mubr.f32.mxu1 %v6795_v24  ;;  %5302 = vmatpush3.bf16.msra.mxu1 %v5299_v29  ;;  %v5311_v24 = vpack.c.bf16 %v3295_v3, %v3294_v58  ;;  %v3296_v29 = vld [vmem:[#allocation8 + $0x450] sm:$0xff] }
 0x2bb   : > { %5304 = vmatprep.subr.bf16.mxu1 %v5303_v44  ;;  %v7231_v3 = vld [vmem:[#allocation2 + $0x50] sm:$0xff] }
 0x2bc   : > { %2548 = vmatmul.mubr.f32.gmra.mrb[180].mxu0 %v7214_v54  ;;  %v2220_v58 = vld [vmem:[#allocation2 + $0x9] sm:$0xff] }
 0x2bd   : > { %2552 = vmatprep.mubr.f32.mxu0 %v7122_v35  ;;  %2878 = vmatmul.mubr.f32.gmra.mrb[196].mxu1 %v6827_v17  ;;  %v3298_v17 = vld [vmem:[#allocation8 + $0x460] sm:$0xff] }
 0x2be   : > { %2882 = vmatprep.mubr.f32.mxu1 %v6792_v12  ;;  %5306 = vmatpush3.bf16.msra.mxu1 %v5303_v44  ;;  %v5315_v12 = vpack.c.bf16 %v3297_v10, %v3296_v29  ;;  %v3299_v44 = vld [vmem:[#allocation8 + $0x468] sm:$0xff]  ;;  %v7245_v10 = vld [vmem:[#allocation2 + $0x70] sm:$0xff] }
 0x2bf   : > { %5308 = vmatprep.subr.bf16.mxu1 %v5307_v47  ;;  %v3255_v29 = vld [vmem:[#allocation8 + $0x308] sm:$0xff] }
 0x2c0   : > { %2553 = vmatmul.mubr.f32.gmra.mrb[182].mxu0 %v7220_v40 }
 0x2c1   : > { %2557 = vmatprep.mubr.f32.mxu0 %v7138_v45  ;;  %2883 = vmatmul.mubr.f32.gmra.mrb[198].mxu1 %v6844_v50  ;;  %v7234_v50 = vld [vmem:[#allocation2 + $0x1ef] sm:$0xff] }
 0x2c2   : > { %2887 = vmatprep.mubr.f32.mxu1 %v6809_v5  ;;  %5310 = vmatpush3.bf16.msra.mxu1 %v5307_v47  ;;  %v5319_v5 = vpack.c.bf16 %v3299_v44, %v3298_v17  ;;  %v5323_v47 = vpack.c.bf16 %v3301_v52, %v3300_v32  ;;  %v3256_v17 = vld [vmem:[#allocation8 + $0x310] sm:$0xff]  ;;  %v3259_v52 = vld [vmem:[#allocation8 + $0x328] sm:$0xff] }
 0x2c3   : > { %5312 = vmatprep.subr.bf16.mxu1 %v5311_v24  ;;  %v5444_v44 = vld [vmem:[#allocation2 + $0x29] sm:$0xff] }
 0x2c4   : > { %2558 = vmatmul.mubr.f32.gmra.mrb[184].mxu0 %v7226_v60 }
 0x2c5   : > { %2562 = vmatprep.mubr.f32.mxu0 %v7148_v33  ;;  %2888 = vmatmul.mubr.f32.gmra.mrb[200].mxu1 %v6866_v31  ;;  %v7240_v31 = vld [vmem:[#allocation2 + $0x207] sm:$0xff] }
 0x2c6   : > { %2892 = vmatprep.mubr.f32.mxu1 %v7231_v3  ;;  %5314 = vmatpush3.bf16.msra.mxu1 %v5311_v24  ;;  %v3254_v24 = vld [vmem:[#allocation8 + $0x300] sm:$0xff] }
 0x2c7   : > { %5316 = vmatprep.subr.bf16.mxu1 %v5315_v12 }
 0x2c8   : > { %2563 = vmatmul.mubr.f32.gmra.mrb[186].mxu0 %v7234_v50 }
 0x2c9   : > { %2567 = vmatprep.mubr.f32.mxu0 %v7164_v62  ;;  %2893 = vmatmul.mubr.f32.gmra.mrb[202].mxu1 %v6888_v39  ;;  %v7248_v39 = vld [vmem:[#allocation2 + $0x20f] sm:$0xff] }
 0x2ca   : > { %2897 = vmatprep.mubr.f32.mxu1 %v6821_v49  ;;  %5318 = vmatpush3.bf16.msra.mxu1 %v5315_v12  ;;  %v2221_v49 = vld [vmem:[#allocation2 + $0x11] sm:$0xff]  ;;  %v5248_v12 = vpack.c.bf16 %v3255_v29, %v3254_v24  ;;  %v7971_v24 = vld [vmem:[#allocation13_spill] sm:$0xff]  ;;  %v7972_v29 = vld [vmem:[#allocation26_spill] sm:$0xff] }
 0x2cb   : > { %5320 = vmatprep.subr.bf16.mxu1 %v5319_v5 }
 0x2cc   : > { %2568 = vmatmul.mubr.f32.gmra.mrb[188].mxu0 %v7240_v31 }
 0x2cd   : > { %2572 = vmatprep.mubr.f32.mxu0 %v7173_v55  ;;  %2898 = vmatmul.mubr.f32.gmra.mrb[204].mxu1 %v6908_v56  ;;  %v3257_v56 = vld [vmem:[#allocation8 + $0x318] sm:$0xff] }
 0x2ce   : > { %2902 = vmatprep.mubr.f32.mxu1 %v7245_v10  ;;  %5322 = vmatpush3.bf16.msra.mxu1 %v5319_v5  ;;  %v5251_v32 = vpack.c.bf16 %v3257_v56, %v3256_v17  ;;  %v3258_v5 = vld [vmem:[#allocation8 + $0x320] sm:$0xff]  ;;  %v7974_v17 = vld [vmem:[#allocation16_spill] sm:$0xff]  ;;  %v7975_v56 = vld [vmem:[#allocation27_spill] sm:$0xff] }
 0x2cf   : > { %5324 = vmatprep.subr.bf16.mxu1 %v5323_v47 }
 0x2d0   : > { %2573 = vmatmul.mubr.f32.gmra.mrb[190].mxu0 %v7248_v39 }
 0x2d1   : > { %4719 = vmatprep.mubr.f32.mxu0 %v2220_v58  ;;  %2903 = vmatmul.mubr.f32.gmra.mrb[206].mxu1 %v6930_v8  ;;  %v5445_v58 = vld [vmem:[#allocation2 + $0x31] sm:$0xff] }
 0x2d2   : > { %2907 = vmatprep.mubr.f32.mxu1 %v6836_v59  ;;  %5326 = vmatpush3.bf16.msra.mxu1 %v5323_v47  ;;  %v5254_v59 = vpack.c.bf16 %v3259_v52, %v3258_v5  ;;  %v3260_v8 = vld [vmem:[#allocation8 + $0x330] sm:$0xff]  ;;  %v3261_v47 = vld [vmem:[#allocation8 + $0x338] sm:$0xff]  ;;  %v7977_v5 = vld [vmem:[#allocation17_spill] sm:$0xff] }
 0x2d3   : > { %v7978_v52 = vld [vmem:[#allocation18_spill] sm:$0xff] }
 0x2d4   : > { %4720 = vmatmul.mubr.f32.vlgmr.msra.gmra.mrb[192].mxu0 %v2221_v49  ;;  %v3263_v49 = vld [vmem:[#allocation8 + $0x348] sm:$0xff] }
 0x2d5   : > { %4722 = vmatprep.mubr.f32.mxu0 %v5444_v44  ;;  %5249 = vmatpush1.bf16.msra.mxu0 %v5248_v12  ;;  %v7973_v12 = vld [vmem:[#allocation14_spill] sm:$0xff]  ;;  %v3265_v44 = vld [vmem:[#allocation8 + $0x358] sm:$0xff] }
 0x2d6   : > { %2908 = vmatmul.mubr.f32.gmra.mrb[208].mxu1 %v6949_v53  ;;  %5250 = vmatprep.subr.bf16.mxu0 %v7903_v51 }
 0x2d7   : > { %2912 = vmatprep.mubr.f32.mxu1 %v6832_v7  ;;  %v5257_v7 = vpack.c.bf16 %v3261_v47, %v3260_v8  ;;  %v3267_v8 = vld [vmem:[#allocation8 + $0x368] sm:$0xff]  ;;  %v7980_v47 = vld [vmem:[#allocation19_spill] sm:$0xff] }
 0x2d8   : > { %4723 = vmatmul.mubr.f32.gmra.mrb[194].mxu0 %v5445_v58  ;;  %v7979_v58 = vld [vmem:[#allocation30_spill] sm:$0xff] }
 0x2d9   : > { %4725 = vmatprep.mubr.f32.mxu0 %v6842_v34  ;;  %5252 = vmatpush1.bf16.msra.mxu0 %v5251_v32  ;;  %v3262_v34 = vld [vmem:[#allocation8 + $0x340] sm:$0xff]  ;;  %v7976_v32 = vld [vmem:[#allocation15_spill] sm:$0xff] }
 0x2da   : > { %2913 = vmatmul.mubr.f32.gmra.mrb[210].mxu1 %v6965_v18  ;;  %5253 = vmatprep.subr.bf16.mxu0 %v7903_v51 }
 0x2db   : > { %2917 = vmatprep.mubr.f32.mxu1 %v6859_v20  ;;  %v5260_v20 = vpack.c.bf16 %v3263_v49, %v3262_v34  ;;  %v7982_v34 = vld [vmem:[#allocation31_spill] sm:$0xff] }
 0x2dc   : > { %4726 = vmatmul.mubr.f32.gmra.mrb[196].mxu0 %v6852_v30  ;;  %v3264_v30 = vld [vmem:[#allocation8 + $0x350] sm:$0xff] }
 0x2dd   : > { %4728 = vmatprep.mubr.f32.mxu0 %v7971_v24  ;;  %5255 = vmatpush1.bf16.msra.mxu0 %v5254_v59  ;;  %v3266_v59 = vld [vmem:[#allocation8 + $0x360] sm:$0xff]  ;;  %v7981_v24 = vld [vmem:[#allocation20_spill] sm:$0xff]  ;;  %v3268_v49 = vld [vmem:[#allocation8 + $0x370] sm:$0xff] }
 0x2de   : > { %2918 = vmatmul.mubr.f32.gmra.mrb[212].mxu1 %v7972_v29  ;;  %5256 = vmatprep.subr.bf16.mxu0 %v7903_v51 }
 0x2df   : > { %2922 = vmatprep.mubr.f32.mxu1 %v6854_v43  ;;  %v5263_v43 = vpack.c.bf16 %v3265_v44, %v3264_v30  ;;  %v3270_v30 = vld [vmem:[#allocation8 + $0x380] sm:$0xff]  ;;  %v3271_v44 = vld [vmem:[#allocation8 + $0x388] sm:$0xff] }
 0x2e0   : > { %4729 = vmatmul.mubr.f32.gmra.mrb[198].mxu0 %v7973_v12  ;;  %v3269_v12 = vld [vmem:[#allocation8 + $0x378] sm:$0xff] }
 0x2e1   : > { %4731 = vmatprep.mubr.f32.mxu0 %v7974_v17  ;;  %5258 = vmatpush1.bf16.msra.mxu0 %v5257_v7  ;;  %v5266_v7 = vpack.c.bf16 %v3267_v8, %v3266_v59  ;;  %v7983_v17 = vld [vmem:[#allocation21_spill] sm:$0xff]  ;;  %v7988_v8 = vld [vmem:[#allocation28_spill] sm:$0xff] }
 0x2e2   : > { %2923 = vmatmul.mubr.f32.gmra.mrb[214].mxu1 %v7975_v56  ;;  %5259 = vmatprep.subr.bf16.mxu0 %v7903_v51  ;;  %v7987_v59 = vld [vmem:[#allocation25_spill] sm:$0xff] }
 0x2e3   : > { %2927 = vmatprep.mubr.f32.mxu1 %v7976_v32  ;;  %v7985_v32 = vld [vmem:[#allocation23_spill] sm:$0xff] }
 0x2e4   : > { %4732 = vmatmul.mubr.f32.gmra.mrb[200].mxu0 %v7977_v5  ;;  %v7986_v5 = vld [vmem:[#allocation24_spill] sm:$0xff] }
 0x2e5   : > { %4734 = vmatprep.mubr.f32.mxu0 %v7978_v52  ;;  %5261 = vmatpush1.bf16.msra.mxu0 %v5260_v20  ;;  %v7984_v20 = vld [vmem:[#allocation22_spill] sm:$0xff]  ;;  %v3272_v52 = vld [vmem:[#allocation8 + $0x390] sm:$0xff] }
 0x2e6   : > { %2928 = vmatmul.mubr.f32.gmra.mrb[216].mxu1 %v7979_v58  ;;  %5262 = vmatprep.subr.bf16.mxu0 %v7903_v51 }
 0x2e7   : > { %2932 = vmatprep.mubr.f32.mxu1 %v6875_v14  ;;  %v5269_v14 = vpack.c.bf16 %v3269_v12, %v3268_v49  ;;  %v7990_v49 = vld [vmem:[#allocation29_spill] sm:$0xff]  ;;  %v7991_v12 = vld [vmem:[#allocation32_spill] sm:$0xff] }
 0x2e8   : > { %4735 = vmatmul.mubr.f32.gmra.mrb[202].mxu0 %v7980_v47  ;;  %v7989_v47 = vld [vmem:[#allocation39_spill] sm:$0xff] }
 0x2e9   : > { %4737 = vmatprep.mubr.f32.mxu0 %v7981_v24  ;;  %5264 = vmatpush1.bf16.msra.mxu0 %v5263_v43  ;;  %v3273_v43 = vld [vmem:[#allocation8 + $0x398] sm:$0xff]  ;;  %v3274_v24 = vld [vmem:[#allocation8 + $0x3a0] sm:$0xff] }
 0x2ea   : > { %2933 = vmatmul.mubr.f32.gmra.mrb[218].mxu1 %v7982_v34  ;;  %5265 = vmatprep.subr.bf16.mxu0 %v7903_v51 }
 0x2eb   : > { %2937 = vmatprep.mubr.f32.mxu1 %v6901_v22  ;;  %v5272_v22 = vpack.c.bf16 %v3271_v44, %v3270_v30  ;;  %v7993_v30 = vld [vmem:[#allocation36_spill] sm:$0xff]  ;;  %v3278_v44 = vld [vmem:[#allocation8 + $0x3c0] sm:$0xff] }
 0x2ec   : > { %4738 = vmatmul.mubr.f32.gmra.mrb[204].mxu0 %v7983_v17  ;;  %v3276_v17 = vld [vmem:[#allocation8 + $0x3b0] sm:$0xff] }
 0x2ed   : > { %4740 = vmatprep.mubr.f32.mxu0 %v7984_v20  ;;  %5267 = vmatpush1.bf16.msra.mxu0 %v5266_v7  ;;  %v3275_v7 = vld [vmem:[#allocation8 + $0x3a8] sm:$0xff]  ;;  %v3277_v20 = vld [vmem:[#allocation8 + $0x3b8] sm:$0xff] }
 0x2ee   : > { %2938 = vmatmul.mubr.f32.gmra.mrb[220].mxu1 %v7056_v21  ;;  %5268 = vmatprep.subr.bf16.mxu0 %v7903_v51 }
 0x2ef   : > { %2942 = vmatprep.mubr.f32.mxu1 %v6897_v57  ;;  %v5275_v57 = vpack.c.bf16 %v3273_v43, %v3272_v52  ;;  %v3281_v52 = vld [vmem:[#allocation8 + $0x3d8] sm:$0xff]  ;;  %v3282_v43 = vld [vmem:[#allocation8 + $0x3e0] sm:$0xff] }
 0x2f0   : > { %4741 = vmatmul.mubr.f32.gmra.mrb[206].mxu0 %v7985_v32  ;;  %v3279_v32 = vld [vmem:[#allocation8 + $0x3c8] sm:$0xff] }
 0x2f1   : > { %4743 = vmatprep.mubr.f32.mxu0 %v7986_v5  ;;  %5270 = vmatpush1.bf16.msra.mxu0 %v5269_v14  ;;  %v7992_v14 = vld [vmem:[#allocation33_spill] sm:$0xff] }
 0x2f2   : > { %2943 = vmatmul.mubr.f32.gmra.mrb[222].mxu1 %v7067_v26  ;;  %5271 = vmatprep.subr.bf16.mxu0 %v7903_v51  ;;  %v7994_v5 = vld [vmem:[#allocation37_spill] sm:$0xff] }
 0x2f3   : > { %2947 = vmatprep.mubr.f32.mxu1 %v6921_v61  ;;  %v5278_v61 = vpack.c.bf16 %v3275_v7, %v3274_v24  ;;  %v7995_v24 = vld [vmem:[#allocation41_spill] sm:$0xff]  ;;  %v5446_v7 = vld [vmem:[#allocation2 + $0x48] sm:$0xff] }
 0x2f4   : > { %4744 = vmatmul.mubr.f32.gmra.mrb[208].mxu0 %v7987_v59  ;;  %v3283_v59 = vld [vmem:[#allocation8 + $0x3e8] sm:$0xff] }
 0x2f5   : > { %4746 = vmatprep.mubr.f32.mxu0 %v7988_v8  ;;  %5273 = vmatpush1.bf16.msra.mxu0 %v5272_v22  ;;  %v3280_v22 = vld [vmem:[#allocation8 + $0x3d0] sm:$0xff] }
 0x2f6   : > { %2948 = vmatmul.mubr.f32.gmra.mrb[224].mxu1 %v7989_v47  ;;  %5274 = vmatprep.subr.bf16.mxu0 %v7903_v51  ;;  %v3284_v8 = vld [vmem:[#allocation8 + $0x3f0] sm:$0xff] }
 0x2f7   : > { %2952 = vmatprep.mubr.f32.mxu1 %v6925_v36  ;;  %v5281_v36 = vpack.c.bf16 %v3277_v20, %v3276_v17  ;;  %v7998_v17 = vld [vmem:[#allocation42_spill] sm:$0xff]  ;;  %v7999_v20 = vld [vmem:[#allocation35_spill] sm:$0xff] }
 0x2f8   : > { %4747 = vmatmul.mubr.f32.gmra.mrb[210].mxu0 %v7990_v49  ;;  %v7996_v49 = vld [vmem:[#allocation40_spill] sm:$0xff] }
 0x2f9   : > { %4749 = vmatprep.mubr.f32.mxu0 %v7991_v12  ;;  %5276 = vmatpush1.bf16.msra.mxu0 %v5275_v57  ;;  %v3285_v57 = vld [vmem:[#allocation8 + $0x3f8] sm:$0xff] }
 0x2fa   : > { %2953 = vmatmul.mubr.f32.gmra.mrb[226].mxu1 %v7095_v37  ;;  %5277 = vmatprep.subr.bf16.mxu0 %v7903_v51 }
 0x2fb   : > { %2957 = vmatprep.mubr.f32.mxu1 %v6944_v25  ;;  %v5284_v25 = vpack.c.bf16 %v3279_v32, %v3278_v44  ;;  %v8001_v44 = vld [vmem:[#allocation38_spill] sm:$0xff] }
 0x2fc   : > { %4750 = vmatmul.mubr.f32.gmra.mrb[212].mxu0 %v7992_v14  ;;  %v5450_v32 = vld [vmem:[#allocation2 + $0x67] sm:$0xff] }
 0x2fd   : > { %4752 = vmatprep.mubr.f32.mxu0 %v7993_v30  ;;  %5279 = vmatpush1.bf16.msra.mxu0 %v5278_v61  ;;  %v5447_v61 = vld [vmem:[#allocation2 + $0x47] sm:$0xff] }
 0x2fe   : > { %2958 = vmatmul.mubr.f32.gmra.mrb[228].mxu1 %v7114_v16  ;;  %5280 = vmatprep.subr.bf16.mxu0 %v7903_v51 }
 0x2ff   : > { %2962 = vmatprep.mubr.f32.mxu1 %v6962_v48  ;;  %v5287_v48 = vpack.c.bf16 %v3281_v52, %v3280_v22  ;;  %v5452_v22 = vld [vmem:[#allocation2 + $0x88] sm:$0xff]  ;;  %v5453_v52 = vld [vmem:[#allocation2 + $0x90] sm:$0xff] }
 0x300   : > { %4753 = vmatmul.mubr.f32.gmra.mrb[214].mxu0 %v7994_v5 }
 0x301   : > { %4755 = vmatprep.mubr.f32.mxu0 %v7097_v15  ;;  %5282 = vmatpush1.bf16.msra.mxu0 %v5281_v36  ;;  %v8000_v36 = vld [vmem:[#allocation43_spill] sm:$0xff] }
 0x302   : > { %2963 = vmatmul.mubr.f32.gmra.mrb[230].mxu1 %v7125_v23  ;;  %5283 = vmatprep.subr.bf16.mxu0 %v7903_v51 }
 0x303   : > { %2967 = vmatprep.mubr.f32.mxu1 %v6983_v6  ;;  %v5290_v6 = vpack.c.bf16 %v3283_v59, %v3282_v43 }
 0x304   : > { %4756 = vmatmul.mubr.f32.gmra.mrb[216].mxu0 %v7100_v2 }
 0x305   : > { %4758 = vmatprep.mubr.f32.mxu0 %v7127_v41  ;;  %5285 = vmatpush1.bf16.msra.mxu0 %v5284_v25  ;;  %v8002_v25 = vld [vmem:[#allocation47_spill] sm:$0xff] }
 0x306   : > { %2968 = vmatmul.mubr.f32.gmra.mrb[232].mxu1 %v7141_v27  ;;  %5286 = vmatprep.subr.bf16.mxu0 %v7903_v51 }
 0x307   : > { %2972 = vmatprep.mubr.f32.mxu1 %v6998_v46  ;;  %v5293_v46 = vpack.c.bf16 %v3285_v57, %v3284_v8 }
 0x308   : > { %4759 = vmatmul.mubr.f32.gmra.mrb[218].mxu0 %v7130_v9 }
 0x309   : > { %4761 = vmatprep.mubr.f32.mxu0 %v7153_v4  ;;  %5288 = vmatpush1.bf16.msra.mxu0 %v5287_v48 }
 0x30a   : > { %2973 = vmatmul.mubr.f32.gmra.mrb[234].mxu1 %v7151_v28  ;;  %5289 = vmatprep.subr.bf16.mxu0 %v7903_v51 }
 0x30b   : > { %2977 = vmatprep.mubr.f32.mxu1 %v7019_v11  ;;  %v7997_v11 = vld [vmem:[#allocation34_spill] sm:$0xff] }
 0x30c   : > { %4762 = vmatmul.mubr.f32.gmra.mrb[220].mxu0 %v7156_v19 }
 0x30d   : > { %4764 = vmatprep.mubr.f32.mxu0 %v7177_v42  ;;  %5291 = vmatpush1.bf16.msra.mxu0 %v5290_v6  ;;  %v5454_v6 = vld [vmem:[#allocation2 + $0xa8] sm:$0xff] }
 0x30e   : > { %2978 = vmatmul.mubr.f32.gmra.mrb[236].mxu1 %v7167_v13  ;;  %5292 = vmatprep.subr.bf16.mxu0 %v7903_v51  ;;  %v5448_v51 = vld [vmem:[#allocation2 + $0x4f] sm:$0xff] }
 0x30f   : > { %2982 = vmatprep.mubr.f32.mxu1 %v7034_v38  ;;  %v5449_v38 = vld [vmem:[#allocation2 + $0x68] sm:$0xff] }
 0x310   : > { %4765 = vmatmul.mubr.f32.gmra.mrb[222].mxu0 %v7995_v24 }
 0x311   : > { %5294 = vmatpush1.bf16.msra.mxu0 %v5293_v46  ;;  %3366 = vmatprep.mubr.f32.mxu0 %v5446_v7 }
 0x312   : > { %2983 = vmatmul.mubr.f32.gmra.mrb[238].mxu1 %v7996_v49 }
 0x313   : > { %2987 = vmatprep.mubr.f32.mxu1 %v7997_v11 }
 0x314   : > { %3367 = vmatmul.mubr.f32.vlgmr.msra.gmra.mrb[224].mxu0 %v5447_v61 }
 0x315   : > { %3371 = vmatprep.mubr.f32.mxu0 %v7231_v3  ;;  %v5451_v3 = vld [vmem:[#allocation2 + $0x6f] sm:$0xff] }
 0x316   : > { %2988 = vmatmul.mubr.f32.gmra.mrb[240].mxu1 %v7998_v17 }
 0x317   : > { %2992 = vmatprep.mubr.f32.mxu1 %v7999_v20 }
 0x318   : > { %3372 = vmatmul.mubr.f32.gmra.mrb[226].mxu0 %v5448_v51  ;;  %v5455_v51 = vld [vmem:[#allocation2 + $0xb0] sm:$0xff] }
 0x319   : > { %3376 = vmatprep.mubr.f32.mxu0 %v5449_v38 }
 0x31a   : > { %2993 = vmatmul.mubr.f32.gmra.mrb[242].mxu1 %v8000_v36 }
 0x31b   : > { %2997 = vmatprep.mubr.f32.mxu1 %v8001_v44 }
 0x31c   : > { %3377 = vmatmul.mubr.f32.gmra.mrb[228].mxu0 %v5450_v32 }
 0x31d   : > { %3381 = vmatprep.mubr.f32.mxu0 %v7245_v10 }
 0x31e   : > { %2998 = vmatmul.mubr.f32.gmra.mrb[244].mxu1 %v8002_v25 }
 0x31f   : > { %3002 = vmatprep.mubr.f32.mxu1 %v7092_v1 }
 0x320   : > { %3382 = vmatmul.mubr.f32.gmra.mrb[230].mxu0 %v5451_v3 }
 0x321   : > { %3386 = vmatprep.mubr.f32.mxu0 %v5452_v22 }
 0x322   : > { %3003 = vmatmul.mubr.f32.gmra.mrb[246].mxu1 %v7208_v0 }
 0x323   : > { %3007 = vmatprep.mubr.f32.mxu1 %v7111_v63 }
 0x324   : > { %3387 = vmatmul.mubr.f32.gmra.mrb[232].mxu0 %v6949_v53 }
 0x325   : > { %3391 = vmatprep.mubr.f32.mxu0 %v5453_v52  ;;  %v5456_v52 = vld [vmem:[#allocation2 + $0xc8] sm:$0xff] }
 0x326   : > { %3008 = vmatmul.mubr.f32.gmra.mrb[248].mxu1 %v7214_v54 }
 0x327   : > { %3012 = vmatprep.mubr.f32.mxu1 %v7122_v35  ;;  %v2419_v10 = vpop.f32.mrb[128].mxu0  ;;  %v4641_v48 = vpop.f32.mrb[160].mxu1 }
 0x328   : > { %v2421_v43 = vpop.f32.mrb[129].mxu0  ;;  %3392 = vmatmul.mubr.f32.gmra.mrb[234].mxu0 %v6965_v18  ;;  %v2644_v59 = vpop.f32.mrb[161].mxu1 }
 0x329   : > { %3396 = vmatprep.mubr.f32.mxu0 %v5454_v6  ;;  %v7342_v8 = vadd.f32 %v2644_v59, %v2419_v10 }
 0x32a   : > { %3013 = vmatmul.mubr.f32.gmra.mrb[250].mxu1 %v7220_v40 }
 0x32b   : > { %3017 = vmatprep.mubr.f32.mxu1 %v7138_v45  ;;  %v2424_v53 = vpop.f32.mrb[130].mxu0  ;;  %v4644_v46 = vpop.f32.mrb[162].mxu1 }
 0x32c   : > { %v7346_v57 = vadd.f32 %v4641_v48, %v2424_v53  ;;  %v2426_v7 = vpop.f32.mrb[131].mxu0  ;;  %3397 = vmatmul.mubr.f32.gmra.mrb[236].mxu0 %v7972_v29  ;;  %v2654_v61 = vpop.f32.mrb[163].mxu1  ;;  %v5457_v29 = vld [vmem:[#allocation2 + $0x49] sm:$0xff] }
 0x32d   : > { %3401 = vmatprep.mubr.f32.mxu0 %v5455_v51  ;;  %v5458_v53 = vld [vmem:[#allocation2 + $0xd0] sm:$0xff] }
 0x32e   : > { %3018 = vmatmul.mubr.f32.gmra.mrb[252].mxu1 %v7226_v60  ;;  %v5459_v7 = vld [vmem:[#allocation2 + $0x51] sm:$0xff] }
 0x32f   : > { %3022 = vmatprep.mubr.f32.mxu1 %v7148_v33  ;;  %v2429_v18 = vpop.f32.mrb[132].mxu0  ;;  %v4647_v32 = vpop.f32.mrb[164].mxu1 }
 0x330   : > { %v7351_v38 = vadd.f32 %v2654_v61, %v2429_v18  ;;  %v2431_v3 = vpop.f32.mrb[133].mxu0  ;;  %3402 = vmatmul.mubr.f32.gmra.mrb[238].mxu0 %v7975_v56  ;;  %v2664_v22 = vpop.f32.mrb[165].mxu1  ;;  %v5460_v56 = vld [vmem:[#allocation2 + $0x69] sm:$0xff] }
 0x331   : > { %3406 = vmatprep.mubr.f32.mxu0 %v5456_v52  ;;  %v5461_v52 = vld [vmem:[#allocation2 + $0xe8] sm:$0xff] }
 0x332   : > { %3023 = vmatmul.mubr.f32.gmra.mrb[254].mxu1 %v7234_v50 }
 0x333   : > { %4799 = vmatprep.mubr.f32.mxu1 %v5457_v29  ;;  %v2434_v10 = vpop.f32.mrb[134].mxu0  ;;  %v4650_v43 = vpop.f32.mrb[166].mxu1  ;;  %v5462_v29 = vld [vmem:[#allocation2 + $0x71] sm:$0xff] }
 0x334   : > { %v7355_v48 = vadd.f32 %v4644_v46, %v2434_v10  ;;  %v2436_v59 = vpop.f32.mrb[135].mxu0  ;;  %3407 = vmatmul.mubr.f32.gmra.mrb[240].mxu0 %v7979_v58  ;;  %v2674_v6 = vpop.f32.mrb[167].mxu1  ;;  %v5463_v58 = vld [vmem:[#allocation2 + $0x89] sm:$0xff] }
 0x335   : > { %3411 = vmatprep.mubr.f32.mxu0 %v5458_v53 }
 0x336   : > { %4800 = vmatmul.mubr.f32.vlgmr.msra.gmra.mrb[0].mxu1 %v5459_v7 }
 0x337   : > { %4802 = vmatprep.mubr.f32.mxu1 %v5460_v56  ;;  %v2439_v61 = vpop.f32.mrb[136].mxu0  ;;  %v4653_v18 = vpop.f32.mrb[168].mxu1  ;;  %v5464_v56 = vld [vmem:[#allocation2 + $0xf0] sm:$0xff] }
 0x338   : > { %v7358_v51 = vadd.f32 %v2664_v22, %v2439_v61  ;;  %v2441_v3 = vpop.f32.mrb[137].mxu0  ;;  %3412 = vmatmul.mubr.f32.gmra.mrb[242].mxu0 %v7982_v34  ;;  %v2684_v46 = vpop.f32.mrb[169].mxu1  ;;  %v5465_v61 = vld [vmem:[#allocation2 + $0x91] sm:$0xff]  ;;  %v5466_v34 = vld [vmem:[#allocation2 + $0xa9] sm:$0xff] }
 0x339   : > { %3416 = vmatprep.mubr.f32.mxu0 %v5461_v52 }
 0x33a   : > { %4803 = vmatmul.mubr.f32.gmra.mrb[2].mxu1 %v5462_v29 }
 0x33b   : > { %4805 = vmatprep.mubr.f32.mxu1 %v5463_v58  ;;  %v2444_v10 = vpop.f32.mrb[138].mxu0 }
 0x33c   : > { %v7361_v59 = vadd.f32 %v4647_v32, %v2444_v10  ;;  %v7363_v53 = vpop.f32.mrb[170].mxu1  ;;  %v2446_v7 = vpop.f32.mrb[139].mxu0  ;;  %3417 = vmatmul.mubr.f32.gmra.mrb[244].mxu0 %v7056_v21  ;;  %v5467_v10 = vld [vmem:[#allocation2 + $0x108] sm:$0xff] }
 0x33d   : > { %v2694_v22 = vpop.f32.mrb[171].mxu1  ;;  %3421 = vmatprep.mubr.f32.mxu0 %v5464_v56  ;;  %v5468_v7 = vld [vmem:[#allocation2 + $0xb1] sm:$0xff]  ;;  %v5469_v21 = vld [vmem:[#allocation2 + $0xc9] sm:$0xff] }
 0x33e   : > { %8003 = vst [vmem:[#allocation13_spill] sm:$0xff] %v7361_v59  ;;  %4806 = vmatmul.mubr.f32.gmra.mrb[4].mxu1 %v5465_v61 }
 0x33f   : > { %4808 = vmatprep.mubr.f32.mxu1 %v5466_v34  ;;  %v2449_v3 = vpop.f32.mrb[140].mxu0  ;;  %v5470_v34 = vld [vmem:[#allocation2 + $0x110] sm:$0xff] }
 0x340   : > { %v7366_v52 = vadd.f32 %v2674_v6, %v2449_v3  ;;  %v7368_v29 = vpop.f32.mrb[172].mxu1  ;;  %v2451_v58 = vpop.f32.mrb[141].mxu0  ;;  %3422 = vmatmul.mubr.f32.gmra.mrb[246].mxu0 %v7067_v26  ;;  %v5471_v26 = vld [vmem:[#allocation2 + $0xd1] sm:$0xff] }
 0x341   : > { %v2704_v32 = vpop.f32.mrb[173].mxu1  ;;  %3426 = vmatprep.mubr.f32.mxu0 %v5467_v10  ;;  %v5472_v58 = vld [vmem:[#allocation2 + $0xe9] sm:$0xff] }
 0x342   : > { %4809 = vmatmul.mubr.f32.gmra.mrb[6].mxu1 %v5468_v7 }
 0x343   : > { %4811 = vmatprep.mubr.f32.mxu1 %v5469_v21  ;;  %v2454_v56 = vpop.f32.mrb[142].mxu0 }
 0x344   : > { %v7371_v59 = vadd.f32 %v4650_v43, %v2454_v56  ;;  %v2456_v61 = vpop.f32.mrb[143].mxu0  ;;  %3427 = vmatmul.mubr.f32.gmra.mrb[248].mxu0 %v7989_v47  ;;  %v7374_v6 = vpop.f32.mrb[174].mxu1  ;;  %v5473_v43 = vld [vmem:[#allocation2 + $0x128] sm:$0xff]  ;;  %v5474_v56 = vld [vmem:[#allocation2 + $0xf1] sm:$0xff] }
 0x345   : > { %3431 = vmatprep.mubr.f32.mxu0 %v5470_v34  ;;  %v7376_v3 = vpop.f32.mrb[175].mxu1  ;;  %v5475_v47 = vld [vmem:[#allocation2 + $0x109] sm:$0xff] }
 0x346   : > { %8004 = vst [vmem:[#allocation26_spill] sm:$0xff] %v7371_v59  ;;  %4812 = vmatmul.mubr.f32.gmra.mrb[8].mxu1 %v5471_v26 }
 0x347   : > { %4814 = vmatprep.mubr.f32.mxu1 %v5472_v58  ;;  %v2459_v10 = vpop.f32.mrb[144].mxu0  ;;  %v5476_v58 = vld [vmem:[#allocation2 + $0x130] sm:$0xff] }
 0x348   : > { %v7378_v7 = vadd.f32 %v2684_v46, %v2459_v10  ;;  %v2461_v21 = vpop.f32.mrb[145].mxu0  ;;  %3432 = vmatmul.mubr.f32.gmra.mrb[250].mxu0 %v7095_v37  ;;  %v5477_v10 = vld [vmem:[#allocation2 + $0x111] sm:$0xff]  ;;  %v5478_v37 = vld [vmem:[#allocation2 + $0x129] sm:$0xff] }
 0x349   : > { %3436 = vmatprep.mubr.f32.mxu0 %v5473_v43 }
 0x34a   : > { %4815 = vmatmul.mubr.f32.gmra.mrb[10].mxu1 %v5474_v56 }
 0x34b   : > { %4817 = vmatprep.mubr.f32.mxu1 %v5475_v47  ;;  %v2464_v61 = vpop.f32.mrb[146].mxu0 }
 0x34c   : > { %v7381_v34 = vadd.f32 %v4653_v18, %v2464_v61  ;;  %v2466_v59 = vpop.f32.mrb[147].mxu0  ;;  %3437 = vmatmul.mubr.f32.gmra.mrb[252].mxu0 %v7114_v16  ;;  %v5479_v18 = vld [vmem:[#allocation2 + $0x148] sm:$0xff] }
 0x34d   : > { %v7384_v26 = vpop.f32.mrb[176].mxu1  ;;  %3441 = vmatprep.mubr.f32.mxu0 %v5476_v58  ;;  %v5480_v59 = vld [vmem:[#allocation2 + $0x131] sm:$0xff] }
 0x34e   : > { %v2724_v46 = vpop.f32.mrb[177].mxu1  ;;  %4818 = vmatmul.mubr.f32.gmra.mrb[12].mxu1 %v5477_v10 }
 0x34f   : > { %4820 = vmatprep.mubr.f32.mxu1 %v5478_v37  ;;  %v2469_v21 = vpop.f32.mrb[148].mxu0 }
 0x350   : > { %v7386_v43 = vadd.f32 %v2694_v22, %v2469_v21  ;;  %v2471_v56 = vpop.f32.mrb[149].mxu0  ;;  %3442 = vmatmul.mubr.f32.gmra.mrb[254].mxu0 %v7125_v23  ;;  %v5481_v22 = vld [vmem:[#allocation2 + $0x150] sm:$0xff] }
 0x351   : > { %3446 = vmatprep.mubr.f32.mxu0 %v5479_v18  ;;  %v8006_v18 = vld [vmem:[#allocation45_spill] sm:$0xff] }
 0x352   : > { %4821 = vmatmul.mubr.f32.gmra.mrb[14].mxu1 %v5480_v59 }
 0x353   : > { %4823 = vmatprep.mubr.f32.mxu1 %v7991_v12  ;;  %v2474_v16 = vpop.f32.mrb[150].mxu0 }
 0x354   : > { %v7391_v47 = vadd.f32 %v7363_v53, %v2474_v16  ;;  %v2476_v61 = vpop.f32.mrb[151].mxu0  ;;  %3447 = vmatmul.mubr.f32.gmra.mrb[0].mxu0 %v7141_v27  ;;  %v5482_v53 = vld [vmem:[#allocation2 + $0x168] sm:$0xff] }
 0x355   : > { %v7394_v58 = vpop.f32.mrb[178].mxu1  ;;  %3451 = vmatprep.mubr.f32.mxu0 %v5481_v22 }
 0x356   : > { %v2734_v10 = vpop.f32.mrb[179].mxu1  ;;  %4824 = vmatmul.mubr.f32.gmra.mrb[16].mxu1 %v7992_v14 }
 0x357   : > { %4826 = vmatprep.mubr.f32.mxu1 %v7993_v30  ;;  %v2479_v23 = vpop.f32.mrb[152].mxu0  ;;  %v5483_v30 = vld [vmem:[#allocation2 + $0x170] sm:$0xff] }
 0x358   : > { %v7398_v37 = vadd.f32 %v2704_v32, %v2479_v23  ;;  %v2481_v12 = vpop.f32.mrb[153].mxu0  ;;  %3452 = vmatmul.mubr.f32.gmra.mrb[2].mxu0 %v7151_v28 }
 0x359   : > { %3456 = vmatprep.mubr.f32.mxu0 %v5482_v53 }
 0x35a   : > { %4827 = vmatmul.mubr.f32.gmra.mrb[18].mxu1 %v7994_v5 }
 0x35b   : > { %4829 = vmatprep.mubr.f32.mxu1 %v7097_v15  ;;  %v2484_v27 = vpop.f32.mrb[154].mxu0 }
 0x35c   : > { %v7404_v21 = vadd.f32 %v7368_v29, %v2484_v27  ;;  %v2486_v56 = vpop.f32.mrb[155].mxu0  ;;  %3457 = vmatmul.mubr.f32.gmra.mrb[4].mxu0 %v7167_v13 }
 0x35d   : > { %v4671_v14 = vpop.f32.mrb[180].mxu1  ;;  %3461 = vmatprep.mubr.f32.mxu0 %v5483_v30 }
 0x35e   : > { %v2744_v32 = vpop.f32.mrb[181].mxu1  ;;  %4830 = vmatmul.mubr.f32.gmra.mrb[20].mxu1 %v7100_v2 }
 0x35f   : > { %4832 = vmatprep.mubr.f32.mxu1 %v7127_v41  ;;  %v2489_v28 = vpop.f32.mrb[156].mxu0 }
 0x360   : > { %v7410_v5 = vadd.f32 %v7376_v3, %v2489_v28  ;;  %v2491_v15 = vpop.f32.mrb[157].mxu0  ;;  %3462 = vmatmul.mubr.f32.gmra.mrb[6].mxu0 %v7996_v49 }
 0x361   : > { %3466 = vmatprep.mubr.f32.mxu0 %v7997_v11 }
 0x362   : > { %4833 = vmatmul.mubr.f32.gmra.mrb[22].mxu1 %v7130_v9 }
 0x363   : > { %4835 = vmatprep.mubr.f32.mxu1 %v7153_v4  ;;  %v2494_v13 = vpop.f32.mrb[158].mxu0  ;;  %v8005_v4 = vld [vmem:[#allocation44_spill] sm:$0xff] }
 0x364   : > { %v7417_v29 = vadd.f32 %v7374_v6, %v2494_v13  ;;  %v2496_v2 = vpop.f32.mrb[159].mxu0  ;;  %3467 = vmatmul.mubr.f32.gmra.mrb[8].mxu0 %v7998_v17 }
 0x365   : > { %v4674_v41 = vpop.f32.mrb[182].mxu1  ;;  %3471 = vmatprep.mubr.f32.mxu0 %v7999_v20 }
 0x366   : > { %v2754_v3 = vpop.f32.mrb[183].mxu1  ;;  %4836 = vmatmul.mubr.f32.gmra.mrb[24].mxu1 %v7156_v19  ;;  %v2254_v19 = vld [vmem:[#allocation2 + $0x229] sm:$0xff] }
 0x367   : > { %4838 = vmatprep.mubr.f32.mxu1 %v7177_v42  ;;  %v2499_v49 = vpop.f32.mrb[160].mxu0 }
 0x368   : > { %v7423_v11 = vadd.f32 %v2724_v46, %v2499_v49  ;;  %v2501_v9 = vpop.f32.mrb[161].mxu0  ;;  %3472 = vmatmul.mubr.f32.gmra.mrb[10].mxu0 %v8000_v36 }
 0x369   : > { %3476 = vmatprep.mubr.f32.mxu0 %v8001_v44  ;;  %v2255_v44 = vld [vmem:[#allocation2 + $0x231] sm:$0xff] }
 0x36a   : > { %4839 = vmatmul.mubr.f32.gmra.mrb[26].mxu1 %v7995_v24 }
 0x36b   : > { %4841 = vmatprep.mubr.f32.mxu1 %v8005_v4  ;;  %v2504_v17 = vpop.f32.mrb[162].mxu0 }
 0x36c   : > { %v7430_v20 = vadd.f32 %v7384_v26, %v2504_v17  ;;  %v2506_v6 = vpop.f32.mrb[163].mxu0  ;;  %3477 = vmatmul.mubr.f32.gmra.mrb[12].mxu0 %v8002_v25  ;;  %v4677_v42 = vpop.f32.mrb[184].mxu1 }
 0x36d   : > { %3481 = vmatprep.mubr.f32.mxu0 %v7092_v1  ;;  %v2764_v46 = vpop.f32.mrb[185].mxu1 }
 0x36e   : > { %4842 = vmatmul.mubr.f32.gmra.mrb[28].mxu1 %v8006_v18 }
 0x36f   : > { %v2509_v36 = vpop.f32.mrb[164].mxu0  ;;  %4844 = vmatprep.mubr.f32.mxu1 %v2254_v19 }
 0x370   : > { %v7435_v24 = vadd.f32 %v2734_v10, %v2509_v36  ;;  %v2511_v59 = vpop.f32.mrb[165].mxu0  ;;  %3482 = vmatmul.mubr.f32.gmra.mrb[14].mxu0 %v7208_v0 }
 0x371   : > { %3486 = vmatprep.mubr.f32.mxu0 %v7111_v63 }
 0x372   : > { %4845 = vmatmul.mubr.f32.gmra.mrb[30].mxu1 %v2255_v44 }
 0x373   : > { %v2514_v26 = vpop.f32.mrb[166].mxu0 }
 0x374   : > { %v7440_v25 = vadd.f32 %v7394_v58, %v2514_v26  ;;  %v2516_v16 = vpop.f32.mrb[167].mxu0  ;;  %3487 = vmatmul.mubr.f32.gmra.mrb[16].mxu0 %v7214_v54  ;;  %v4680_v1 = vpop.f32.mrb[186].mxu1 }
 0x375   : > { %3491 = vmatprep.mubr.f32.mxu0 %v7122_v35  ;;  %v2774_v61 = vpop.f32.mrb[187].mxu1 }
 0x377   : > { %v2519_v22 = vpop.f32.mrb[168].mxu0 }
 0x378   : > { %v7444_v10 = vadd.f32 %v2744_v32, %v2519_v22  ;;  %v2521_v23 = vpop.f32.mrb[169].mxu0  ;;  %3492 = vmatmul.mubr.f32.gmra.mrb[18].mxu0 %v7220_v40 }
 0x379   : > { %3496 = vmatprep.mubr.f32.mxu0 %v7138_v45 }
 0x37b   : > { %v2524_v0 = vpop.f32.mrb[170].mxu0 }
 0x37c   : > { %v7448_v63 = vadd.f32 %v4671_v14, %v2524_v0  ;;  %v2526_v58 = vpop.f32.mrb[171].mxu0  ;;  %3497 = vmatmul.mubr.f32.gmra.mrb[20].mxu0 %v7226_v60  ;;  %v4683_v12 = vpop.f32.mrb[188].mxu1 }
 0x37d   : > { %3501 = vmatprep.mubr.f32.mxu0 %v7148_v33  ;;  %v2784_v54 = vpop.f32.mrb[189].mxu1 }
 0x37f   : > { %v2529_v35 = vpop.f32.mrb[172].mxu0 }
 0x380   : > { %v7452_v53 = vadd.f32 %v2754_v3, %v2529_v35  ;;  %v2531_v27 = vpop.f32.mrb[173].mxu0  ;;  %3502 = vmatmul.mubr.f32.gmra.mrb[22].mxu0 %v7234_v50  ;;  %v8007_v50 = vld [vmem:[#allocation46_spill] sm:$0xff] }
 0x381   : > { %3506 = vmatprep.mubr.f32.mxu0 %v7164_v62  ;;  %v2182_v62 = vld [vmem:[#allocation2 + $0x227] sm:$0xff]  ;;  %v2183_v3 = vld [vmem:[#allocation2 + $0x22f] sm:$0xff] }
 0x383   : > { %v2534_v40 = vpop.f32.mrb[174].mxu0 }
 0x384   : > { %v7456_v45 = vadd.f32 %v4674_v41, %v2534_v40  ;;  %v2536_v56 = vpop.f32.mrb[175].mxu0  ;;  %3507 = vmatmul.mubr.f32.gmra.mrb[24].mxu0 %v7240_v31  ;;  %v4686_v14 = vpop.f32.mrb[190].mxu1 }
 0x385   : > { %3511 = vmatprep.mubr.f32.mxu0 %v7173_v55  ;;  %v2794_v60 = vpop.f32.mrb[191].mxu1 }
 0x387   : > { %v2539_v33 = vpop.f32.mrb[176].mxu0 }
 0x388   : > { %v7460_v30 = vadd.f32 %v2764_v46, %v2539_v33  ;;  %v2541_v32 = vpop.f32.mrb[177].mxu0  ;;  %3512 = vmatmul.mubr.f32.gmra.mrb[26].mxu0 %v7248_v39  ;;  %v2869_v28 = vpop.f32.mrb[192].mxu1 }
 0x389   : > { %3516 = vmatprep.mubr.f32.mxu0 %v8007_v50  ;;  %v2870_v15 = vadd.f32 %v2869_v28, %v7342_v8  ;;  %v2871_v13 = vpop.f32.mrb[193].mxu1 }
 0x38b   : > { %v2544_v2 = vpop.f32.mrb[178].mxu0 }
 0x38c   : > { %v7465_v41 = vadd.f32 %v4677_v42, %v2544_v2  ;;  %v2546_v31 = vpop.f32.mrb[179].mxu0  ;;  %3517 = vmatmul.mubr.f32.gmra.mrb[28].mxu0 %v2182_v62  ;;  %v2874_v55 = vpop.f32.mrb[194].mxu1 }
 0x38d   : > { %3521 = vmatprep.mubr.f32.mxu0 %v8007_v50  ;;  %v2875_v49 = vadd.f32 %v2874_v55, %v7346_v57  ;;  %v2876_v9 = vpop.f32.mrb[195].mxu1 }
 0x38f   : > { %v2549_v39 = vpop.f32.mrb[180].mxu0 }
 0x390   : > { %v7469_v4 = vadd.f32 %v2774_v61, %v2549_v39  ;;  %v2551_v17 = vpop.f32.mrb[181].mxu0  ;;  %3522 = vmatmul.mubr.f32.gmra.mrb[30].mxu0 %v2183_v3  ;;  %v2879_v6 = vpop.f32.mrb[196].mxu1 }
 0x391   : > { %v2880_v8 = vadd.f32 %v2879_v6, %v7351_v38  ;;  %v2881_v19 = vpop.f32.mrb[197].mxu1 }
 0x393   : > { %v2554_v42 = vpop.f32.mrb[182].mxu0 }
 0x394   : > { %v7472_v46 = vadd.f32 %v4680_v1, %v2554_v42  ;;  %v2556_v18 = vpop.f32.mrb[183].mxu0  ;;  %v2884_v36 = vpop.f32.mrb[198].mxu1  ;;  %v8008_v1 = vld [vmem:[#allocation13_spill] sm:$0xff] }
 0x395   : > { %v2885_v44 = vadd.f32 %v2884_v36, %v7355_v48  ;;  %v2886_v59 = vpop.f32.mrb[199].mxu1 }
 0x397   : > { %v2559_v26 = vpop.f32.mrb[184].mxu0 }
 0x398   : > { %v7475_v57 = vadd.f32 %v2784_v54, %v2559_v26  ;;  %v2561_v16 = vpop.f32.mrb[185].mxu0  ;;  %v2889_v61 = vpop.f32.mrb[200].mxu1 }
 0x399   : > { %v2890_v22 = vadd.f32 %v2889_v61, %v7358_v51  ;;  %v2891_v23 = vpop.f32.mrb[201].mxu1 }
 0x39b   : > { %v2564_v0 = vpop.f32.mrb[186].mxu0 }
 0x39c   : > { %v7478_v58 = vadd.f32 %v4683_v12, %v2564_v0  ;;  %v2566_v38 = vpop.f32.mrb[187].mxu0  ;;  %v2894_v35 = vpop.f32.mrb[202].mxu1  ;;  %v8009_v12 = vld [vmem:[#allocation26_spill] sm:$0xff] }
 0x39d   : > { %v2895_v27 = vadd.f32 %v2894_v35, %v8008_v1  ;;  %v2896_v40 = vpop.f32.mrb[203].mxu1 }
 0x39f   : > { %v2569_v56 = vpop.f32.mrb[188].mxu0 }
 0x3a0   : > { %v7481_v33 = vadd.f32 %v2794_v60, %v2569_v56  ;;  %v2571_v48 = vpop.f32.mrb[189].mxu0  ;;  %v2899_v32 = vpop.f32.mrb[204].mxu1 }
 0x3a1   : > { %v2900_v54 = vadd.f32 %v2899_v32, %v7366_v52  ;;  %v2901_v28 = vpop.f32.mrb[205].mxu1 }
 0x3a3   : > { %v2574_v50 = vpop.f32.mrb[190].mxu0 }
 0x3a4   : > { %v7484_v62 = vadd.f32 %v4686_v14, %v2574_v50  ;;  %v2576_v51 = vpop.f32.mrb[191].mxu0  ;;  %v2904_v13 = vpop.f32.mrb[206].mxu1 }
 0x3a5   : > { %v2905_v2 = vadd.f32 %v2904_v13, %v8009_v12  ;;  %v2906_v31 = vpop.f32.mrb[207].mxu1 }
 0x3a7   : > { %v4721_v55 = vpop.f32.mrb[192].mxu0 }
 0x3a8   : > { %v7487_v3 = vadd.f32 %v4721_v55, %v2875_v49  ;;  %v3094_v9 = vpop.f32.mrb[193].mxu0 }
 0x3a9   : > { %v2909_v39 = vpop.f32.mrb[208].mxu1  ;;  %v7489_v60 = vadd.f32 %v3094_v9, %v2870_v15 }
 0x3aa   : > { %v2910_v17 = vadd.f32 %v2909_v39, %v7378_v7  ;;  %v2911_v6 = vpop.f32.mrb[209].mxu1 }
 0x3ab   : > { %v4724_v52 = vpop.f32.mrb[194].mxu0 }
 0x3ac   : > { %v7492_v19 = vadd.f32 %v4724_v52, %v2885_v44  ;;  %v3104_v14 = vpop.f32.mrb[195].mxu0 }
 0x3ad   : > { %v2914_v42 = vpop.f32.mrb[210].mxu1  ;;  %v7494_v18 = vadd.f32 %v3104_v14, %v2880_v8 }
 0x3ae   : > { %v2915_v36 = vadd.f32 %v2914_v42, %v7381_v34  ;;  %v2916_v59 = vpop.f32.mrb[211].mxu1 }
 0x3af   : > { %v4727_v26 = vpop.f32.mrb[196].mxu0 }
 0x3b0   : > { %v7497_v49 = vadd.f32 %v4727_v26, %v2895_v27  ;;  %v3114_v16 = vpop.f32.mrb[197].mxu0 }
 0x3b1   : > { %v2919_v61 = vpop.f32.mrb[212].mxu1  ;;  %v7499_v15 = vadd.f32 %v3114_v16, %v2890_v22 }
 0x3b2   : > { %v2920_v7 = vadd.f32 %v2919_v61, %v7386_v43  ;;  %v2921_v23 = vpop.f32.mrb[213].mxu1 }
 0x3b3   : > { %v4730_v0 = vpop.f32.mrb[198].mxu0 }
 0x3b4   : > { %v7502_v44 = vadd.f32 %v4730_v0, %v2905_v2  ;;  %v3124_v38 = vpop.f32.mrb[199].mxu0 }
 0x3b5   : > { %v2924_v35 = vpop.f32.mrb[214].mxu1  ;;  %v7504_v8 = vadd.f32 %v3124_v38, %v2900_v54 }
 0x3b6   : > { %v2925_v34 = vadd.f32 %v2924_v35, %v7391_v47  ;;  %v2926_v1 = vpop.f32.mrb[215].mxu1 }
 0x3b7   : > { %v4733_v40 = vpop.f32.mrb[200].mxu0 }
 0x3b8   : > { %v7507_v27 = vadd.f32 %v4733_v40, %v2915_v36  ;;  %v3134_v56 = vpop.f32.mrb[201].mxu0 }
 0x3b9   : > { %v2929_v48 = vpop.f32.mrb[216].mxu1  ;;  %v7509_v22 = vadd.f32 %v3134_v56, %v2910_v17 }
 0x3ba   : > { %v2930_v43 = vadd.f32 %v2929_v48, %v7398_v37  ;;  %v2931_v32 = vpop.f32.mrb[217].mxu1 }
 0x3bb   : > { %v4736_v28 = vpop.f32.mrb[202].mxu0 }
 0x3bc   : > { %v7512_v50 = vadd.f32 %v4736_v28, %v2925_v34  ;;  %v3144_v51 = vpop.f32.mrb[203].mxu0 }
 0x3bd   : > { %v2934_v13 = vpop.f32.mrb[218].mxu1  ;;  %v7514_v54 = vadd.f32 %v3144_v51, %v2920_v7 }
 0x3be   : > { %v2935_v47 = vadd.f32 %v2934_v13, %v7404_v21  ;;  %v2936_v12 = vpop.f32.mrb[219].mxu1 }
 0x3bf   : > { %v4739_v2 = vpop.f32.mrb[204].mxu0 }
 0x3c0   : > { %v7517_v31 = vadd.f32 %v4739_v2, %v2935_v47  ;;  %v3154_v55 = vpop.f32.mrb[205].mxu0 }
 0x3c1   : > { %v2939_v9 = vpop.f32.mrb[220].mxu1  ;;  %v7519_v39 = vadd.f32 %v3154_v55, %v2930_v43 }
 0x3c2   : > { %v2940_v37 = vadd.f32 %v2939_v9, %v7410_v5  ;;  %v2941_v17 = vpop.f32.mrb[221].mxu1 }
 0x3c3   : > { %v4742_v6 = vpop.f32.mrb[206].mxu0 }
 0x3c4   : > { %v3164_v52 = vpop.f32.mrb[207].mxu0 }
 0x3c5   : > { %v2944_v14 = vpop.f32.mrb[222].mxu1  ;;  %v7522_v42 = vadd.f32 %v3164_v52, %v2940_v37 }
 0x3c6   : > { %v2945_v36 = vadd.f32 %v2944_v14, %v7417_v29  ;;  %v2946_v59 = vpop.f32.mrb[223].mxu1 }
 0x3c7   : > { %v4745_v21 = vpop.f32.mrb[208].mxu0 }
 0x3c8   : > { %v7525_v26 = vadd.f32 %v4742_v6, %v2945_v36  ;;  %v3174_v16 = vpop.f32.mrb[209].mxu0 }
 0x3c9   : > { %v2949_v61 = vpop.f32.mrb[224].mxu1 }
 0x3ca   : > { %v2950_v7 = vadd.f32 %v2949_v61, %v7423_v11  ;;  %v2951_v23 = vpop.f32.mrb[225].mxu1 }
 0x3cb   : > { %v4748_v0 = vpop.f32.mrb[210].mxu0 }
 0x3cc   : > { %v7528_v38 = vadd.f32 %v3174_v16, %v2950_v7  ;;  %v3184_v5 = vpop.f32.mrb[211].mxu0 }
 0x3cd   : > { %v2954_v35 = vpop.f32.mrb[226].mxu1 }
 0x3ce   : > { %v2955_v34 = vadd.f32 %v2954_v35, %v7430_v20  ;;  %v2956_v1 = vpop.f32.mrb[227].mxu1 }
 0x3cf   : > { %v4751_v40 = vpop.f32.mrb[212].mxu0 }
 0x3d0   : > { %v7531_v56 = vadd.f32 %v4745_v21, %v2955_v34  ;;  %v3194_v29 = vpop.f32.mrb[213].mxu0 }
 0x3d1   : > { %v2959_v48 = vpop.f32.mrb[228].mxu1 }
 0x3d2   : > { %v2960_v43 = vadd.f32 %v2959_v48, %v7435_v24  ;;  %v2961_v32 = vpop.f32.mrb[229].mxu1 }
 0x3d3   : > { %v4754_v28 = vpop.f32.mrb[214].mxu0 }
 0x3d4   : > { %v7534_v51 = vadd.f32 %v3184_v5, %v2960_v43  ;;  %v3204_v11 = vpop.f32.mrb[215].mxu0 }
 0x3d5   : > { %v2964_v13 = vpop.f32.mrb[230].mxu1 }
 0x3d6   : > { %v2965_v47 = vadd.f32 %v2964_v13, %v7440_v25  ;;  %v2966_v12 = vpop.f32.mrb[231].mxu1 }
 0x3d7   : > { %v4757_v2 = vpop.f32.mrb[216].mxu0 }
 0x3d8   : > { %v7537_v55 = vadd.f32 %v4748_v0, %v2965_v47  ;;  %v3214_v20 = vpop.f32.mrb[217].mxu0 }
 0x3d9   : > { %v2969_v9 = vpop.f32.mrb[232].mxu1 }
 0x3da   : > { %v2970_v37 = vadd.f32 %v2969_v9, %v7444_v10  ;;  %v2971_v17 = vpop.f32.mrb[233].mxu1 }
 0x3db   : > { %v4760_v6 = vpop.f32.mrb[218].mxu0 }
 0x3dc   : > { %v7540_v52 = vadd.f32 %v3194_v29, %v2970_v37  ;;  %v3224_v24 = vpop.f32.mrb[219].mxu0 }
 0x3dd   : > { %v2974_v14 = vpop.f32.mrb[234].mxu1 }
 0x3de   : > { %v2975_v36 = vadd.f32 %v2974_v14, %v7448_v63  ;;  %v2976_v59 = vpop.f32.mrb[235].mxu1 }
 0x3df   : > { %v4763_v21 = vpop.f32.mrb[220].mxu0 }
 0x3e0   : > { %v7543_v16 = vadd.f32 %v4751_v40, %v2975_v36  ;;  %v3234_v25 = vpop.f32.mrb[221].mxu0 }
 0x3e1   : > { %v2979_v61 = vpop.f32.mrb[236].mxu1 }
 0x3e2   : > { %v2980_v7 = vadd.f32 %v2979_v61, %v7452_v53  ;;  %v2981_v23 = vpop.f32.mrb[237].mxu1 }
 0x3e3   : > { %v4766_v0 = vpop.f32.mrb[222].mxu0 }
 0x3e4   : > { %v7546_v5 = vadd.f32 %v3204_v11, %v2980_v7  ;;  %v3244_v10 = vpop.f32.mrb[223].mxu0 }
 0x3e5   : > { %v2984_v35 = vpop.f32.mrb[238].mxu1 }
 0x3e6   : > { %v2985_v34 = vadd.f32 %v2984_v35, %v7456_v45  ;;  %v2986_v1 = vpop.f32.mrb[239].mxu1 }
 0x3e7   : > { %v3368_v29 = vpop.f32.mrb[224].mxu0 }
 0x3e8   : > { %v7549_v48 = vadd.f32 %v4754_v28, %v2985_v34  ;;  %v3370_v63 = vpop.f32.mrb[225].mxu0 }
 0x3e9   : > { %v2989_v43 = vpop.f32.mrb[240].mxu1 }
 0x3ea   : > { %v2990_v40 = vadd.f32 %v2989_v43, %v7460_v30  ;;  %v2991_v32 = vpop.f32.mrb[241].mxu1 }
 0x3eb   : > { %v3373_v13 = vpop.f32.mrb[226].mxu0 }
 0x3ec   : > { %v7552_v47 = vadd.f32 %v3214_v20, %v2990_v40  ;;  %v3375_v53 = vpop.f32.mrb[227].mxu0 }
 0x3ed   : > { %v2994_v12 = vpop.f32.mrb[242].mxu1 }
 0x3ee   : > { %v2995_v11 = vadd.f32 %v2994_v12, %v7465_v41  ;;  %v2996_v9 = vpop.f32.mrb[243].mxu1 }
 0x3ef   : > { %v3378_v37 = vpop.f32.mrb[228].mxu0 }
 0x3f0   : > { %v7555_v17 = vadd.f32 %v4757_v2, %v2995_v11  ;;  %v3380_v45 = vpop.f32.mrb[229].mxu0 }
 0x3f1   : > { %v2999_v14 = vpop.f32.mrb[244].mxu1 }
 0x3f2   : > { %v3000_v28 = vadd.f32 %v2999_v14, %v7469_v4  ;;  %v3001_v36 = vpop.f32.mrb[245].mxu1 }
 0x3f3   : > { %v3383_v59 = vpop.f32.mrb[230].mxu0 }
 0x3f4   : > { %v7558_v61 = vadd.f32 %v3224_v24, %v3000_v28  ;;  %v3385_v30 = vpop.f32.mrb[231].mxu0 }
 0x3f5   : > { %v3004_v7 = vpop.f32.mrb[246].mxu1 }
 0x3f6   : > { %v3005_v20 = vadd.f32 %v3004_v7, %v7472_v46  ;;  %v3006_v23 = vpop.f32.mrb[247].mxu1 }
 0x3f7   : > { %v3388_v35 = vpop.f32.mrb[232].mxu0 }
 0x3f8   : > { %v7561_v34 = vadd.f32 %v4760_v6, %v3005_v20  ;;  %v3390_v41 = vpop.f32.mrb[233].mxu0 }
 0x3f9   : > { %v3009_v1 = vpop.f32.mrb[248].mxu1 }
 0x3fa   : > { %v3010_v2 = vadd.f32 %v3009_v1, %v7475_v57  ;;  %v3011_v63 = vpop.f32.mrb[249].mxu1 }
 0x3fb   : > { %v3393_v43 = vpop.f32.mrb[234].mxu0  ;;  %v3824_v63 = vld [vmem:[%s5869_s12 + $0x8] sm:$0xff] }
 0x3fc   : > { %v7564_v40 = vadd.f32 %v3234_v25, %v3010_v2  ;;  %v3395_v4 = vpop.f32.mrb[235].mxu0 }
 0x3fd   : > { %v3014_v32 = vpop.f32.mrb[250].mxu1 }
 0x3fe   : > { %v3015_v24 = vadd.f32 %v3014_v32, %v7478_v58  ;;  %v3016_v53 = vpop.f32.mrb[251].mxu1 }
 0x3ff   : > { %v7567_v12 = vpop.f32.mrb[236].mxu0 }
 0x400   : > { %v7569_v46 = vadd.f32 %v4763_v21, %v3015_v24  ;;  %v3400_v11 = vpop.f32.mrb[237].mxu0 }
 0x401   : > { %v3019_v6 = vpop.f32.mrb[252].mxu1 }
 0x402   : > { %v3020_v9 = vadd.f32 %v3019_v6, %v7481_v33  ;;  %v3021_v45 = vpop.f32.mrb[253].mxu1  ;;  %v7582_v33 = vld [vmem:[%s7782_s4] ss:$0 sm:$0xff] }
 0x403   : > { %v3403_v14 = vpop.f32.mrb[238].mxu0 }
 0x404   : > { %v7572_v57 = vadd.f32 %v3244_v10, %v3020_v9  ;;  %v3405_v25 = vpop.f32.mrb[239].mxu0 }
 0x405   : > { %v3024_v28 = vpop.f32.mrb[254].mxu1 }
 0x406   : > { %v3025_v36 = vadd.f32 %v3024_v28, %v7484_v62  ;;  %v3026_v30 = vpop.f32.mrb[255].mxu1  ;;  %v3826_v28 = vld [vmem:[%s5869_s12 + $0x18] sm:$0xff] }
 0x407   : > { %v7575_v58 = vpop.f32.mrb[240].mxu0 }
 0x408   : > { %v7577_v7 = vadd.f32 %v4766_v0, %v3025_v36  ;;  %v3410_v21 = vpop.f32.mrb[241].mxu0 }
 0x409   : > { %v4801_v20 = vpop.f32.mrb[0].mxu1  ;;  %v3825_v21 = vld [vmem:[%s5869_s12 + $0x10] sm:$0xff] }
 0x40a   : > { %v3599_v23 = vadd.f32 %v4801_v20, %v3373_v13  ;;  %v3593_v41 = vpop.f32.mrb[1].mxu1  ;;  %v3823_v13 = vld [vmem:[%s5869_s12] sm:$0xff] }
 0x40b   : > { %v3594_v10 = vadd.f32 %v3593_v41, %v3368_v29  ;;  %v3413_v1 = vpop.f32.mrb[242].mxu0 }
 0x40c   : > { %v3753_v2 = vadd.f32 %v3599_v23, %v7487_v3  ;;  %v3415_v62 = vpop.f32.mrb[243].mxu0 }
 0x40d   : > { %v3752_v4 = vadd.f32 %v3594_v10, %v7489_v60  ;;  %v4804_v0 = vpop.f32.mrb[2].mxu1 }
 0x40e   : > { %v3792_v32 = vadd.f32 %v7582_v33, %v3753_v2  ;;  %v3609_v24 = vadd.f32 %v4804_v0, %v3383_v59  ;;  %v3603_v53 = vpop.f32.mrb[3].mxu1 }
 0x40f   : > { %v3791_v11 = vadd.f32 %v7582_v33, %v3752_v4  ;;  %v3604_v6 = vadd.f32 %v3603_v53, %v3378_v37  ;;  %v7590_v9 = vpop.f32.mrb[244].mxu0 }
 0x410   : > { %v3856_v29 = vadd.f32 %v3824_v63, %v3792_v32  ;;  %v3755_v3 = vadd.f32 %v3609_v24, %v7492_v19  ;;  %v3420_v45 = vpop.f32.mrb[245].mxu0  ;;  %v3828_v63 = vld [vmem:[%s5869_s12 + $0x28] sm:$0xff] }
 0x411   : > { %v3855_v25 = vadd.f32 %v3823_v13, %v3791_v11  ;;  %v3754_v60 = vadd.f32 %v3604_v6, %v7494_v18  ;;  %v4807_v36 = vpop.f32.mrb[4].mxu1  ;;  %v3827_v13 = vld [vmem:[%s5869_s12 + $0x20] sm:$0xff] }
 0x412   : > { %v3888_v30 = vmax.f32 %v3856_v29, 0.0  ;;  %v3794_v59 = vadd.f32 %v7582_v33, %v3755_v3  ;;  %v3619_v20 = vadd.f32 %v4807_v36, %v3393_v43  ;;  %v3613_v23 = vpop.f32.mrb[5].mxu1 }
 0x413   : > { %v3887_v37 = vmax.f32 %v3855_v25, 0.0  ;;  %v3793_v41 = vadd.f32 %v7582_v33, %v3754_v60  ;;  %v3614_v10 = vadd.f32 %v3613_v23, %v3388_v35  ;;  %v3423_v2 = vpop.f32.mrb[246].mxu0 }
 0x414   : > { %3920 = vst [vmem:[%s7600_s10 + $0x8] sm:$0xff] %v3888_v30  ;;  %v3858_v19 = vadd.f32 %v3826_v28, %v3794_v59  ;;  %v3757_v18 = vadd.f32 %v3619_v20, %v7497_v49  ;;  %v3425_v62 = vpop.f32.mrb[247].mxu0  ;;  %v3830_v28 = vld [vmem:[%s5869_s12 + $0x38] sm:$0xff]  ;;  %v3829_v59 = vld [vmem:[%s5869_s12 + $0x30] sm:$0xff] }
 0x415   : > { %3919 = vst [vmem:[%s7600_s10] sm:$0xff] %v3887_v37  ;;  %v3857_v43 = vadd.f32 %v3825_v21, %v3793_v41  ;;  %v3756_v4 = vadd.f32 %v3614_v10, %v7499_v15  ;;  %v4810_v0 = vpop.f32.mrb[6].mxu1 }
 0x416   : > { %v3890_v35 = vmax.f32 %v3858_v19, 0.0  ;;  %v3796_v32 = vadd.f32 %v7582_v33, %v3757_v18  ;;  %v3629_v24 = vadd.f32 %v4810_v0, %v3403_v14  ;;  %v3623_v53 = vpop.f32.mrb[7].mxu1  ;;  %v3832_v18 = vld [vmem:[%s5869_s12 + $0x48] sm:$0xff] }
 0x417   : > { %v3889_v11 = vmax.f32 %v3857_v43, 0.0  ;;  %v3795_v49 = vadd.f32 %v7582_v33, %v3756_v4  ;;  %v3624_v6 = vadd.f32 %v3623_v53, %v7567_v12  ;;  %v3428_v29 = vpop.f32.mrb[248].mxu0  ;;  %v3831_v4 = vld [vmem:[%s5869_s12 + $0x40] sm:$0xff] }
 0x418   : > { %3922 = vst [vmem:[%s7600_s10 + $0x18] sm:$0xff] %v3890_v35  ;;  %v3860_v3 = vadd.f32 %v3828_v63, %v3796_v32  ;;  %v3759_v45 = vadd.f32 %v3629_v24, %v7502_v44  ;;  %v3430_v15 = vpop.f32.mrb[249].mxu0 }
 0x419   : > { %3921 = vst [vmem:[%s7600_s10 + $0x10] sm:$0xff] %v3889_v11  ;;  %v3859_v25 = vadd.f32 %v3827_v13, %v3795_v49  ;;  %v3758_v14 = vadd.f32 %v3624_v6, %v7504_v8  ;;  %v4813_v60 = vpop.f32.mrb[8].mxu1  ;;  %v3834_v49 = vld [vmem:[%s5869_s12 + $0x58] sm:$0xff]  ;;  %v3833_v15 = vld [vmem:[%s5869_s12 + $0x50] sm:$0xff] }
 0x41a   : > { %v3892_v36 = vmax.f32 %v3860_v3, 0.0  ;;  %v3798_v30 = vadd.f32 %v7582_v33, %v3759_v45  ;;  %v3639_v12 = vadd.f32 %v4813_v60, %v3413_v1  ;;  %v3633_v21 = vpop.f32.mrb[9].mxu1 }
 0x41b   : > { %v3891_v20 = vmax.f32 %v3859_v25, 0.0  ;;  %v3797_v44 = vadd.f32 %v7582_v33, %v3758_v14  ;;  %v3634_v23 = vadd.f32 %v3633_v21, %v7575_v58  ;;  %v3433_v37 = vpop.f32.mrb[250].mxu0 }
 0x41c   : > { %3924 = vst [vmem:[%s7600_s10 + $0x28] sm:$0xff] %v3892_v36  ;;  %v3862_v41 = vadd.f32 %v3830_v28, %v3798_v30  ;;  %v3761_v10 = vadd.f32 %v3639_v12, %v7507_v27  ;;  %v3435_v8 = vpop.f32.mrb[251].mxu0  ;;  %v3836_v12 = vld [vmem:[%s5869_s12 + $0x68] sm:$0xff] }
 0x41d   : > { %3923 = vst [vmem:[%s7600_s10 + $0x20] sm:$0xff] %v3891_v20  ;;  %v3861_v19 = vadd.f32 %v3829_v59, %v3797_v44  ;;  %v3760_v1 = vadd.f32 %v3634_v23, %v7509_v22  ;;  %v4816_v62 = vpop.f32.mrb[10].mxu1 }
 0x41e   : > { %v3894_v43 = vmax.f32 %v3862_v41, 0.0  ;;  %v3800_v63 = vadd.f32 %v7582_v33, %v3761_v10  ;;  %v3649_v58 = vadd.f32 %v4816_v62, %v3423_v2  ;;  %v3643_v0 = vpop.f32.mrb[11].mxu1 }
 0x41f   : > { %v3893_v35 = vmax.f32 %v3861_v19, 0.0  ;;  %v3799_v27 = vadd.f32 %v7582_v33, %v3760_v1  ;;  %v3644_v32 = vadd.f32 %v3643_v0, %v7590_v9  ;;  %v3438_v13 = vpop.f32.mrb[252].mxu0 }
 0x420   : > { %3926 = vst [vmem:[%s7600_s10 + $0x38] sm:$0xff] %v3894_v43  ;;  %v3864_v24 = vadd.f32 %v3832_v18, %v3800_v63  ;;  %v3763_v53 = vadd.f32 %v3649_v58, %v7512_v50  ;;  %v3440_v22 = vpop.f32.mrb[253].mxu0  ;;  %v3838_v43 = vld [vmem:[%s5869_s12 + $0x78] sm:$0xff] }
 0x421   : > { %3925 = vst [vmem:[%s7600_s10 + $0x30] sm:$0xff] %v3893_v35  ;;  %v3863_v11 = vadd.f32 %v3831_v4, %v3799_v27  ;;  %v3762_v2 = vadd.f32 %v3644_v32, %v7514_v54  ;;  %v4819_v6 = vpop.f32.mrb[12].mxu1  ;;  %v3837_v35 = vld [vmem:[%s5869_s12 + $0x70] sm:$0xff] }
 0x422   : > { %v3896_v3 = vmax.f32 %v3864_v24, 0.0  ;;  %v3802_v45 = vadd.f32 %v7582_v33, %v3763_v53  ;;  %v3659_v9 = vadd.f32 %v4819_v6, %v3433_v37  ;;  %v3653_v25 = vpop.f32.mrb[13].mxu1  ;;  %v3835_v37 = vld [vmem:[%s5869_s12 + $0x60] sm:$0xff] }
 0x423   : > { %v3895_v28 = vmax.f32 %v3863_v11, 0.0  ;;  %v3801_v50 = vadd.f32 %v7582_v33, %v3762_v2  ;;  %v3654_v14 = vadd.f32 %v3653_v25, %v3428_v29  ;;  %v3443_v60 = vpop.f32.mrb[254].mxu0 }
 0x424   : > { %3928 = vst [vmem:[%s7600_s10 + $0x48] sm:$0xff] %v3896_v3  ;;  %v3866_v36 = vadd.f32 %v3834_v49, %v3802_v45  ;;  %v3765_v30 = vadd.f32 %v3659_v9, %v7517_v31  ;;  %v3445_v54 = vpop.f32.mrb[255].mxu0  ;;  %v3839_v3 = vld [vmem:[%s5869_s12 + $0x80] sm:$0xff] }
 0x425   : > { %3927 = vst [vmem:[%s7600_s10 + $0x40] sm:$0xff] %v3895_v28  ;;  %v3865_v59 = vadd.f32 %v3833_v15, %v3801_v50  ;;  %v3764_v21 = vadd.f32 %v3654_v14, %v7519_v39  ;;  %v4822_v20 = vpop.f32.mrb[14].mxu1  ;;  %v3840_v28 = vld [vmem:[%s5869_s12 + $0x88] sm:$0xff] }
 0x426   : > { %v3898_v44 = vmax.f32 %v3866_v36, 0.0  ;;  %v3804_v23 = vadd.f32 %v7582_v33, %v3765_v30  ;;  %v3669_v29 = vadd.f32 %v4822_v20, %v3443_v60  ;;  %v3663_v41 = vpop.f32.mrb[15].mxu1 }
 0x427   : > { %v3897_v10 = vmax.f32 %v3865_v59, 0.0  ;;  %v3803_v31 = vadd.f32 %v7582_v33, %v3764_v21  ;;  %v3664_v8 = vadd.f32 %v3663_v41, %v3438_v13  ;;  %v3448_v19 = vpop.f32.mrb[0].mxu0  ;;  %v3841_v21 = vld [vmem:[%s5869_s12 + $0x90] sm:$0xff] }
 0x428   : > { %3930 = vst [vmem:[%s7600_s10 + $0x58] sm:$0xff] %v3898_v44  ;;  %v3868_v18 = vadd.f32 %v3836_v12, %v3804_v23  ;;  %v3767_v1 = vadd.f32 %v3669_v29, %v7525_v26  ;;  %v3450_v39 = vpop.f32.mrb[1].mxu0 }
 0x429   : > { %3929 = vst [vmem:[%s7600_s10 + $0x50] sm:$0xff] %v3897_v10  ;;  %v3867_v62 = vadd.f32 %v3835_v37, %v3803_v31  ;;  %v3766_v63 = vadd.f32 %v3664_v8, %v7522_v42  ;;  %v4825_v4 = vpop.f32.mrb[16].mxu1 }
 0x42a   : > { %v3900_v58 = vmax.f32 %v3868_v18, 0.0  ;;  %v3806_v0 = vadd.f32 %v7582_v33, %v3767_v1  ;;  %v3673_v27 = vpop.f32.mrb[17].mxu1 }
 0x42b   : > { %v3899_v32 = vmax.f32 %v3867_v62, 0.0  ;;  %v3805_v13 = vadd.f32 %v7582_v33, %v3766_v63  ;;  %v3674_v24 = vadd.f32 %v3673_v27, %v3448_v19  ;;  %v3453_v26 = vpop.f32.mrb[2].mxu0  ;;  %v3842_v19 = vld [vmem:[%s5869_s12 + $0x98] sm:$0xff] }
 0x42c   : > { %3932 = vst [vmem:[%s7600_s10 + $0x68] sm:$0xff] %v3900_v58  ;;  %v3870_v53 = vadd.f32 %v3838_v43, %v3806_v0  ;;  %v3679_v22 = vadd.f32 %v4825_v4, %v3453_v26  ;;  %v3455_v11 = vpop.f32.mrb[3].mxu0  ;;  %v3843_v0 = vld [vmem:[%s5869_s12 + $0xa0] sm:$0xff] }
 0x42d   : > { %3931 = vst [vmem:[%s7600_s10 + $0x60] sm:$0xff] %v3899_v32  ;;  %v3869_v42 = vadd.f32 %v3837_v35, %v3805_v13  ;;  %v3768_v49 = vadd.f32 %v3674_v24, %v7528_v38  ;;  %v4828_v2 = vpop.f32.mrb[18].mxu1  ;;  %v3844_v11 = vld [vmem:[%s5869_s12 + $0xa8] sm:$0xff] }
 0x42e   : > { %v3902_v6 = vmax.f32 %v3870_v53, 0.0  ;;  %v3769_v45 = vadd.f32 %v3679_v22, %v7531_v56  ;;  %v3683_v15 = vpop.f32.mrb[19].mxu1 }
 0x42f   : > { %v3901_v9 = vmax.f32 %v3869_v42, 0.0  ;;  %v3807_v25 = vadd.f32 %v7582_v33, %v3768_v49  ;;  %v3458_v50 = vpop.f32.mrb[4].mxu0 }
 0x430   : > { %3934 = vst [vmem:[%s7600_s10 + $0x78] sm:$0xff] %v3902_v6  ;;  %v3808_v14 = vadd.f32 %v7582_v33, %v3769_v45  ;;  %v3684_v60 = vadd.f32 %v3683_v15, %v3458_v50  ;;  %v3460_v36 = vpop.f32.mrb[5].mxu0 }
 0x431   : > { %3933 = vst [vmem:[%s7600_s10 + $0x70] sm:$0xff] %v3901_v9  ;;  %v3871_v38 = vadd.f32 %v3839_v3, %v3807_v25  ;;  %v4831_v30 = vpop.f32.mrb[20].mxu1  ;;  %v3845_v25 = vld [vmem:[%s5869_s12 + $0xb0] sm:$0xff] }
 0x432   : > { %v3872_v54 = vadd.f32 %v3840_v28, %v3808_v14  ;;  %v3770_v56 = vadd.f32 %v3684_v60, %v7534_v51  ;;  %v3693_v59 = vpop.f32.mrb[21].mxu1 }
 0x433   : > { %v3903_v12 = vmax.f32 %v3871_v38, 0.0  ;;  %v3463_v20 = vpop.f32.mrb[6].mxu0 }
 0x434   : > { %v3904_v44 = vmax.f32 %v3872_v54, 0.0  ;;  %v3809_v23 = vadd.f32 %v7582_v33, %v3770_v56  ;;  %v3689_v37 = vadd.f32 %v4828_v2, %v3463_v20  ;;  %v3465_v29 = vpop.f32.mrb[7].mxu0  ;;  %v3846_v56 = vld [vmem:[%s5869_s12 + $0xb8] sm:$0xff] }
 0x435   : > { %3935 = vst [vmem:[%s7600_s10 + $0x80] sm:$0xff] %v3903_v12  ;;  %v4834_v41 = vpop.f32.mrb[22].mxu1 }
 0x436   : > { %3936 = vst [vmem:[%s7600_s10 + $0x88] sm:$0xff] %v3904_v44  ;;  %v3873_v10 = vadd.f32 %v3841_v21, %v3809_v23  ;;  %v3771_v31 = vadd.f32 %v3689_v37, %v7537_v55  ;;  %v3703_v8 = vpop.f32.mrb[23].mxu1  ;;  %v3847_v37 = vld [vmem:[%s5869_s12 + $0xc0] sm:$0xff] }
 0x437   : > { %v3468_v51 = vpop.f32.mrb[8].mxu0 }
 0x438   : > { %v3905_v18 = vmax.f32 %v3873_v10, 0.0  ;;  %v3810_v1 = vadd.f32 %v7582_v33, %v3771_v31  ;;  %v3694_v39 = vadd.f32 %v3693_v59, %v3468_v51  ;;  %v3470_v62 = vpop.f32.mrb[9].mxu0  ;;  %v3848_v51 = vld [vmem:[%s5869_s12 + $0xc8] sm:$0xff] }
 0x439   : > { %v4837_v43 = vpop.f32.mrb[24].mxu1 }
 0x43a   : > { %3937 = vst [vmem:[%s7600_s10 + $0x90] sm:$0xff] %v3905_v18  ;;  %v3874_v63 = vadd.f32 %v3842_v19, %v3810_v1  ;;  %v3772_v4 = vadd.f32 %v3694_v39, %v7540_v52  ;;  %v3713_v58 = vpop.f32.mrb[25].mxu1 }
 0x43b   : > { %v3473_v35 = vpop.f32.mrb[10].mxu0 }
 0x43c   : > { %v3906_v27 = vmax.f32 %v3874_v63, 0.0  ;;  %v3811_v55 = vadd.f32 %v7582_v33, %v3772_v4  ;;  %v3699_v32 = vadd.f32 %v4831_v30, %v3473_v35  ;;  %v3475_v13 = vpop.f32.mrb[11].mxu0 }
 0x43d   : > { %v4840_v24 = vpop.f32.mrb[26].mxu1  ;;  %v3850_v13 = vld [vmem:[%s5869_s12 + $0xd8] sm:$0xff] }
 0x43e   : > { %3938 = vst [vmem:[%s7600_s10 + $0x98] sm:$0xff] %v3906_v27  ;;  %v3875_v26 = vadd.f32 %v3843_v0, %v3811_v55  ;;  %v3773_v53 = vadd.f32 %v3699_v32, %v7543_v16  ;;  %v3723_v22 = vpop.f32.mrb[27].mxu1 }
 0x43f   : > { %v3478_v42 = vpop.f32.mrb[12].mxu0 }
 0x440   : > { %v3907_v49 = vmax.f32 %v3875_v26, 0.0  ;;  %v3812_v52 = vadd.f32 %v7582_v33, %v3773_v53  ;;  %v3704_v2 = vadd.f32 %v3703_v8, %v3478_v42  ;;  %v3480_v6 = vpop.f32.mrb[13].mxu0 }
 0x441   : > { %v7679_v3 = vpop.f32.mrb[28].mxu1 }
 0x442   : > { %3939 = vst [vmem:[%s7600_s10 + $0xa0] sm:$0xff] %v3907_v49  ;;  %v3876_v45 = vadd.f32 %v3844_v11, %v3812_v52  ;;  %v3774_v15 = vadd.f32 %v3704_v2, %v7546_v5  ;;  %v3733_v9 = vpop.f32.mrb[29].mxu1 }
 0x443   : > { %v3483_v28 = vpop.f32.mrb[14].mxu0 }
 0x444   : > { %v3908_v16 = vmax.f32 %v3876_v45, 0.0  ;;  %v3813_v50 = vadd.f32 %v7582_v33, %v3774_v15  ;;  %v3709_v14 = vadd.f32 %v4834_v41, %v3483_v28  ;;  %v3485_v60 = vpop.f32.mrb[15].mxu0 }
 0x445   : > { %v7685_v36 = vpop.f32.mrb[30].mxu1 }
 0x446   : > { %3940 = vst [vmem:[%s7600_s10 + $0xa8] sm:$0xff] %v3908_v16  ;;  %v3877_v38 = vadd.f32 %v3845_v25, %v3813_v50  ;;  %v3775_v30 = vadd.f32 %v3709_v14, %v7549_v48  ;;  %v3743_v54 = vpop.f32.mrb[31].mxu1 }
 0x447   : > { %v3488_v5 = vpop.f32.mrb[16].mxu0 }
 0x448   : > { %v3909_v59 = vmax.f32 %v3877_v38, 0.0  ;;  %v3814_v12 = vadd.f32 %v7582_v33, %v3775_v30  ;;  %v3714_v21 = vadd.f32 %v3713_v58, %v3488_v5  ;;  %v3490_v20 = vpop.f32.mrb[17].mxu0  ;;  %v3853_v38 = vld [vmem:[%s5869_s12 + $0xf0] sm:$0xff] }
 0x44a   : > { %3941 = vst [vmem:[%s7600_s10 + $0xb0] sm:$0xff] %v3909_v59  ;;  %v3878_v44 = vadd.f32 %v3846_v56, %v3814_v12  ;;  %v3776_v23 = vadd.f32 %v3714_v21, %v7552_v47  ;;  %v3854_v21 = vld [vmem:[%s5869_s12 + $0xf8] sm:$0xff] }
 0x44b   : > { %v3493_v29 = vpop.f32.mrb[18].mxu0 }
 0x44c   : > { %v3910_v41 = vmax.f32 %v3878_v44, 0.0  ;;  %v3815_v48 = vadd.f32 %v7582_v33, %v3776_v23  ;;  %v3719_v10 = vadd.f32 %v4837_v43, %v3493_v29  ;;  %v3495_v31 = vpop.f32.mrb[19].mxu0  ;;  %v3849_v43 = vld [vmem:[%s5869_s12 + $0xd0] sm:$0xff] }
 0x44e   : > { %3942 = vst [vmem:[%s7600_s10 + $0xb8] sm:$0xff] %v3910_v41  ;;  %v3879_v8 = vadd.f32 %v3847_v37, %v3815_v48  ;;  %v3777_v19 = vadd.f32 %v3719_v10, %v7555_v17 }
 0x44f   : > { %v3498_v18 = vpop.f32.mrb[20].mxu0 }
 0x450   : > { %v3911_v1 = vmax.f32 %v3879_v8, 0.0  ;;  %v3816_v47 = vadd.f32 %v7582_v33, %v3777_v19  ;;  %v3724_v39 = vadd.f32 %v3723_v22, %v3498_v18  ;;  %v3500_v62 = vpop.f32.mrb[21].mxu0 }
 0x452   : > { %3943 = vst [vmem:[%s7600_s10 + $0xc0] sm:$0xff] %v3911_v1  ;;  %v3880_v63 = vadd.f32 %v3848_v51, %v3816_v47  ;;  %v3778_v4 = vadd.f32 %v3724_v39, %v7558_v61 }
 0x453   : > { %v3503_v58 = vpop.f32.mrb[22].mxu0 }
 0x454   : > { %v3912_v0 = vmax.f32 %v3880_v63, 0.0  ;;  %v3817_v17 = vadd.f32 %v7582_v33, %v3778_v4  ;;  %v3729_v35 = vadd.f32 %v4840_v24, %v3503_v58  ;;  %v3505_v27 = vpop.f32.mrb[23].mxu0  ;;  %v3851_v24 = vld [vmem:[%s5869_s12 + $0xe0] sm:$0xff] }
 0x456   : > { %3944 = vst [vmem:[%s7600_s10 + $0xc8] sm:$0xff] %v3912_v0  ;;  %v3881_v55 = vadd.f32 %v3849_v43, %v3817_v17  ;;  %v3779_v32 = vadd.f32 %v3729_v35, %v7561_v34 }
 0x457   : > { %v3508_v26 = vpop.f32.mrb[24].mxu0 }
 0x458   : > { %v3913_v53 = vmax.f32 %v3881_v55, 0.0  ;;  %v3818_v61 = vadd.f32 %v7582_v33, %v3779_v32  ;;  %v3734_v22 = vadd.f32 %v3733_v9, %v3508_v26  ;;  %v3510_v11 = vpop.f32.mrb[25].mxu0  ;;  %v3852_v9 = vld [vmem:[%s5869_s12 + $0xe8] sm:$0xff] }
 0x45a   : > { %3945 = vst [vmem:[%s7600_s10 + $0xd0] sm:$0xff] %v3913_v53  ;;  %v3882_v42 = vadd.f32 %v3850_v13, %v3818_v61  ;;  %v3780_v49 = vadd.f32 %v3734_v22, %v7564_v40 }
 0x45b   : > { %v3513_v52 = vpop.f32.mrb[26].mxu0 }
 0x45c   : > { %v3914_v2 = vmax.f32 %v3882_v42, 0.0  ;;  %v3819_v34 = vadd.f32 %v7582_v33, %v3780_v49  ;;  %v3739_v6 = vadd.f32 %v7679_v3, %v3513_v52  ;;  %v3515_v45 = vpop.f32.mrb[27].mxu0 }
 0x45e   : > { %3946 = vst [vmem:[%s7600_s10 + $0xd8] sm:$0xff] %v3914_v2  ;;  %v3883_v15 = vadd.f32 %v3851_v24, %v3819_v34  ;;  %v3781_v25 = vadd.f32 %v3739_v6, %v7569_v46 }
 0x45f   : > { %v3518_v28 = vpop.f32.mrb[28].mxu0 }
 0x460   : > { %v3915_v16 = vmax.f32 %v3883_v15, 0.0  ;;  %v3820_v40 = vadd.f32 %v7582_v33, %v3781_v25  ;;  %v3744_v50 = vadd.f32 %v3743_v54, %v3518_v28  ;;  %v3520_v14 = vpop.f32.mrb[29].mxu0 }
 0x462   : > { %3947 = vst [vmem:[%s7600_s10 + $0xe0] sm:$0xff] %v3915_v16  ;;  %v3884_v60 = vadd.f32 %v3852_v9, %v3820_v40  ;;  %v3782_v3 = vadd.f32 %v3744_v50, %v7572_v57 }
 0x463   : > { %v3523_v30 = vpop.f32.mrb[30].mxu0 }
 0x464   : > { %v3916_v56 = vmax.f32 %v3884_v60, 0.0  ;;  %v3821_v46 = vadd.f32 %v7582_v33, %v3782_v3  ;;  %v3749_v5 = vadd.f32 %v7685_v36, %v3523_v30  ;;  %v3525_v59 = vpop.f32.mrb[31].mxu0 }
 0x466   : > { %3948 = vst [vmem:[%s7600_s10 + $0xe8] sm:$0xff] %v3916_v56  ;;  %v3885_v54 = vadd.f32 %v3853_v38, %v3821_v46  ;;  %v3783_v12 = vadd.f32 %v3749_v5, %v7577_v7 }
 0x468   : > { %v3917_v20 = vmax.f32 %v3885_v54, 0.0  ;;  %v3822_v44 = vadd.f32 %v7582_v33, %v3783_v12 }
 0x46a   : > { %3949 = vst [vmem:[%s7600_s10 + $0xf0] sm:$0xff] %v3917_v20  ;;  %v3886_v57 = vadd.f32 %v3854_v21, %v3822_v44 }
 0x46c   : > { %v3918_v36 = vmax.f32 %v3886_v57, 0.0 }
 0x46e   : > { %3950 = vst [vmem:[%s7600_s10 + $0xf8] sm:$0xff] %v3918_v36 }
 0x46f   : > { %5583 = shalt.err (!%p5580_p1)
}
 0x470   : > { %s5584_s12 = scalar_lea.hbm %s7731_s11, 4096  ;;  %s5588_s15 = scalar_lea.hbm %s7783_s5, 8192 }
 0x471   : > { %p5585_p13 = scmp.ne.s32.totalorder %s7731_s11, %s5584_s12  ;;  %p5589_p4 = scmp.lt.u32.totalorder %s7731_s11, %s7783_s5 }
 0x472   : > { %p5590_p5 = scmp.lt.u32.totalorder %s5588_s15, %s5584_s12  ;;  %p5592_p11 = scmp.lt.u32.totalorder %s5584_s12, %s7731_s11 }
 0x473   : > { %p5586_p6 = pnand %p5585_p13, %p8010_p0 }
 0x474   : > { %p5591_p8 = por %p5590_p5, %p5589_p4 }
 0x475   : > { %p5587_p10 = pneg %p5586_p6 }
 0x476   : > { %p5593_p2 = por %p5592_p11, %p5591_p8 }
 0x478   : > { %p5594_p3 = pnand %p5593_p2, %p5587_p10 }
 0x47a   : > { %5597 = shalt.err (!%p5594_p3)
}
 0x47b   : > { %s5650_s28 = smov 128   ;;  %s5651_s9 = smov 8  }
 0x47c   : > { %5337 = dma.vmem_to_hbm [thread:$0]  (%p8010_p0), %s7733_s13, 4096, %s7731_s11, %s3952_s17, %s5650_s28, %s5650_s28, %s5651_s9  }
 0x47d PF: > { %s3980_s30 = sand.u32 1, %s5628_s18   ;;  %p8011_p7 = scmp.ne.s32.totalorder %s7883_s25, 0 }
 0x47e   : > { %p8012_p9 = scmp.ge.s32.totalorder %s5640_s21, 2  ;;  %s3981_s7 = scalar_lea.sflag [#allocation5], %s3980_s30 }
 0x480   : > { %p5351_p12 = pnand %p8012_p9, %p8011_p7 }
 0x482   : > { %5623 = dma.done.wait (!%p5351_p12), %s3981_s7, 4096  }
 0x483   : > { %5625 = vsyncadd (!%p5351_p12), %s3981_s7, 4294963200  ;;  %p19_p1 = scmp.ge.s32.totalorder %s5798_s29, 4   ;;  %s8013_s18 = smov %s5632_s19 }
 0x484   : > { %s8014_s19 = smov %s5636_s20  ;;  %s8015_s20 = smov %s5814_s27 }
 0x485   : > { %s8016_s21 = smov %s5798_s29  ;;  %21 = sbr.rel (!%p19_p1) target bundleno = 6 (0x6), region = 98 }
 0x48c   :  { %3986 = vsyncpa [#allocation4], 1 }
 0x48d   :  { %3988 = vsyncpa [#allocation4 + $0x1], 1 }
 0x48e   :  { %3989 = vsyncpa [#allocation7], 1 }
 0x48f   :  { %3990 = vsyncpa [#allocation5], 1 }
 0x490   :  { %3992 = vsyncpa [#allocation5 + $0x1], 1 }

</bundles_post_ra>
